<compile_context>
chip_gen: v7x
topology: tpu7x:2x2x1
jax: 0.10.0
libtpu: 0.0.40
codegen_flags: <defaults>
</compile_context>

<pallas_src>
import jax
import jax.numpy as jnp
from jax.experimental import pallas as pl
from jax.experimental.pallas import tpu as pltpu

EPS = 1e-5


# --------------------- wrapper-side one-time weight folding -------------------

def _build_scanline_rhs(w_conv, bn_scale, S, first_layer):
    """Banded matmul operands for a 3x3 same-pad conv over interleaved scanlines.

    Returns rhs of shape (3, K_in, S*C_out) such that for output row h:
        conv_out_scanline[h] = sum_di padded_scanlines[h + di] @ rhs[di]
    Input lane layouts:
      first layer : lane = w_pad * C_in + ci, w_pad in [0, S+2)   (explicit zero pad)
      later layers: lane = 2*u*C_in + ci, u in [0, S)             (post-maxpool,
                    un-compacted; horizontal padding = taps simply left out of band)
    The BatchNorm scale is folded into the weights (per-Cout column scaling).
    """
    C_out, C_in, _, _ = w_conv.shape
    K_in = (S + 2) * C_in if first_layer else (2 * S - 1) * C_in
    wf = (w_conv * bn_scale[:, None, None, None]).astype(jnp.float32)

    w = jnp.arange(S).reshape(S, 1, 1, 1)
    dj = jnp.arange(3).reshape(1, 3, 1, 1)
    ci = jnp.arange(C_in).reshape(1, 1, C_in, 1)
    co = jnp.arange(C_out).reshape(1, 1, 1, C_out)
    u = w + dj - 1                                      # input pixel index (may be OOB)
    if first_layer:
        k = (u + 1) * C_in + ci                         # pad pixels exist as zero lanes
    else:
        k = jnp.where((u >= 0) & (u < S), 2 * u * C_in + ci, K_in)  # OOB -> dropped
    col = w * C_out + co

    shape = (S, 3, C_in, C_out)
    k = jnp.broadcast_to(k, shape).reshape(-1)
    col = jnp.broadcast_to(col, shape).reshape(-1)

    mats = []
    for di in range(3):
        vals = jnp.broadcast_to(
            jnp.transpose(wf[:, :, di, :], (2, 1, 0))[None], shape).reshape(-1)
        mats.append(jnp.zeros((K_in, S * C_out), jnp.float32)
                    .at[k, col].add(vals, mode="drop"))
    return jnp.stack(mats)


def prepare_params(params, H):
    """One-time folding of PyTorch-layout weights into kernel operands."""
    S = [H, H // 2, H // 4, H // 8]
    rhs, bias_rows = [], []
    for i in range(4):
        p = params[f"conv{i + 1}"]
        scale = p["gamma"] / jnp.sqrt(p["var"] + EPS)
        shift = (p["b"] - p["mean"]) * scale + p["beta"]   # conv bias folded through BN
        rhs.append(_build_scanline_rhs(p["w"], scale, S[i], first_layer=(i == 0)))
        bias_rows.append(jnp.tile(shift, S[i]))            # lane layout w*C + c
    C4 = params["conv4"]["w"].shape[0]
    S4 = S[3]
    fcw = params["fc1"]["w"]                               # (Fout, C4*S4*S4) torch layout
    Fout = fcw.shape[0]
    # fc operand per conv4 row h: fc_w[h, w*C4 + c, fo] = fcw[fo, c*S4*S4 + h*S4 + w]
    fc_w = jnp.transpose(fcw.reshape(Fout, C4, S4, S4), (2, 3, 1, 0)).reshape(
        S4, S4 * C4, Fout)
    return {
        "rhs": rhs,                                        # list of (3, K_in, 256)
        "bias": jnp.stack(bias_rows),                      # (4, 256)
        "fc_w": fc_w,                                      # (4, 256, Fout)
        "fc_b": params["fc1"]["b"].reshape(1, Fout),
    }


# ------------------------------- fused kernel ---------------------------------

def _make_kernel(S1, channels):
    C0, C1, C2, C3, C4 = channels
    S2, S3, S4 = S1 // 2, S1 // 4, S1 // 8

    def pool_into(y, S, C, dst_ref):
        # y: relu'd conv scanlines (S, S*C).  Write 2x2-maxpooled rows into the next
        # layer's vertically padded scratch (S//2 + 2, (S-1)*C).  Horizontal
        # compaction is folded into the next layer's RHS, so lanes stay un-compacted.
        L = S * C
        zrow = jnp.zeros((1, L - C), jnp.float32)
        dst_ref[0:1, :] = zrow                             # top vertical pad row
        dst_ref[S // 2 + 1:S // 2 + 2, :] = zrow           # bottom vertical pad row
        for r in range(S // 2):
            pr = jnp.maximum(y[2 * r:2 * r + 1, :], y[2 * r + 1:2 * r + 2, :])
            dst_ref[1 + r:2 + r, :] = jnp.maximum(pr[:, :L - C], pr[:, C:])

    def kernel(x_ref, r1_ref, r2_ref, r3_ref, r4_ref, bias_ref, fcw_ref, fcb_ref,
               o_ref, p2_ref, p3_ref, p4_ref):
        def conv(lhs, rhs_ref, brow):
            # BN scale already folded into rhs; epilogue is just bias + relu.
            acc = jnp.dot(lhs(0), rhs_ref[0], preferred_element_type=jnp.float32)
            acc = acc + jnp.dot(lhs(1), rhs_ref[1], preferred_element_type=jnp.float32)
            acc = acc + jnp.dot(lhs(2), rhs_ref[2], preferred_element_type=jnp.float32)
            return jnp.maximum(acc + brow, 0.0)

        x = x_ref[0]                                                 # (S1+2, (S1+2)*C0)
        y = conv(lambda d: x[d:d + S1, :], r1_ref, bias_ref[0:1, :])  # (S1, S1*C1)
        pool_into(y, S1, C1, p2_ref)
        y = conv(lambda d: p2_ref[d:d + S2, :], r2_ref, bias_ref[1:2, :])
        pool_into(y, S2, C2, p3_ref)
        y = conv(lambda d: p3_ref[d:d + S3, :], r3_ref, bias_ref[2:3, :])
        pool_into(y, S3, C3, p4_ref)
        y = conv(lambda d: p4_ref[d:d + S4, :], r4_ref, bias_ref[3:4, :])  # (S4, S4*C4)

        # AdaptiveAvgPool2d((4, 4)) on a 4x4 map is the identity.
        # TODO(synk): general adaptive average-pool bins when conv4 spatial != 4.
        out = fcb_ref[...]                                            # (1, Fout)
        for h in range(S4):
            out = out + jnp.dot(y[h:h + 1, :], fcw_ref[h],
                                preferred_element_type=jnp.float32)
        # nn.Dropout(0.5) is identity at inference time.
        o_ref[...] = out.reshape(1, 1, out.shape[-1])

    return kernel


def fused_forward(x_nchw, kp):
    N, C0, H, W = x_nchw.shape
    assert C0 == 1, "architecture assumes a single input channel"
    assert H == W and H % 8 == 0 and H // 8 == 4, "expects 32x32-style input"
    S1 = H
    C1 = kp["rhs"][0].shape[2] // S1
    C2 = kp["rhs"][1].shape[2] // (S1 // 2)
    C3 = kp["rhs"][2].shape[2] // (S1 // 4)
    Fout = kp["fc_b"].shape[1]

    # Only the network input is zero-padded on the host; everything else is in VMEM.
    xpad = jnp.pad(x_nchw[:, 0, :, :], ((0, 0), (1, 1), (1, 1)))  # (N, H+2, W+2)

    kernel = _make_kernel(S1, (C0, C1, C2, C3, kp["rhs"][3].shape[2] // (S1 // 8)))
    r1, r2, r3, r4 = kp["rhs"]
    out = pl.pallas_call(
        kernel,
        out_shape=jax.ShapeDtypeStruct((N, 1, Fout), jnp.float32),
        grid=(N,),
        in_specs=[
            pl.BlockSpec((1, H + 2, W + 2), lambda i: (i, 0, 0)),
            pl.BlockSpec(r1.shape, lambda i: (0, 0, 0)),
            pl.BlockSpec(r2.shape, lambda i: (0, 0, 0)),
            pl.BlockSpec(r3.shape, lambda i: (0, 0, 0)),
            pl.BlockSpec(r4.shape, lambda i: (0, 0, 0)),
            pl.BlockSpec(kp["bias"].shape, lambda i: (0, 0)),
            pl.BlockSpec(kp["fc_w"].shape, lambda i: (0, 0, 0)),
            pl.BlockSpec(kp["fc_b"].shape, lambda i: (0, 0)),
        ],
        out_specs=pl.BlockSpec((1, 1, Fout), lambda i: (i, 0, 0)),
        scratch_shapes=[
            pltpu.VMEM((S1 // 2 + 2, (S1 - 1) * C1), jnp.float32),       # conv2 input
            pltpu.VMEM((S1 // 4 + 2, (S1 // 2 - 1) * C2), jnp.float32),  # conv3 input
            pltpu.VMEM((S1 // 8 + 2, (S1 // 4 - 1) * C3), jnp.float32),  # conv4 input
        ],
        compiler_params=pltpu.CompilerParams(
            dimension_semantics=("parallel",)),
    )(xpad, r1, r2, r3, r4, kp["bias"], kp["fc_w"], kp["fc_b"])
    return out[:, 0, :]


# ------------------------------ Reference (jnp) --------------------------------

def reference_forward(x_nchw, params):
    x = x_nchw
    for i in range(4):
        p = params[f"conv{i + 1}"]
        x = jax.lax.conv_general_dilated(
            x, p["w"], (1, 1), ((1, 1), (1, 1)),
            dimension_numbers=("NCHW", "OIHW", "NCHW"))
        x = x + p["b"][None, :, None, None]
        scale = p["gamma"] / jnp.sqrt(p["var"] + EPS)
        x = (x - p["mean"][None, :, None, None]) * scale[None, :, None, None] \
            + p["beta"][None, :, None, None]
        x = jnp.maximum(x, 0.0)
        if i < 3:
            N, C, H, W = x.shape
            x = x.reshape(N, C, H // 2, 2, W // 2, 2).max(axis=(3, 5))
    N, C, H, W = x.shape
    x = x.reshape(N, C, 4, H // 4, 4, W // 4).mean(axis=(3, 5))
    feat = x.reshape(N, -1)
    return feat @ params["fc1"]["w"].T + params["fc1"]["b"]


# ------------------------------- Param init ------------------------------------

def init_params(key):
    channels = [(1, 8), (8, 16), (16, 32), (32, 64)]
    params = {}
    for i, (cin, cout) in enumerate(channels):
        key, k1, k2, k3, k4, k5, k6 = jax.random.split(key, 7)
        params[f"conv{i + 1}"] = {
            "w": 0.1 * jax.random.normal(k1, (cout, cin, 3, 3), jnp.float32),
            "b": 0.1 * jax.random.normal(k2, (cout,), jnp.float32),
            "gamma": 1.0 + 0.1 * jax.random.normal(k3, (cout,), jnp.float32),
            "beta": 0.1 * jax.random.normal(k4, (cout,), jnp.float32),
            "mean": 0.1 * jax.random.normal(k5, (cout,), jnp.float32),
            "var": 0.5 + jnp.abs(jax.random.normal(k6, (cout,), jnp.float32)) * 0.1,
        }
    key, k1, k2 = jax.random.split(key, 3)
    params["fc1"] = {
        "w": 0.02 * jax.random.normal(k1, (32, 64 * 4 * 4), jnp.float32),
        "b": 0.01 * jax.random.normal(k2, (32,), jnp.float32),
    }
    return params


# ---------------------------------- Main ----------------------------------------

if __name__ == "__main__":
    key = jax.random.PRNGKey(0)
    kx, kp = jax.random.split(key)
    x = jax.random.normal(kx, (2, 1, 32, 32), jnp.float32)  # NCHW, like PyTorch
    params = init_params(kp)

    kparams = prepare_params(params, x.shape[2])   # one-time weight/BN folding
    fwd = jax.jit(fused_forward)

    out = jax.block_until_ready(fwd(x, kparams))
    ref = jax.block_until_ready(reference_forward(x, params))

    assert out.shape == (2, 32), out.shape
    assert jnp.allclose(out, ref, rtol=1e-2, atol=1e-2), \
        f"max abs diff {jnp.max(jnp.abs(out - ref))}"
    print("KERNEL_OK")
</pallas_src>

<mosaic_0001>
module attributes {stable_mosaic.version = 11 : i64} {
  func.func @kernel(%arg0: i32, %arg1: memref<1x34x34xf32, #tpu.memory_space<vmem>>, %arg2: memref<3x34x256xf32, #tpu.memory_space<vmem>>, %arg3: memref<3x248x256xf32, #tpu.memory_space<vmem>>, %arg4: memref<3x240x256xf32, #tpu.memory_space<vmem>>, %arg5: memref<3x224x256xf32, #tpu.memory_space<vmem>>, %arg6: memref<4x256xf32, #tpu.memory_space<vmem>>, %arg7: memref<4x256x32xf32, #tpu.memory_space<vmem>>, %arg8: memref<1x32xf32, #tpu.memory_space<vmem>>, %arg9: memref<1x1x32xf32, #tpu.memory_space<vmem>>, %arg10: memref<18x248xf32, #tpu.memory_space<vmem>>, %arg11: memref<10x240xf32, #tpu.memory_space<vmem>>, %arg12: memref<6x224xf32, #tpu.memory_space<vmem>>) attributes {dimension_semantics = [#tpu.dimension_semantics<parallel>], iteration_bounds = array<i64: 2>, scalar_prefetch = 0 : i64, scratch_operands = 3 : i64, tpu.core_type = #tpu.core_type<tc>, window_params = [{transform_indices = @transform_0, window_bounds = array<i64: 1, 34, 34>}, {pipeline_mode = #tpu.pipeline_mode<synchronous>, transform_indices = @transform_1, window_bounds = array<i64: 3, 34, 256>}, {pipeline_mode = #tpu.pipeline_mode<synchronous>, transform_indices = @transform_2, window_bounds = array<i64: 3, 248, 256>}, {pipeline_mode = #tpu.pipeline_mode<synchronous>, transform_indices = @transform_3, window_bounds = array<i64: 3, 240, 256>}, {pipeline_mode = #tpu.pipeline_mode<synchronous>, transform_indices = @transform_4, window_bounds = array<i64: 3, 224, 256>}, {pipeline_mode = #tpu.pipeline_mode<synchronous>, transform_indices = @transform_5, window_bounds = array<i64: 4, 256>}, {pipeline_mode = #tpu.pipeline_mode<synchronous>, transform_indices = @transform_6, window_bounds = array<i64: 4, 256, 32>}, {pipeline_mode = #tpu.pipeline_mode<synchronous>, transform_indices = @transform_7, window_bounds = array<i64: 1, 32>}, {transform_indices = @transform_8, window_bounds = array<i64: 1, 1, 32>}]} {
    %c0 = arith.constant 0 : index
    %c0_0 = arith.constant 0 : index
    %c0_1 = arith.constant 0 : index
    %0 = vector.load %arg1[%c0, %c0_0, %c0_1] : memref<1x34x34xf32, #tpu.memory_space<vmem>>, vector<1x34x34xf32>
    %1 = vector.shape_cast %0 : vector<1x34x34xf32> to vector<34x34xf32>
    %c0_2 = arith.constant 0 : index
    %c0_3 = arith.constant 0 : index
    %2 = vector.load %arg6[%c0_2, %c0_3] : memref<4x256xf32, #tpu.memory_space<vmem>>, vector<1x256xf32>
    %3 = vector.extract_strided_slice %1 {offsets = [0, 0], sizes = [32, 34], strides = [1, 1]} : vector<34x34xf32> to vector<32x34xf32>
    %c0_4 = arith.constant 0 : index
    %c0_5 = arith.constant 0 : index
    %c0_6 = arith.constant 0 : index
    %4 = vector.load %arg2[%c0_4, %c0_5, %c0_6] : memref<3x34x256xf32, #tpu.memory_space<vmem>>, vector<1x34x256xf32>
    %5 = vector.shape_cast %4 : vector<1x34x256xf32> to vector<34x256xf32>
    %cst = arith.constant dense<0.000000e+00> : vector<32x256xf32>
    %6 = tpu.matmul %3, %5, %cst {dimension_numbers = #tpu.dot_dimension_numbers<[1], [0], [0], [1], [0, 0, 1, 1], [], []>} : vector<32x34xf32>, vector<34x256xf32>, vector<32x256xf32> -> vector<32x256xf32>
    %7 = vector.extract_strided_slice %1 {offsets = [1, 0], sizes = [32, 34], strides = [1, 1]} : vector<34x34xf32> to vector<32x34xf32>
    %c1 = arith.constant 1 : index
    %c0_7 = arith.constant 0 : index
    %c0_8 = arith.constant 0 : index
    %8 = vector.load %arg2[%c1, %c0_7, %c0_8] : memref<3x34x256xf32, #tpu.memory_space<vmem>>, vector<1x34x256xf32>
    %9 = vector.shape_cast %8 : vector<1x34x256xf32> to vector<34x256xf32>
    %cst_9 = arith.constant dense<0.000000e+00> : vector<32x256xf32>
    %10 = tpu.matmul %7, %9, %cst_9 {dimension_numbers = #tpu.dot_dimension_numbers<[1], [0], [0], [1], [0, 0, 1, 1], [], []>} : vector<32x34xf32>, vector<34x256xf32>, vector<32x256xf32> -> vector<32x256xf32>
    %11 = arith.addf %6, %10 : vector<32x256xf32>
    %12 = vector.extract_strided_slice %1 {offsets = [2, 0], sizes = [32, 34], strides = [1, 1]} : vector<34x34xf32> to vector<32x34xf32>
    %c2 = arith.constant 2 : index
    %c0_10 = arith.constant 0 : index
    %c0_11 = arith.constant 0 : index
    %13 = vector.load %arg2[%c2, %c0_10, %c0_11] : memref<3x34x256xf32, #tpu.memory_space<vmem>>, vector<1x34x256xf32>
    %14 = vector.shape_cast %13 : vector<1x34x256xf32> to vector<34x256xf32>
    %cst_12 = arith.constant dense<0.000000e+00> : vector<32x256xf32>
    %15 = tpu.matmul %12, %14, %cst_12 {dimension_numbers = #tpu.dot_dimension_numbers<[1], [0], [0], [1], [0, 0, 1, 1], [], []>} : vector<32x34xf32>, vector<34x256xf32>, vector<32x256xf32> -> vector<32x256xf32>
    %16 = arith.addf %11, %15 : vector<32x256xf32>
    %17 = vector.broadcast %2 : vector<1x256xf32> to vector<32x256xf32>
    %18 = arith.addf %16, %17 : vector<32x256xf32>
    %cst_13 = arith.constant 0.000000e+00 : f32
    %19 = vector.broadcast %cst_13 : f32 to vector<32x256xf32>
    %20 = arith.maximumf %18, %19 : vector<32x256xf32>
    %cst_14 = arith.constant 0.000000e+00 : f32
    %21 = vector.broadcast %cst_14 : f32 to vector<1x248xf32>
    %c0_15 = arith.constant 0 : index
    %c0_16 = arith.constant 0 : index
    %22 = vector.load %arg10[%c0_15, %c0_16] : memref<18x248xf32, #tpu.memory_space<vmem>>, vector<1x248xf32>
    tpu.vector_store %arg10[%c0_15, %c0_16], %21 {strides = array<i32>} : memref<18x248xf32, #tpu.memory_space<vmem>>, vector<1x248xf32>,
    %c17 = arith.constant 17 : index
    %c0_17 = arith.constant 0 : index
    %23 = vector.load %arg10[%c17, %c0_17] : memref<18x248xf32, #tpu.memory_space<vmem>>, vector<1x248xf32>
    tpu.vector_store %arg10[%c17, %c0_17], %21 {strides = array<i32>} : memref<18x248xf32, #tpu.memory_space<vmem>>, vector<1x248xf32>,
    %24 = vector.extract_strided_slice %20 {offsets = [0, 0], sizes = [1, 256], strides = [1, 1]} : vector<32x256xf32> to vector<1x256xf32>
    %25 = vector.extract_strided_slice %20 {offsets = [1, 0], sizes = [1, 256], strides = [1, 1]} : vector<32x256xf32> to vector<1x256xf32>
    %26 = arith.maximumf %24, %25 : vector<1x256xf32>
    %27 = vector.extract_strided_slice %26 {offsets = [0, 0], sizes = [1, 248], strides = [1, 1]} : vector<1x256xf32> to vector<1x248xf32>
    %28 = vector.extract_strided_slice %26 {offsets = [0, 8], sizes = [1, 248], strides = [1, 1]} : vector<1x256xf32> to vector<1x248xf32>
    %29 = arith.maximumf %27, %28 : vector<1x248xf32>
    %c1_18 = arith.constant 1 : index
    %c0_19 = arith.constant 0 : index
    %30 = vector.load %arg10[%c1_18, %c0_19] : memref<18x248xf32, #tpu.memory_space<vmem>>, vector<1x248xf32>
    tpu.vector_store %arg10[%c1_18, %c0_19], %29 {strides = array<i32>} : memref<18x248xf32, #tpu.memory_space<vmem>>, vector<1x248xf32>,
    %31 = vector.extract_strided_slice %20 {offsets = [2, 0], sizes = [1, 256], strides = [1, 1]} : vector<32x256xf32> to vector<1x256xf32>
    %32 = vector.extract_strided_slice %20 {offsets = [3, 0], sizes = [1, 256], strides = [1, 1]} : vector<32x256xf32> to vector<1x256xf32>
    %33 = arith.maximumf %31, %32 : vector<1x256xf32>
    %34 = vector.extract_strided_slice %33 {offsets = [0, 0], sizes = [1, 248], strides = [1, 1]} : vector<1x256xf32> to vector<1x248xf32>
    %35 = vector.extract_strided_slice %33 {offsets = [0, 8], sizes = [1, 248], strides = [1, 1]} : vector<1x256xf32> to vector<1x248xf32>
    %36 = arith.maximumf %34, %35 : vector<1x248xf32>
    %c2_20 = arith.constant 2 : index
    %c0_21 = arith.constant 0 : index
    %37 = vector.load %arg10[%c2_20, %c0_21] : memref<18x248xf32, #tpu.memory_space<vmem>>, vector<1x248xf32>
    tpu.vector_store %arg10[%c2_20, %c0_21], %36 {strides = array<i32>} : memref<18x248xf32, #tpu.memory_space<vmem>>, vector<1x248xf32>,
    %38 = vector.extract_strided_slice %20 {offsets = [4, 0], sizes = [1, 256], strides = [1, 1]} : vector<32x256xf32> to vector<1x256xf32>
    %39 = vector.extract_strided_slice %20 {offsets = [5, 0], sizes = [1, 256], strides = [1, 1]} : vector<32x256xf32> to vector<1x256xf32>
    %40 = arith.maximumf %38, %39 : vector<1x256xf32>
    %41 = vector.extract_strided_slice %40 {offsets = [0, 0], sizes = [1, 248], strides = [1, 1]} : vector<1x256xf32> to vector<1x248xf32>
    %42 = vector.extract_strided_slice %40 {offsets = [0, 8], sizes = [1, 248], strides = [1, 1]} : vector<1x256xf32> to vector<1x248xf32>
    %43 = arith.maximumf %41, %42 : vector<1x248xf32>
    %c3 = arith.constant 3 : index
    %c0_22 = arith.constant 0 : index
    %44 = vector.load %arg10[%c3, %c0_22] : memref<18x248xf32, #tpu.memory_space<vmem>>, vector<1x248xf32>
    tpu.vector_store %arg10[%c3, %c0_22], %43 {strides = array<i32>} : memref<18x248xf32, #tpu.memory_space<vmem>>, vector<1x248xf32>,
    %45 = vector.extract_strided_slice %20 {offsets = [6, 0], sizes = [1, 256], strides = [1, 1]} : vector<32x256xf32> to vector<1x256xf32>
    %46 = vector.extract_strided_slice %20 {offsets = [7, 0], sizes = [1, 256], strides = [1, 1]} : vector<32x256xf32> to vector<1x256xf32>
    %47 = arith.maximumf %45, %46 : vector<1x256xf32>
    %48 = vector.extract_strided_slice %47 {offsets = [0, 0], sizes = [1, 248], strides = [1, 1]} : vector<1x256xf32> to vector<1x248xf32>
    %49 = vector.extract_strided_slice %47 {offsets = [0, 8], sizes = [1, 248], strides = [1, 1]} : vector<1x256xf32> to vector<1x248xf32>
    %50 = arith.maximumf %48, %49 : vector<1x248xf32>
    %c4 = arith.constant 4 : index
    %c0_23 = arith.constant 0 : index
    %51 = vector.load %arg10[%c4, %c0_23] : memref<18x248xf32, #tpu.memory_space<vmem>>, vector<1x248xf32>
    tpu.vector_store %arg10[%c4, %c0_23], %50 {strides = array<i32>} : memref<18x248xf32, #tpu.memory_space<vmem>>, vector<1x248xf32>,
    %52 = vector.extract_strided_slice %20 {offsets = [8, 0], sizes = [1, 256], strides = [1, 1]} : vector<32x256xf32> to vector<1x256xf32>
    %53 = vector.extract_strided_slice %20 {offsets = [9, 0], sizes = [1, 256], strides = [1, 1]} : vector<32x256xf32> to vector<1x256xf32>
    %54 = arith.maximumf %52, %53 : vector<1x256xf32>
    %55 = vector.extract_strided_slice %54 {offsets = [0, 0], sizes = [1, 248], strides = [1, 1]} : vector<1x256xf32> to vector<1x248xf32>
    %56 = vector.extract_strided_slice %54 {offsets = [0, 8], sizes = [1, 248], strides = [1, 1]} : vector<1x256xf32> to vector<1x248xf32>
    %57 = arith.maximumf %55, %56 : vector<1x248xf32>
    %c5 = arith.constant 5 : index
    %c0_24 = arith.constant 0 : index
    %58 = vector.load %arg10[%c5, %c0_24] : memref<18x248xf32, #tpu.memory_space<vmem>>, vector<1x248xf32>
    tpu.vector_store %arg10[%c5, %c0_24], %57 {strides = array<i32>} : memref<18x248xf32, #tpu.memory_space<vmem>>, vector<1x248xf32>,
    %59 = vector.extract_strided_slice %20 {offsets = [10, 0], sizes = [1, 256], strides = [1, 1]} : vector<32x256xf32> to vector<1x256xf32>
    %60 = vector.extract_strided_slice %20 {offsets = [11, 0], sizes = [1, 256], strides = [1, 1]} : vector<32x256xf32> to vector<1x256xf32>
    %61 = arith.maximumf %59, %60 : vector<1x256xf32>
    %62 = vector.extract_strided_slice %61 {offsets = [0, 0], sizes = [1, 248], strides = [1, 1]} : vector<1x256xf32> to vector<1x248xf32>
    %63 = vector.extract_strided_slice %61 {offsets = [0, 8], sizes = [1, 248], strides = [1, 1]} : vector<1x256xf32> to vector<1x248xf32>
    %64 = arith.maximumf %62, %63 : vector<1x248xf32>
    %c6 = arith.constant 6 : index
    %c0_25 = arith.constant 0 : index
    %65 = vector.load %arg10[%c6, %c0_25] : memref<18x248xf32, #tpu.memory_space<vmem>>, vector<1x248xf32>
    tpu.vector_store %arg10[%c6, %c0_25], %64 {strides = array<i32>} : memref<18x248xf32, #tpu.memory_space<vmem>>, vector<1x248xf32>,
    %66 = vector.extract_strided_slice %20 {offsets = [12, 0], sizes = [1, 256], strides = [1, 1]} : vector<32x256xf32> to vector<1x256xf32>
    %67 = vector.extract_strided_slice %20 {offsets = [13, 0], sizes = [1, 256], strides = [1, 1]} : vector<32x256xf32> to vector<1x256xf32>
    %68 = arith.maximumf %66, %67 : vector<1x256xf32>
    %69 = vector.extract_strided_slice %68 {offsets = [0, 0], sizes = [1, 248], strides = [1, 1]} : vector<1x256xf32> to vector<1x248xf32>
    %70 = vector.extract_strided_slice %68 {offsets = [0, 8], sizes = [1, 248], strides = [1, 1]} : vector<1x256xf32> to vector<1x248xf32>
    %71 = arith.maximumf %69, %70 : vector<1x248xf32>
    %c7 = arith.constant 7 : index
    %c0_26 = arith.constant 0 : index
    %72 = vector.load %arg10[%c7, %c0_26] : memref<18x248xf32, #tpu.memory_space<vmem>>, vector<1x248xf32>
    tpu.vector_store %arg10[%c7, %c0_26], %71 {strides = array<i32>} : memref<18x248xf32, #tpu.memory_space<vmem>>, vector<1x248xf32>,
    %73 = vector.extract_strided_slice %20 {offsets = [14, 0], sizes = [1, 256], strides = [1, 1]} : vector<32x256xf32> to vector<1x256xf32>
    %74 = vector.extract_strided_slice %20 {offsets = [15, 0], sizes = [1, 256], strides = [1, 1]} : vector<32x256xf32> to vector<1x256xf32>
    %75 = arith.maximumf %73, %74 : vector<1x256xf32>
    %76 = vector.extract_strided_slice %75 {offsets = [0, 0], sizes = [1, 248], strides = [1, 1]} : vector<1x256xf32> to vector<1x248xf32>
    %77 = vector.extract_strided_slice %75 {offsets = [0, 8], sizes = [1, 248], strides = [1, 1]} : vector<1x256xf32> to vector<1x248xf32>
    %78 = arith.maximumf %76, %77 : vector<1x248xf32>
    %c8 = arith.constant 8 : index
    %c0_27 = arith.constant 0 : index
    %79 = vector.load %arg10[%c8, %c0_27] : memref<18x248xf32, #tpu.memory_space<vmem>>, vector<1x248xf32>
    tpu.vector_store %arg10[%c8, %c0_27], %78 {strides = array<i32>} : memref<18x248xf32, #tpu.memory_space<vmem>>, vector<1x248xf32>,
    %80 = vector.extract_strided_slice %20 {offsets = [16, 0], sizes = [1, 256], strides = [1, 1]} : vector<32x256xf32> to vector<1x256xf32>
    %81 = vector.extract_strided_slice %20 {offsets = [17, 0], sizes = [1, 256], strides = [1, 1]} : vector<32x256xf32> to vector<1x256xf32>
    %82 = arith.maximumf %80, %81 : vector<1x256xf32>
    %83 = vector.extract_strided_slice %82 {offsets = [0, 0], sizes = [1, 248], strides = [1, 1]} : vector<1x256xf32> to vector<1x248xf32>
    %84 = vector.extract_strided_slice %82 {offsets = [0, 8], sizes = [1, 248], strides = [1, 1]} : vector<1x256xf32> to vector<1x248xf32>
    %85 = arith.maximumf %83, %84 : vector<1x248xf32>
    %c9 = arith.constant 9 : index
    %c0_28 = arith.constant 0 : index
    %86 = vector.load %arg10[%c9, %c0_28] : memref<18x248xf32, #tpu.memory_space<vmem>>, vector<1x248xf32>
    tpu.vector_store %arg10[%c9, %c0_28], %85 {strides = array<i32>} : memref<18x248xf32, #tpu.memory_space<vmem>>, vector<1x248xf32>,
    %87 = vector.extract_strided_slice %20 {offsets = [18, 0], sizes = [1, 256], strides = [1, 1]} : vector<32x256xf32> to vector<1x256xf32>
    %88 = vector.extract_strided_slice %20 {offsets = [19, 0], sizes = [1, 256], strides = [1, 1]} : vector<32x256xf32> to vector<1x256xf32>
    %89 = arith.maximumf %87, %88 : vector<1x256xf32>
    %90 = vector.extract_strided_slice %89 {offsets = [0, 0], sizes = [1, 248], strides = [1, 1]} : vector<1x256xf32> to vector<1x248xf32>
    %91 = vector.extract_strided_slice %89 {offsets = [0, 8], sizes = [1, 248], strides = [1, 1]} : vector<1x256xf32> to vector<1x248xf32>
    %92 = arith.maximumf %90, %91 : vector<1x248xf32>
    %c10 = arith.constant 10 : index
    %c0_29 = arith.constant 0 : index
    %93 = vector.load %arg10[%c10, %c0_29] : memref<18x248xf32, #tpu.memory_space<vmem>>, vector<1x248xf32>
    tpu.vector_store %arg10[%c10, %c0_29], %92 {strides = array<i32>} : memref<18x248xf32, #tpu.memory_space<vmem>>, vector<1x248xf32>,
    %94 = vector.extract_strided_slice %20 {offsets = [20, 0], sizes = [1, 256], strides = [1, 1]} : vector<32x256xf32> to vector<1x256xf32>
    %95 = vector.extract_strided_slice %20 {offsets = [21, 0], sizes = [1, 256], strides = [1, 1]} : vector<32x256xf32> to vector<1x256xf32>
    %96 = arith.maximumf %94, %95 : vector<1x256xf32>
    %97 = vector.extract_strided_slice %96 {offsets = [0, 0], sizes = [1, 248], strides = [1, 1]} : vector<1x256xf32> to vector<1x248xf32>
    %98 = vector.extract_strided_slice %96 {offsets = [0, 8], sizes = [1, 248], strides = [1, 1]} : vector<1x256xf32> to vector<1x248xf32>
    %99 = arith.maximumf %97, %98 : vector<1x248xf32>
    %c11 = arith.constant 11 : index
    %c0_30 = arith.constant 0 : index
    %100 = vector.load %arg10[%c11, %c0_30] : memref<18x248xf32, #tpu.memory_space<vmem>>, vector<1x248xf32>
    tpu.vector_store %arg10[%c11, %c0_30], %99 {strides = array<i32>} : memref<18x248xf32, #tpu.memory_space<vmem>>, vector<1x248xf32>,
    %101 = vector.extract_strided_slice %20 {offsets = [22, 0], sizes = [1, 256], strides = [1, 1]} : vector<32x256xf32> to vector<1x256xf32>
    %102 = vector.extract_strided_slice %20 {offsets = [23, 0], sizes = [1, 256], strides = [1, 1]} : vector<32x256xf32> to vector<1x256xf32>
    %103 = arith.maximumf %101, %102 : vector<1x256xf32>
    %104 = vector.extract_strided_slice %103 {offsets = [0, 0], sizes = [1, 248], strides = [1, 1]} : vector<1x256xf32> to vector<1x248xf32>
    %105 = vector.extract_strided_slice %103 {offsets = [0, 8], sizes = [1, 248], strides = [1, 1]} : vector<1x256xf32> to vector<1x248xf32>
    %106 = arith.maximumf %104, %105 : vector<1x248xf32>
    %c12 = arith.constant 12 : index
    %c0_31 = arith.constant 0 : index
    %107 = vector.load %arg10[%c12, %c0_31] : memref<18x248xf32, #tpu.memory_space<vmem>>, vector<1x248xf32>
    tpu.vector_store %arg10[%c12, %c0_31], %106 {strides = array<i32>} : memref<18x248xf32, #tpu.memory_space<vmem>>, vector<1x248xf32>,
    %108 = vector.extract_strided_slice %20 {offsets = [24, 0], sizes = [1, 256], strides = [1, 1]} : vector<32x256xf32> to vector<1x256xf32>
    %109 = vector.extract_strided_slice %20 {offsets = [25, 0], sizes = [1, 256], strides = [1, 1]} : vector<32x256xf32> to vector<1x256xf32>
    %110 = arith.maximumf %108, %109 : vector<1x256xf32>
    %111 = vector.extract_strided_slice %110 {offsets = [0, 0], sizes = [1, 248], strides = [1, 1]} : vector<1x256xf32> to vector<1x248xf32>
    %112 = vector.extract_strided_slice %110 {offsets = [0, 8], sizes = [1, 248], strides = [1, 1]} : vector<1x256xf32> to vector<1x248xf32>
    %113 = arith.maximumf %111, %112 : vector<1x248xf32>
    %c13 = arith.constant 13 : index
    %c0_32 = arith.constant 0 : index
    %114 = vector.load %arg10[%c13, %c0_32] : memref<18x248xf32, #tpu.memory_space<vmem>>, vector<1x248xf32>
    tpu.vector_store %arg10[%c13, %c0_32], %113 {strides = array<i32>} : memref<18x248xf32, #tpu.memory_space<vmem>>, vector<1x248xf32>,
    %115 = vector.extract_strided_slice %20 {offsets = [26, 0], sizes = [1, 256], strides = [1, 1]} : vector<32x256xf32> to vector<1x256xf32>
    %116 = vector.extract_strided_slice %20 {offsets = [27, 0], sizes = [1, 256], strides = [1, 1]} : vector<32x256xf32> to vector<1x256xf32>
    %117 = arith.maximumf %115, %116 : vector<1x256xf32>
    %118 = vector.extract_strided_slice %117 {offsets = [0, 0], sizes = [1, 248], strides = [1, 1]} : vector<1x256xf32> to vector<1x248xf32>
    %119 = vector.extract_strided_slice %117 {offsets = [0, 8], sizes = [1, 248], strides = [1, 1]} : vector<1x256xf32> to vector<1x248xf32>
    %120 = arith.maximumf %118, %119 : vector<1x248xf32>
    %c14 = arith.constant 14 : index
    %c0_33 = arith.constant 0 : index
    %121 = vector.load %arg10[%c14, %c0_33] : memref<18x248xf32, #tpu.memory_space<vmem>>, vector<1x248xf32>
    tpu.vector_store %arg10[%c14, %c0_33], %120 {strides = array<i32>} : memref<18x248xf32, #tpu.memory_space<vmem>>, vector<1x248xf32>,
    %122 = vector.extract_strided_slice %20 {offsets = [28, 0], sizes = [1, 256], strides = [1, 1]} : vector<32x256xf32> to vector<1x256xf32>
    %123 = vector.extract_strided_slice %20 {offsets = [29, 0], sizes = [1, 256], strides = [1, 1]} : vector<32x256xf32> to vector<1x256xf32>
    %124 = arith.maximumf %122, %123 : vector<1x256xf32>
    %125 = vector.extract_strided_slice %124 {offsets = [0, 0], sizes = [1, 248], strides = [1, 1]} : vector<1x256xf32> to vector<1x248xf32>
    %126 = vector.extract_strided_slice %124 {offsets = [0, 8], sizes = [1, 248], strides = [1, 1]} : vector<1x256xf32> to vector<1x248xf32>
    %127 = arith.maximumf %125, %126 : vector<1x248xf32>
    %c15 = arith.constant 15 : index
    %c0_34 = arith.constant 0 : index
    %128 = vector.load %arg10[%c15, %c0_34] : memref<18x248xf32, #tpu.memory_space<vmem>>, vector<1x248xf32>
    tpu.vector_store %arg10[%c15, %c0_34], %127 {strides = array<i32>} : memref<18x248xf32, #tpu.memory_space<vmem>>, vector<1x248xf32>,
    %129 = vector.extract_strided_slice %20 {offsets = [30, 0], sizes = [1, 256], strides = [1, 1]} : vector<32x256xf32> to vector<1x256xf32>
    %130 = vector.extract_strided_slice %20 {offsets = [31, 0], sizes = [1, 256], strides = [1, 1]} : vector<32x256xf32> to vector<1x256xf32>
    %131 = arith.maximumf %129, %130 : vector<1x256xf32>
    %132 = vector.extract_strided_slice %131 {offsets = [0, 0], sizes = [1, 248], strides = [1, 1]} : vector<1x256xf32> to vector<1x248xf32>
    %133 = vector.extract_strided_slice %131 {offsets = [0, 8], sizes = [1, 248], strides = [1, 1]} : vector<1x256xf32> to vector<1x248xf32>
    %134 = arith.maximumf %132, %133 : vector<1x248xf32>
    %c16 = arith.constant 16 : index
    %c0_35 = arith.constant 0 : index
    %135 = vector.load %arg10[%c16, %c0_35] : memref<18x248xf32, #tpu.memory_space<vmem>>, vector<1x248xf32>
    tpu.vector_store %arg10[%c16, %c0_35], %134 {strides = array<i32>} : memref<18x248xf32, #tpu.memory_space<vmem>>, vector<1x248xf32>,
    %c1_36 = arith.constant 1 : index
    %c0_37 = arith.constant 0 : index
    %136 = vector.load %arg6[%c1_36, %c0_37] : memref<4x256xf32, #tpu.memory_space<vmem>>, vector<1x256xf32>
    %c0_38 = arith.constant 0 : index
    %c0_39 = arith.constant 0 : index
    %137 = vector.load %arg10[%c0_38, %c0_39] : memref<18x248xf32, #tpu.memory_space<vmem>>, vector<16x248xf32>
    %c0_40 = arith.constant 0 : index
    %c0_41 = arith.constant 0 : index
    %c0_42 = arith.constant 0 : index
    %138 = vector.load %arg3[%c0_40, %c0_41, %c0_42] : memref<3x248x256xf32, #tpu.memory_space<vmem>>, vector<1x248x256xf32>
    %139 = vector.shape_cast %138 : vector<1x248x256xf32> to vector<248x256xf32>
    %cst_43 = arith.constant dense<0.000000e+00> : vector<16x256xf32>
    %140 = tpu.matmul %137, %139, %cst_43 {dimension_numbers = #tpu.dot_dimension_numbers<[1], [0], [0], [1], [0, 0, 1, 1], [], []>} : vector<16x248xf32>, vector<248x256xf32>, vector<16x256xf32> -> vector<16x256xf32>
    %c1_44 = arith.constant 1 : index
    %c0_45 = arith.constant 0 : index
    %141 = vector.load %arg10[%c1_44, %c0_45] : memref<18x248xf32, #tpu.memory_space<vmem>>, vector<16x248xf32>
    %c1_46 = arith.constant 1 : index
    %c0_47 = arith.constant 0 : index
    %c0_48 = arith.constant 0 : index
    %142 = vector.load %arg3[%c1_46, %c0_47, %c0_48] : memref<3x248x256xf32, #tpu.memory_space<vmem>>, vector<1x248x256xf32>
    %143 = vector.shape_cast %142 : vector<1x248x256xf32> to vector<248x256xf32>
    %cst_49 = arith.constant dense<0.000000e+00> : vector<16x256xf32>
    %144 = tpu.matmul %141, %143, %cst_49 {dimension_numbers = #tpu.dot_dimension_numbers<[1], [0], [0], [1], [0, 0, 1, 1], [], []>} : vector<16x248xf32>, vector<248x256xf32>, vector<16x256xf32> -> vector<16x256xf32>
    %145 = arith.addf %140, %144 : vector<16x256xf32>
    %c2_50 = arith.constant 2 : index
    %c0_51 = arith.constant 0 : index
    %146 = vector.load %arg10[%c2_50, %c0_51] : memref<18x248xf32, #tpu.memory_space<vmem>>, vector<16x248xf32>
    %c2_52 = arith.constant 2 : index
    %c0_53 = arith.constant 0 : index
    %c0_54 = arith.constant 0 : index
    %147 = vector.load %arg3[%c2_52, %c0_53, %c0_54] : memref<3x248x256xf32, #tpu.memory_space<vmem>>, vector<1x248x256xf32>
    %148 = vector.shape_cast %147 : vector<1x248x256xf32> to vector<248x256xf32>
    %cst_55 = arith.constant dense<0.000000e+00> : vector<16x256xf32>
    %149 = tpu.matmul %146, %148, %cst_55 {dimension_numbers = #tpu.dot_dimension_numbers<[1], [0], [0], [1], [0, 0, 1, 1], [], []>} : vector<16x248xf32>, vector<248x256xf32>, vector<16x256xf32> -> vector<16x256xf32>
    %150 = arith.addf %145, %149 : vector<16x256xf32>
    %151 = vector.broadcast %136 : vector<1x256xf32> to vector<16x256xf32>
    %152 = arith.addf %150, %151 : vector<16x256xf32>
    %cst_56 = arith.constant 0.000000e+00 : f32
    %153 = vector.broadcast %cst_56 : f32 to vector<16x256xf32>
    %154 = arith.maximumf %152, %153 : vector<16x256xf32>
    %cst_57 = arith.constant 0.000000e+00 : f32
    %155 = vector.broadcast %cst_57 : f32 to vector<1x240xf32>
    %c0_58 = arith.constant 0 : index
    %c0_59 = arith.constant 0 : index
    %156 = vector.load %arg11[%c0_58, %c0_59] : memref<10x240xf32, #tpu.memory_space<vmem>>, vector<1x240xf32>
    tpu.vector_store %arg11[%c0_58, %c0_59], %155 {strides = array<i32>} : memref<10x240xf32, #tpu.memory_space<vmem>>, vector<1x240xf32>,
    %c9_60 = arith.constant 9 : index
    %c0_61 = arith.constant 0 : index
    %157 = vector.load %arg11[%c9_60, %c0_61] : memref<10x240xf32, #tpu.memory_space<vmem>>, vector<1x240xf32>
    tpu.vector_store %arg11[%c9_60, %c0_61], %155 {strides = array<i32>} : memref<10x240xf32, #tpu.memory_space<vmem>>, vector<1x240xf32>,
    %158 = vector.extract_strided_slice %154 {offsets = [0, 0], sizes = [1, 256], strides = [1, 1]} : vector<16x256xf32> to vector<1x256xf32>
    %159 = vector.extract_strided_slice %154 {offsets = [1, 0], sizes = [1, 256], strides = [1, 1]} : vector<16x256xf32> to vector<1x256xf32>
    %160 = arith.maximumf %158, %159 : vector<1x256xf32>
    %161 = vector.extract_strided_slice %160 {offsets = [0, 0], sizes = [1, 240], strides = [1, 1]} : vector<1x256xf32> to vector<1x240xf32>
    %162 = vector.extract_strided_slice %160 {offsets = [0, 16], sizes = [1, 240], strides = [1, 1]} : vector<1x256xf32> to vector<1x240xf32>
    %163 = arith.maximumf %161, %162 : vector<1x240xf32>
    %c1_62 = arith.constant 1 : index
    %c0_63 = arith.constant 0 : index
    %164 = vector.load %arg11[%c1_62, %c0_63] : memref<10x240xf32, #tpu.memory_space<vmem>>, vector<1x240xf32>
    tpu.vector_store %arg11[%c1_62, %c0_63], %163 {strides = array<i32>} : memref<10x240xf32, #tpu.memory_space<vmem>>, vector<1x240xf32>,
    %165 = vector.extract_strided_slice %154 {offsets = [2, 0], sizes = [1, 256], strides = [1, 1]} : vector<16x256xf32> to vector<1x256xf32>
    %166 = vector.extract_strided_slice %154 {offsets = [3, 0], sizes = [1, 256], strides = [1, 1]} : vector<16x256xf32> to vector<1x256xf32>
    %167 = arith.maximumf %165, %166 : vector<1x256xf32>
    %168 = vector.extract_strided_slice %167 {offsets = [0, 0], sizes = [1, 240], strides = [1, 1]} : vector<1x256xf32> to vector<1x240xf32>
    %169 = vector.extract_strided_slice %167 {offsets = [0, 16], sizes = [1, 240], strides = [1, 1]} : vector<1x256xf32> to vector<1x240xf32>
    %170 = arith.maximumf %168, %169 : vector<1x240xf32>
    %c2_64 = arith.constant 2 : index
    %c0_65 = arith.constant 0 : index
    %171 = vector.load %arg11[%c2_64, %c0_65] : memref<10x240xf32, #tpu.memory_space<vmem>>, vector<1x240xf32>
    tpu.vector_store %arg11[%c2_64, %c0_65], %170 {strides = array<i32>} : memref<10x240xf32, #tpu.memory_space<vmem>>, vector<1x240xf32>,
    %172 = vector.extract_strided_slice %154 {offsets = [4, 0], sizes = [1, 256], strides = [1, 1]} : vector<16x256xf32> to vector<1x256xf32>
    %173 = vector.extract_strided_slice %154 {offsets = [5, 0], sizes = [1, 256], strides = [1, 1]} : vector<16x256xf32> to vector<1x256xf32>
    %174 = arith.maximumf %172, %173 : vector<1x256xf32>
    %175 = vector.extract_strided_slice %174 {offsets = [0, 0], sizes = [1, 240], strides = [1, 1]} : vector<1x256xf32> to vector<1x240xf32>
    %176 = vector.extract_strided_slice %174 {offsets = [0, 16], sizes = [1, 240], strides = [1, 1]} : vector<1x256xf32> to vector<1x240xf32>
    %177 = arith.maximumf %175, %176 : vector<1x240xf32>
    %c3_66 = arith.constant 3 : index
    %c0_67 = arith.constant 0 : index
    %178 = vector.load %arg11[%c3_66, %c0_67] : memref<10x240xf32, #tpu.memory_space<vmem>>, vector<1x240xf32>
    tpu.vector_store %arg11[%c3_66, %c0_67], %177 {strides = array<i32>} : memref<10x240xf32, #tpu.memory_space<vmem>>, vector<1x240xf32>,
    %179 = vector.extract_strided_slice %154 {offsets = [6, 0], sizes = [1, 256], strides = [1, 1]} : vector<16x256xf32> to vector<1x256xf32>
    %180 = vector.extract_strided_slice %154 {offsets = [7, 0], sizes = [1, 256], strides = [1, 1]} : vector<16x256xf32> to vector<1x256xf32>
    %181 = arith.maximumf %179, %180 : vector<1x256xf32>
    %182 = vector.extract_strided_slice %181 {offsets = [0, 0], sizes = [1, 240], strides = [1, 1]} : vector<1x256xf32> to vector<1x240xf32>
    %183 = vector.extract_strided_slice %181 {offsets = [0, 16], sizes = [1, 240], strides = [1, 1]} : vector<1x256xf32> to vector<1x240xf32>
    %184 = arith.maximumf %182, %183 : vector<1x240xf32>
    %c4_68 = arith.constant 4 : index
    %c0_69 = arith.constant 0 : index
    %185 = vector.load %arg11[%c4_68, %c0_69] : memref<10x240xf32, #tpu.memory_space<vmem>>, vector<1x240xf32>
    tpu.vector_store %arg11[%c4_68, %c0_69], %184 {strides = array<i32>} : memref<10x240xf32, #tpu.memory_space<vmem>>, vector<1x240xf32>,
    %186 = vector.extract_strided_slice %154 {offsets = [8, 0], sizes = [1, 256], strides = [1, 1]} : vector<16x256xf32> to vector<1x256xf32>
    %187 = vector.extract_strided_slice %154 {offsets = [9, 0], sizes = [1, 256], strides = [1, 1]} : vector<16x256xf32> to vector<1x256xf32>
    %188 = arith.maximumf %186, %187 : vector<1x256xf32>
    %189 = vector.extract_strided_slice %188 {offsets = [0, 0], sizes = [1, 240], strides = [1, 1]} : vector<1x256xf32> to vector<1x240xf32>
    %190 = vector.extract_strided_slice %188 {offsets = [0, 16], sizes = [1, 240], strides = [1, 1]} : vector<1x256xf32> to vector<1x240xf32>
    %191 = arith.maximumf %189, %190 : vector<1x240xf32>
    %c5_70 = arith.constant 5 : index
    %c0_71 = arith.constant 0 : index
    %192 = vector.load %arg11[%c5_70, %c0_71] : memref<10x240xf32, #tpu.memory_space<vmem>>, vector<1x240xf32>
    tpu.vector_store %arg11[%c5_70, %c0_71], %191 {strides = array<i32>} : memref<10x240xf32, #tpu.memory_space<vmem>>, vector<1x240xf32>,
    %193 = vector.extract_strided_slice %154 {offsets = [10, 0], sizes = [1, 256], strides = [1, 1]} : vector<16x256xf32> to vector<1x256xf32>
    %194 = vector.extract_strided_slice %154 {offsets = [11, 0], sizes = [1, 256], strides = [1, 1]} : vector<16x256xf32> to vector<1x256xf32>
    %195 = arith.maximumf %193, %194 : vector<1x256xf32>
    %196 = vector.extract_strided_slice %195 {offsets = [0, 0], sizes = [1, 240], strides = [1, 1]} : vector<1x256xf32> to vector<1x240xf32>
    %197 = vector.extract_strided_slice %195 {offsets = [0, 16], sizes = [1, 240], strides = [1, 1]} : vector<1x256xf32> to vector<1x240xf32>
    %198 = arith.maximumf %196, %197 : vector<1x240xf32>
    %c6_72 = arith.constant 6 : index
    %c0_73 = arith.constant 0 : index
    %199 = vector.load %arg11[%c6_72, %c0_73] : memref<10x240xf32, #tpu.memory_space<vmem>>, vector<1x240xf32>
    tpu.vector_store %arg11[%c6_72, %c0_73], %198 {strides = array<i32>} : memref<10x240xf32, #tpu.memory_space<vmem>>, vector<1x240xf32>,
    %200 = vector.extract_strided_slice %154 {offsets = [12, 0], sizes = [1, 256], strides = [1, 1]} : vector<16x256xf32> to vector<1x256xf32>
    %201 = vector.extract_strided_slice %154 {offsets = [13, 0], sizes = [1, 256], strides = [1, 1]} : vector<16x256xf32> to vector<1x256xf32>
    %202 = arith.maximumf %200, %201 : vector<1x256xf32>
    %203 = vector.extract_strided_slice %202 {offsets = [0, 0], sizes = [1, 240], strides = [1, 1]} : vector<1x256xf32> to vector<1x240xf32>
    %204 = vector.extract_strided_slice %202 {offsets = [0, 16], sizes = [1, 240], strides = [1, 1]} : vector<1x256xf32> to vector<1x240xf32>
    %205 = arith.maximumf %203, %204 : vector<1x240xf32>
    %c7_74 = arith.constant 7 : index
    %c0_75 = arith.constant 0 : index
    %206 = vector.load %arg11[%c7_74, %c0_75] : memref<10x240xf32, #tpu.memory_space<vmem>>, vector<1x240xf32>
    tpu.vector_store %arg11[%c7_74, %c0_75], %205 {strides = array<i32>} : memref<10x240xf32, #tpu.memory_space<vmem>>, vector<1x240xf32>,
    %207 = vector.extract_strided_slice %154 {offsets = [14, 0], sizes = [1, 256], strides = [1, 1]} : vector<16x256xf32> to vector<1x256xf32>
    %208 = vector.extract_strided_slice %154 {offsets = [15, 0], sizes = [1, 256], strides = [1, 1]} : vector<16x256xf32> to vector<1x256xf32>
    %209 = arith.maximumf %207, %208 : vector<1x256xf32>
    %210 = vector.extract_strided_slice %209 {offsets = [0, 0], sizes = [1, 240], strides = [1, 1]} : vector<1x256xf32> to vector<1x240xf32>
    %211 = vector.extract_strided_slice %209 {offsets = [0, 16], sizes = [1, 240], strides = [1, 1]} : vector<1x256xf32> to vector<1x240xf32>
    %212 = arith.maximumf %210, %211 : vector<1x240xf32>
    %c8_76 = arith.constant 8 : index
    %c0_77 = arith.constant 0 : index
    %213 = vector.load %arg11[%c8_76, %c0_77] : memref<10x240xf32, #tpu.memory_space<vmem>>, vector<1x240xf32>
    tpu.vector_store %arg11[%c8_76, %c0_77], %212 {strides = array<i32>} : memref<10x240xf32, #tpu.memory_space<vmem>>, vector<1x240xf32>,
    %c2_78 = arith.constant 2 : index
    %c0_79 = arith.constant 0 : index
    %214 = vector.load %arg6[%c2_78, %c0_79] : memref<4x256xf32, #tpu.memory_space<vmem>>, vector<1x256xf32>
    %c0_80 = arith.constant 0 : index
    %c0_81 = arith.constant 0 : index
    %215 = vector.load %arg11[%c0_80, %c0_81] : memref<10x240xf32, #tpu.memory_space<vmem>>, vector<8x240xf32>
    %c0_82 = arith.constant 0 : index
    %c0_83 = arith.constant 0 : index
    %c0_84 = arith.constant 0 : index
    %216 = vector.load %arg4[%c0_82, %c0_83, %c0_84] : memref<3x240x256xf32, #tpu.memory_space<vmem>>, vector<1x240x256xf32>
    %217 = vector.shape_cast %216 : vector<1x240x256xf32> to vector<240x256xf32>
    %cst_85 = arith.constant dense<0.000000e+00> : vector<8x256xf32>
    %218 = tpu.matmul %215, %217, %cst_85 {dimension_numbers = #tpu.dot_dimension_numbers<[1], [0], [0], [1], [0, 0, 1, 1], [], []>} : vector<8x240xf32>, vector<240x256xf32>, vector<8x256xf32> -> vector<8x256xf32>
    %c1_86 = arith.constant 1 : index
    %c0_87 = arith.constant 0 : index
    %219 = vector.load %arg11[%c1_86, %c0_87] : memref<10x240xf32, #tpu.memory_space<vmem>>, vector<8x240xf32>
    %c1_88 = arith.constant 1 : index
    %c0_89 = arith.constant 0 : index
    %c0_90 = arith.constant 0 : index
    %220 = vector.load %arg4[%c1_88, %c0_89, %c0_90] : memref<3x240x256xf32, #tpu.memory_space<vmem>>, vector<1x240x256xf32>
    %221 = vector.shape_cast %220 : vector<1x240x256xf32> to vector<240x256xf32>
    %cst_91 = arith.constant dense<0.000000e+00> : vector<8x256xf32>
    %222 = tpu.matmul %219, %221, %cst_91 {dimension_numbers = #tpu.dot_dimension_numbers<[1], [0], [0], [1], [0, 0, 1, 1], [], []>} : vector<8x240xf32>, vector<240x256xf32>, vector<8x256xf32> -> vector<8x256xf32>
    %223 = arith.addf %218, %222 : vector<8x256xf32>
    %c2_92 = arith.constant 2 : index
    %c0_93 = arith.constant 0 : index
    %224 = vector.load %arg11[%c2_92, %c0_93] : memref<10x240xf32, #tpu.memory_space<vmem>>, vector<8x240xf32>
    %c2_94 = arith.constant 2 : index
    %c0_95 = arith.constant 0 : index
    %c0_96 = arith.constant 0 : index
    %225 = vector.load %arg4[%c2_94, %c0_95, %c0_96] : memref<3x240x256xf32, #tpu.memory_space<vmem>>, vector<1x240x256xf32>
    %226 = vector.shape_cast %225 : vector<1x240x256xf32> to vector<240x256xf32>
    %cst_97 = arith.constant dense<0.000000e+00> : vector<8x256xf32>
    %227 = tpu.matmul %224, %226, %cst_97 {dimension_numbers = #tpu.dot_dimension_numbers<[1], [0], [0], [1], [0, 0, 1, 1], [], []>} : vector<8x240xf32>, vector<240x256xf32>, vector<8x256xf32> -> vector<8x256xf32>
    %228 = arith.addf %223, %227 : vector<8x256xf32>
    %229 = vector.broadcast %214 : vector<1x256xf32> to vector<8x256xf32>
    %230 = arith.addf %228, %229 : vector<8x256xf32>
    %cst_98 = arith.constant 0.000000e+00 : f32
    %231 = vector.broadcast %cst_98 : f32 to vector<8x256xf32>
    %232 = arith.maximumf %230, %231 : vector<8x256xf32>
    %cst_99 = arith.constant 0.000000e+00 : f32
    %233 = vector.broadcast %cst_99 : f32 to vector<1x224xf32>
    %c0_100 = arith.constant 0 : index
    %c0_101 = arith.constant 0 : index
    %234 = vector.load %arg12[%c0_100, %c0_101] : memref<6x224xf32, #tpu.memory_space<vmem>>, vector<1x224xf32>
    tpu.vector_store %arg12[%c0_100, %c0_101], %233 {strides = array<i32>} : memref<6x224xf32, #tpu.memory_space<vmem>>, vector<1x224xf32>,
    %c5_102 = arith.constant 5 : index
    %c0_103 = arith.constant 0 : index
    %235 = vector.load %arg12[%c5_102, %c0_103] : memref<6x224xf32, #tpu.memory_space<vmem>>, vector<1x224xf32>
    tpu.vector_store %arg12[%c5_102, %c0_103], %233 {strides = array<i32>} : memref<6x224xf32, #tpu.memory_space<vmem>>, vector<1x224xf32>,
    %236 = vector.extract_strided_slice %232 {offsets = [0, 0], sizes = [1, 256], strides = [1, 1]} : vector<8x256xf32> to vector<1x256xf32>
    %237 = vector.extract_strided_slice %232 {offsets = [1, 0], sizes = [1, 256], strides = [1, 1]} : vector<8x256xf32> to vector<1x256xf32>
    %238 = arith.maximumf %236, %237 : vector<1x256xf32>
    %239 = vector.extract_strided_slice %238 {offsets = [0, 0], sizes = [1, 224], strides = [1, 1]} : vector<1x256xf32> to vector<1x224xf32>
    %240 = vector.extract_strided_slice %238 {offsets = [0, 32], sizes = [1, 224], strides = [1, 1]} : vector<1x256xf32> to vector<1x224xf32>
    %241 = arith.maximumf %239, %240 : vector<1x224xf32>
    %c1_104 = arith.constant 1 : index
    %c0_105 = arith.constant 0 : index
    %242 = vector.load %arg12[%c1_104, %c0_105] : memref<6x224xf32, #tpu.memory_space<vmem>>, vector<1x224xf32>
    tpu.vector_store %arg12[%c1_104, %c0_105], %241 {strides = array<i32>} : memref<6x224xf32, #tpu.memory_space<vmem>>, vector<1x224xf32>,
    %243 = vector.extract_strided_slice %232 {offsets = [2, 0], sizes = [1, 256], strides = [1, 1]} : vector<8x256xf32> to vector<1x256xf32>
    %244 = vector.extract_strided_slice %232 {offsets = [3, 0], sizes = [1, 256], strides = [1, 1]} : vector<8x256xf32> to vector<1x256xf32>
    %245 = arith.maximumf %243, %244 : vector<1x256xf32>
    %246 = vector.extract_strided_slice %245 {offsets = [0, 0], sizes = [1, 224], strides = [1, 1]} : vector<1x256xf32> to vector<1x224xf32>
    %247 = vector.extract_strided_slice %245 {offsets = [0, 32], sizes = [1, 224], strides = [1, 1]} : vector<1x256xf32> to vector<1x224xf32>
    %248 = arith.maximumf %246, %247 : vector<1x224xf32>
    %c2_106 = arith.constant 2 : index
    %c0_107 = arith.constant 0 : index
    %249 = vector.load %arg12[%c2_106, %c0_107] : memref<6x224xf32, #tpu.memory_space<vmem>>, vector<1x224xf32>
    tpu.vector_store %arg12[%c2_106, %c0_107], %248 {strides = array<i32>} : memref<6x224xf32, #tpu.memory_space<vmem>>, vector<1x224xf32>,
    %250 = vector.extract_strided_slice %232 {offsets = [4, 0], sizes = [1, 256], strides = [1, 1]} : vector<8x256xf32> to vector<1x256xf32>
    %251 = vector.extract_strided_slice %232 {offsets = [5, 0], sizes = [1, 256], strides = [1, 1]} : vector<8x256xf32> to vector<1x256xf32>
    %252 = arith.maximumf %250, %251 : vector<1x256xf32>
    %253 = vector.extract_strided_slice %252 {offsets = [0, 0], sizes = [1, 224], strides = [1, 1]} : vector<1x256xf32> to vector<1x224xf32>
    %254 = vector.extract_strided_slice %252 {offsets = [0, 32], sizes = [1, 224], strides = [1, 1]} : vector<1x256xf32> to vector<1x224xf32>
    %255 = arith.maximumf %253, %254 : vector<1x224xf32>
    %c3_108 = arith.constant 3 : index
    %c0_109 = arith.constant 0 : index
    %256 = vector.load %arg12[%c3_108, %c0_109] : memref<6x224xf32, #tpu.memory_space<vmem>>, vector<1x224xf32>
    tpu.vector_store %arg12[%c3_108, %c0_109], %255 {strides = array<i32>} : memref<6x224xf32, #tpu.memory_space<vmem>>, vector<1x224xf32>,
    %257 = vector.extract_strided_slice %232 {offsets = [6, 0], sizes = [1, 256], strides = [1, 1]} : vector<8x256xf32> to vector<1x256xf32>
    %258 = vector.extract_strided_slice %232 {offsets = [7, 0], sizes = [1, 256], strides = [1, 1]} : vector<8x256xf32> to vector<1x256xf32>
    %259 = arith.maximumf %257, %258 : vector<1x256xf32>
    %260 = vector.extract_strided_slice %259 {offsets = [0, 0], sizes = [1, 224], strides = [1, 1]} : vector<1x256xf32> to vector<1x224xf32>
    %261 = vector.extract_strided_slice %259 {offsets = [0, 32], sizes = [1, 224], strides = [1, 1]} : vector<1x256xf32> to vector<1x224xf32>
    %262 = arith.maximumf %260, %261 : vector<1x224xf32>
    %c4_110 = arith.constant 4 : index
    %c0_111 = arith.constant 0 : index
    %263 = vector.load %arg12[%c4_110, %c0_111] : memref<6x224xf32, #tpu.memory_space<vmem>>, vector<1x224xf32>
    tpu.vector_store %arg12[%c4_110, %c0_111], %262 {strides = array<i32>} : memref<6x224xf32, #tpu.memory_space<vmem>>, vector<1x224xf32>,
    %c3_112 = arith.constant 3 : index
    %c0_113 = arith.constant 0 : index
    %264 = vector.load %arg6[%c3_112, %c0_113] : memref<4x256xf32, #tpu.memory_space<vmem>>, vector<1x256xf32>
    %c0_114 = arith.constant 0 : index
    %c0_115 = arith.constant 0 : index
    %265 = vector.load %arg12[%c0_114, %c0_115] : memref<6x224xf32, #tpu.memory_space<vmem>>, vector<4x224xf32>
    %c0_116 = arith.constant 0 : index
    %c0_117 = arith.constant 0 : index
    %c0_118 = arith.constant 0 : index
    %266 = vector.load %arg5[%c0_116, %c0_117, %c0_118] : memref<3x224x256xf32, #tpu.memory_space<vmem>>, vector<1x224x256xf32>
    %267 = vector.shape_cast %266 : vector<1x224x256xf32> to vector<224x256xf32>
    %cst_119 = arith.constant dense<0.000000e+00> : vector<4x256xf32>
    %268 = tpu.matmul %265, %267, %cst_119 {dimension_numbers = #tpu.dot_dimension_numbers<[1], [0], [0], [1], [0, 0, 1, 1], [], []>} : vector<4x224xf32>, vector<224x256xf32>, vector<4x256xf32> -> vector<4x256xf32>
    %c1_120 = arith.constant 1 : index
    %c0_121 = arith.constant 0 : index
    %269 = vector.load %arg12[%c1_120, %c0_121] : memref<6x224xf32, #tpu.memory_space<vmem>>, vector<4x224xf32>
    %c1_122 = arith.constant 1 : index
    %c0_123 = arith.constant 0 : index
    %c0_124 = arith.constant 0 : index
    %270 = vector.load %arg5[%c1_122, %c0_123, %c0_124] : memref<3x224x256xf32, #tpu.memory_space<vmem>>, vector<1x224x256xf32>
    %271 = vector.shape_cast %270 : vector<1x224x256xf32> to vector<224x256xf32>
    %cst_125 = arith.constant dense<0.000000e+00> : vector<4x256xf32>
    %272 = tpu.matmul %269, %271, %cst_125 {dimension_numbers = #tpu.dot_dimension_numbers<[1], [0], [0], [1], [0, 0, 1, 1], [], []>} : vector<4x224xf32>, vector<224x256xf32>, vector<4x256xf32> -> vector<4x256xf32>
    %273 = arith.addf %268, %272 : vector<4x256xf32>
    %c2_126 = arith.constant 2 : index
    %c0_127 = arith.constant 0 : index
    %274 = vector.load %arg12[%c2_126, %c0_127] : memref<6x224xf32, #tpu.memory_space<vmem>>, vector<4x224xf32>
    %c2_128 = arith.constant 2 : index
    %c0_129 = arith.constant 0 : index
    %c0_130 = arith.constant 0 : index
    %275 = vector.load %arg5[%c2_128, %c0_129, %c0_130] : memref<3x224x256xf32, #tpu.memory_space<vmem>>, vector<1x224x256xf32>
    %276 = vector.shape_cast %275 : vector<1x224x256xf32> to vector<224x256xf32>
    %cst_131 = arith.constant dense<0.000000e+00> : vector<4x256xf32>
    %277 = tpu.matmul %274, %276, %cst_131 {dimension_numbers = #tpu.dot_dimension_numbers<[1], [0], [0], [1], [0, 0, 1, 1], [], []>} : vector<4x224xf32>, vector<224x256xf32>, vector<4x256xf32> -> vector<4x256xf32>
    %278 = arith.addf %273, %277 : vector<4x256xf32>
    %279 = vector.broadcast %264 : vector<1x256xf32> to vector<4x256xf32>
    %280 = arith.addf %278, %279 : vector<4x256xf32>
    %cst_132 = arith.constant 0.000000e+00 : f32
    %281 = vector.broadcast %cst_132 : f32 to vector<4x256xf32>
    %282 = arith.maximumf %280, %281 : vector<4x256xf32>
    %c0_133 = arith.constant 0 : index
    %c0_134 = arith.constant 0 : index
    %283 = vector.load %arg8[%c0_133, %c0_134] : memref<1x32xf32, #tpu.memory_space<vmem>>, vector<1x32xf32>
    %284 = vector.extract_strided_slice %282 {offsets = [0, 0], sizes = [1, 256], strides = [1, 1]} : vector<4x256xf32> to vector<1x256xf32>
    %c0_135 = arith.constant 0 : index
    %c0_136 = arith.constant 0 : index
    %c0_137 = arith.constant 0 : index
    %285 = vector.load %arg7[%c0_135, %c0_136, %c0_137] : memref<4x256x32xf32, #tpu.memory_space<vmem>>, vector<1x256x32xf32>
    %286 = vector.shape_cast %285 : vector<1x256x32xf32> to vector<256x32xf32>
    %cst_138 = arith.constant dense<0.000000e+00> : vector<1x32xf32>
    %287 = tpu.matmul %284, %286, %cst_138 {dimension_numbers = #tpu.dot_dimension_numbers<[1], [0], [0], [1], [0, 0, 1, 1], [], []>} : vector<1x256xf32>, vector<256x32xf32>, vector<1x32xf32> -> vector<1x32xf32>
    %288 = arith.addf %283, %287 : vector<1x32xf32>
    %289 = vector.extract_strided_slice %282 {offsets = [1, 0], sizes = [1, 256], strides = [1, 1]} : vector<4x256xf32> to vector<1x256xf32>
    %c1_139 = arith.constant 1 : index
    %c0_140 = arith.constant 0 : index
    %c0_141 = arith.constant 0 : index
    %290 = vector.load %arg7[%c1_139, %c0_140, %c0_141] : memref<4x256x32xf32, #tpu.memory_space<vmem>>, vector<1x256x32xf32>
    %291 = vector.shape_cast %290 : vector<1x256x32xf32> to vector<256x32xf32>
    %cst_142 = arith.constant dense<0.000000e+00> : vector<1x32xf32>
    %292 = tpu.matmul %289, %291, %cst_142 {dimension_numbers = #tpu.dot_dimension_numbers<[1], [0], [0], [1], [0, 0, 1, 1], [], []>} : vector<1x256xf32>, vector<256x32xf32>, vector<1x32xf32> -> vector<1x32xf32>
    %293 = arith.addf %288, %292 : vector<1x32xf32>
    %294 = vector.extract_strided_slice %282 {offsets = [2, 0], sizes = [1, 256], strides = [1, 1]} : vector<4x256xf32> to vector<1x256xf32>
    %c2_143 = arith.constant 2 : index
    %c0_144 = arith.constant 0 : index
    %c0_145 = arith.constant 0 : index
    %295 = vector.load %arg7[%c2_143, %c0_144, %c0_145] : memref<4x256x32xf32, #tpu.memory_space<vmem>>, vector<1x256x32xf32>
    %296 = vector.shape_cast %295 : vector<1x256x32xf32> to vector<256x32xf32>
    %cst_146 = arith.constant dense<0.000000e+00> : vector<1x32xf32>
    %297 = tpu.matmul %294, %296, %cst_146 {dimension_numbers = #tpu.dot_dimension_numbers<[1], [0], [0], [1], [0, 0, 1, 1], [], []>} : vector<1x256xf32>, vector<256x32xf32>, vector<1x32xf32> -> vector<1x32xf32>
    %298 = arith.addf %293, %297 : vector<1x32xf32>
    %299 = vector.extract_strided_slice %282 {offsets = [3, 0], sizes = [1, 256], strides = [1, 1]} : vector<4x256xf32> to vector<1x256xf32>
    %c3_147 = arith.constant 3 : index
    %c0_148 = arith.constant 0 : index
    %c0_149 = arith.constant 0 : index
    %300 = vector.load %arg7[%c3_147, %c0_148, %c0_149] : memref<4x256x32xf32, #tpu.memory_space<vmem>>, vector<1x256x32xf32>
    %301 = vector.shape_cast %300 : vector<1x256x32xf32> to vector<256x32xf32>
    %cst_150 = arith.constant dense<0.000000e+00> : vector<1x32xf32>
    %302 = tpu.matmul %299, %301, %cst_150 {dimension_numbers = #tpu.dot_dimension_numbers<[1], [0], [0], [1], [0, 0, 1, 1], [], []>} : vector<1x256xf32>, vector<256x32xf32>, vector<1x32xf32> -> vector<1x32xf32>
    %303 = arith.addf %298, %302 : vector<1x32xf32>
    %304 = vector.shape_cast %303 : vector<1x32xf32> to vector<1x1x32xf32>
    %c0_151 = arith.constant 0 : index
    %c0_152 = arith.constant 0 : index
    %c0_153 = arith.constant 0 : index
    %305 = vector.load %arg9[%c0_151, %c0_152, %c0_153] : memref<1x1x32xf32, #tpu.memory_space<vmem>>, vector<1x1x32xf32>
    tpu.vector_store %arg9[%c0_151, %c0_152, %c0_153], %304 {strides = array<i32>} : memref<1x1x32xf32, #tpu.memory_space<vmem>>, vector<1x1x32xf32>,
    return
  }
  func.func @transform_0(%arg0: i32) -> (i32, i32, i32) {
    %c0_i32 = arith.constant 0 : i32
    %c0_i32_0 = arith.constant 0 : i32
    %c0_i32_1 = arith.constant 0 : i32
    return %arg0, %c0_i32, %c0_i32_0 : i32, i32, i32
  }
  func.func @transform_1(%arg0: i32) -> (i32, i32, i32) {
    %c0_i32 = arith.constant 0 : i32
    %c0_i32_0 = arith.constant 0 : i32
    %c0_i32_1 = arith.constant 0 : i32
    %c0_i32_2 = arith.constant 0 : i32
    return %c0_i32, %c0_i32_0, %c0_i32_1 : i32, i32, i32
  }
  func.func @transform_2(%arg0: i32) -> (i32, i32, i32) {
    %c0_i32 = arith.constant 0 : i32
    %c0_i32_0 = arith.constant 0 : i32
    %c0_i32_1 = arith.constant 0 : i32
    %c0_i32_2 = arith.constant 0 : i32
    return %c0_i32, %c0_i32_0, %c0_i32_1 : i32, i32, i32
  }
  func.func @transform_3(%arg0: i32) -> (i32, i32, i32) {
    %c0_i32 = arith.constant 0 : i32
    %c0_i32_0 = arith.constant 0 : i32
    %c0_i32_1 = arith.constant 0 : i32
    %c0_i32_2 = arith.constant 0 : i32
    return %c0_i32, %c0_i32_0, %c0_i32_1 : i32, i32, i32
  }
  func.func @transform_4(%arg0: i32) -> (i32, i32, i32) {
    %c0_i32 = arith.constant 0 : i32
    %c0_i32_0 = arith.constant 0 : i32
    %c0_i32_1 = arith.constant 0 : i32
    %c0_i32_2 = arith.constant 0 : i32
    return %c0_i32, %c0_i32_0, %c0_i32_1 : i32, i32, i32
  }
  func.func @transform_5(%arg0: i32) -> (i32, i32) {
    %c0_i32 = arith.constant 0 : i32
    %c0_i32_0 = arith.constant 0 : i32
    %c0_i32_1 = arith.constant 0 : i32
    return %c0_i32, %c0_i32_0 : i32, i32
  }
  func.func @transform_6(%arg0: i32) -> (i32, i32, i32) {
    %c0_i32 = arith.constant 0 : i32
    %c0_i32_0 = arith.constant 0 : i32
    %c0_i32_1 = arith.constant 0 : i32
    %c0_i32_2 = arith.constant 0 : i32
    return %c0_i32, %c0_i32_0, %c0_i32_1 : i32, i32, i32
  }
  func.func @transform_7(%arg0: i32) -> (i32, i32) {
    %c0_i32 = arith.constant 0 : i32
    %c0_i32_0 = arith.constant 0 : i32
    %c0_i32_1 = arith.constant 0 : i32
    return %c0_i32, %c0_i32_0 : i32, i32
  }
  func.func @transform_8(%arg0: i32) -> (i32, i32, i32) {
    %c0_i32 = arith.constant 0 : i32
    %c0_i32_0 = arith.constant 0 : i32
    %c0_i32_1 = arith.constant 0 : i32
    return %arg0, %c0_i32, %c0_i32_0 : i32, i32, i32
  }
}

</mosaic_0001>

<bundles_post_ra>
// kernel: fused_forward.1
= control target key start
LH: loop header
LB: loop body
LE: loop exit
PB: predicated region body
PF: predicated region fallthrough
CT: control target
= control target key end

     0   :  { %13 = vsyncpa [#allocation6], 0  ;;  %s6035_s0 = inlined_call_operand.vmem [shape: f32[2,34,34], index: 0, kind: input, shape index: {}]   ;;  %s6036_s1 = inlined_call_operand.hbm [shape: f32[3,34,256], index: 1, kind: input, shape index: {}]   ;;  %s6037_s2 = inlined_call_operand.hbm [shape: f32[3,248,256], index: 2, kind: input, shape index: {}]   ;;  %s6038_s3 = inlined_call_operand.vmem [shape: f32[3,240,256], index: 3, kind: input, shape index: {}]   ;;  %s6039_s4 = inlined_call_operand.hbm [shape: f32[3,224,256], index: 4, kind: input, shape index: {}]   ;;  %s6040_s5 = inlined_call_operand.vmem [shape: f32[4,256], index: 5, kind: input, shape index: {}]   ;;  %s6041_s6 = inlined_call_operand.vmem [shape: f32[4,256,32], index: 6, kind: input, shape index: {}]   ;;  %s6042_s7 = inlined_call_operand.vmem [shape: f32[1,32], index: 7, kind: input, shape index: {}]   ;;  %s6043_s8 = inlined_call_operand.hbm [shape: f32[2,1,32], index: 8, kind: output, shape index: {}]  }
   0x1   :  { %14 = vsyncpa [#allocation9], 0 }
   0x2   :  { %15 = vsyncpa [#allocation7], 0 }
   0x3   :  { %17 = vsyncpa [#allocation7 + $0x1], 0  ;;  %s4582_s27 = smov 0   ;;  %s4584_s28 = smov 0  }
   0x4   :  { %s4586_s29 = smov 0   ;;  %s4588_s30 = smov 0  }
   0x5 LB: > { %6051 = sst [smem:[#allocation15_spill]] %s4520_s29  ;;  %s4603_s9 = sadd.s32 4294967295, %s4524_s30   ;;  %s4524_s30 = sphi %s4588_s30, %s6074_s30   ;;  %s4520_s29 = sphi %s4586_s29, %s6076_s29   ;;  %s4516_s28 = sphi %s4584_s28, %s6078_s28   ;;  %s4512_s27 = sphi %s4582_s27, %s6077_s27  }
   0x6   : > { %s3177_s10 = sadd.s32 4294967294, %s4524_s30   ;;  %s4607_s11 = sadd.s32 1, %s4524_s30  }
   0x7   : > { %6052 = sst [smem:[#allocation16_spill]] %s4607_s11  ;;  %s203_s12 = sadd.s32 1, %s4520_s29 }
   0x8   : > { %s200_s13 = ssub.s32 %s4524_s30, %s4607_s11  ;;  %p213_p0 = scmp.ne.s32.totalorder %s4520_s29, %s4516_s28 }
   0x9   : > { %p201_p1 = scmp.eq.s32.totalorder %s200_s13, 0  ;;  %p214_p2 = scmp.eq.s32.totalorder %s4603_s9, 1 }
   0xa   : > { %p219_p3 = scmp.ne.s32.totalorder %s4516_s28, %s4512_s27  ;;  %p220_p4 = scmp.eq.s32.totalorder %s3177_s10, 1 }
   0xb   : > { %s4618_s14 = scalar_select %p201_p1, %s4520_s29, %s203_s12  }
   0xc   : > { %p4620_p5 = por %p214_p2, %p213_p0  ;;  %p4624_p6 = por %p220_p4, %p219_p3 }
   0xd   : > { %6053 = sst [smem:[#allocation17_spill]] %s4618_s14  ;;  %p3178_p7 = scmp.ge.s32.totalorder %s4524_s30, 1 }
   0xe   : > { %s6054_s15 = scalar_select %p4620_p5, 1, 0 }
   0xf   : > { %s6055_s16 = scalar_select %p4624_p6, 1, 0 }
  0x10   : > { %p227_p8 = scmp.lt.s32.totalorder %s4524_s30, 3  ;;  %p6044_p9 = scmp.eq.s32.totalorder %s4603_s9, 0 }
  0x11   : > { %6056 = sst [smem:[#allocation18_spill]] %s6055_s16  ;;  %s4526_s18 = smov [#allocation8]  }
  0x12   : > { %p4631_p10 = pnand %p3178_p7, %p227_p8  ;;  %s252_s19 = sshll.u32 %s4526_s18, 4  ;;  %s4637_s19 = int_to_ptr.vmem [resolvable:$true] %s252_s19 }
  0x13   : > { %s4527_s21 = smov [#allocation5]   ;;  %s4528_s23 = smov [#allocation10]  }
  0x14   : > { %s6057_s17 = scalar_select %p4631_p10, 1, 0 }
  0x15   : > { %p4307_p11 = pneg %p4631_p10  ;;  %s239_s22 = sshll.u32 %s4527_s21, 4  ;;  %s4645_s22 = int_to_ptr.vmem [resolvable:$true] %s239_s22 }
  0x16   : > { %s4647_s24 = sshll.u32 %s4528_s23, 4  ;;  %s4370_s10 = scalar_lea.hbm %s6037_s2, 23808  ;;  %s269_s24 = int_to_ptr.vmem [resolvable:$true] %s4647_s24 }
  0x17   : > { %p4641_p12 = pnand %p6044_p9, %p4307_p11  ;;  %p4371_p13 = scmp.ne.s32.totalorder %s6037_s2, %s4370_s10 }
  0x18   : > { %p4377_p3 = scmp.lt.u32.totalorder %s4370_s10, %s6037_s2 }
  0x19   : > { %p4657_p0 = pneg %p4641_p12 }
  0x1b   : > { %p4373_p1 = pnand %p4657_p0, %p4371_p13 }
  0x1d   : > { %p4374_p2 = pneg %p4373_p1 }
  0x1f   : > { %p4379_p4 = pnand %p4377_p3, %p4374_p2 }
  0x21   : > { %4382 = shalt.err (!%p4379_p4)
}
  0x22   : > { %s4383_s25 = scalar_lea.vmem %s4637_s19, 23808  ;;  %p4391_p9 = scmp.lt.s32.totalorder %s4637_s19, %s4637_s19 }
  0x23   : > { %p4384_p7 = scmp.ne.s32.totalorder %s4637_s19, %s4383_s25  ;;  %p4392_p6 = scmp.lt.s32.totalorder %s4383_s25, %s4383_s25 }
  0x25   : > { %p4386_p8 = pnand %p4384_p7, %p4657_p0  ;;  %p4393_p13 = por %p4392_p6, %p4391_p9 }
  0x27   : > { %p4387_p11 = pneg %p4386_p8 }
  0x29   : > { %p4394_p1 = pnand %p4393_p13, %p4387_p11 }
  0x2b   : > { %4397 = shalt.err (!%p4394_p1)
}
  0x2c   : > { %s4529_s26 = smov 256   ;;  %s4530_s10 = smov 16  }
  0x2d   : > { %4313 = dma.hbm_to_vmem [thread:$0]  (!%p4641_p12), %s6037_s2, 23808, %s4637_s19, [#allocation9], %s4529_s26, %s4529_s26, %s4530_s10  }
  0x2e   : > { %s4398_s25 = scalar_lea.hbm %s6036_s1, 3840 }
  0x2f   : > { %p4399_p6 = scmp.ne.s32.totalorder %s6036_s1, %s4398_s25  ;;  %p4405_p3 = scmp.lt.u32.totalorder %s4398_s25, %s6036_s1 }
  0x31   : > { %p4401_p9 = pnand %p4399_p6, %p4657_p0 }
  0x33   : > { %p4402_p2 = pneg %p4401_p9 }
  0x35   : > { %p4407_p4 = pnand %p4405_p3, %p4402_p2 }
  0x37   : > { %4410 = shalt.err (!%p4407_p4)
}
  0x38   : > { %s4411_s19 = scalar_lea.vmem %s4645_s22, 3840  ;;  %p4419_p13 = scmp.lt.s32.totalorder %s4645_s22, %s4645_s22 }
  0x39   : > { %p4412_p7 = scmp.ne.s32.totalorder %s4645_s22, %s4411_s19  ;;  %p4420_p1 = scmp.lt.s32.totalorder %s4411_s19, %s4411_s19 }
  0x3b   : > { %p4414_p8 = pnand %p4412_p7, %p4657_p0  ;;  %p4421_p6 = por %p4420_p1, %p4419_p13 }
  0x3d   : > { %p4415_p11 = pneg %p4414_p8 }
  0x3f   : > { %p4422_p9 = pnand %p4421_p6, %p4415_p11 }
  0x41   : > { %4425 = shalt.err (!%p4422_p9)
}
  0x42   : > { %4310 = dma.hbm_to_vmem [thread:$0]  (!%p4641_p12), %s6036_s1, 3840, %s4645_s22, [#allocation6], %s4529_s26, %s4529_s26, %s4530_s10  }
  0x43   : > { %s4426_s12 = scalar_lea.hbm %s6039_s4, 21504 }
  0x44   : > { %p4427_p2 = scmp.ne.s32.totalorder %s6039_s4, %s4426_s12  ;;  %p4433_p7 = scmp.lt.u32.totalorder %s4426_s12, %s6039_s4 }
  0x46   : > { %p4429_p3 = pnand %p4427_p2, %p4657_p0 }
  0x48   : > { %p4430_p4 = pneg %p4429_p3 }
  0x4a   : > { %p4435_p8 = pnand %p4433_p7, %p4430_p4 }
  0x4c   : > { %4438 = shalt.err (!%p4435_p8)
}
  0x4d   : > { %s4439_s19 = scalar_lea.vmem %s269_s24, 21504  ;;  %p4447_p6 = scmp.lt.s32.totalorder %s269_s24, %s269_s24 }
  0x4e   : > { %p4440_p11 = scmp.ne.s32.totalorder %s269_s24, %s4439_s19  ;;  %p4448_p9 = scmp.lt.s32.totalorder %s4439_s19, %s4439_s19 }
  0x50   : > { %p4442_p13 = pnand %p4440_p11, %p4657_p0  ;;  %p4449_p5 = por %p4448_p9, %p4447_p6 }
  0x52   : > { %p4443_p1 = pneg %p4442_p13 }
  0x54   : > { %p4450_p10 = pnand %p4449_p5, %p4443_p1 }
  0x56   : > { %4453 = shalt.err (!%p4450_p10)
}
  0x57   : > { %4316 = dma.hbm_to_vmem [thread:$0]  (!%p4641_p12), %s6039_s4, 21504, %s269_s24, [#allocation9], %s4529_s26, %s4529_s26, %s4530_s10  }
  0x58   : > { %p6060_p2 = scmp.ne.s32.totalorder %s6057_s17, 0 }
  0x59   : > { %p6061_p0 = scmp.eq.s32.totalorder (!%p6060_p2), %s4603_s9, 0 }
  0x5a   : > { %301 = sbr.rel (%p6060_p2) target bundleno = 2143 (0x85f), region = 52 }
  0x61   : > { %4499 = dma.done.wait (%p6061_p0), [#allocation6], 3840   ;;  %p6062_p3 = pmov %p6061_p0 }
  0x62   : > { %p6063_p5 = pmov %p6061_p0 }
  0x63   : > { %4501 = vsyncadd (%p6062_p3), [#allocation6], 4294963456 }
  0x64   : > { %4503 = dma.done.wait (%p6063_p5), [#allocation9], 45312   ;;  %p6064_p10 = pmov %p6061_p0 }
  0x65   : > { %p342_p4 = scmp.lt.s32.totalorder %s4603_s9, 1  ;;  %v4531_v0 = vmov 0.0   ;;  %v365_v1 = vld [vmem:[#allocation5 + $0x58] sm:$0xff]  ;;  %v367_v2 = vld [vmem:[#allocation5 + $0x68] sm:$0xff]  ;;  %v364_v3 = vld [vmem:[#allocation5 + $0x50] sm:$0xff]  ;;  %vm398_vm0 = vcmask 1041408  }
  0x66   : > { %4505 = vsyncadd (%p6064_p10), [#allocation9], 4294921984  ;;  %469 = vmatprep.mubr.f32.mxu0 %v4531_v0  ;;  %v3580_v4 = vpack.c.bf16 %v367_v2, %v365_v1  ;;  %v366_v5 = vld [vmem:[#allocation5 + $0x60] sm:$0xff]  ;;  %v369_v6 = vld [vmem:[#allocation5 + $0x78] sm:$0xff]  ;;  %vm379_vm1 = vcmask 1046528   ;;  %vm389_vm2 = vcmask 277504  }
  0x67   : > { %s343_s17 = scalar_select %p342_p4, %s4603_s9, 1  ;;  %v371_v7 = vld [vmem:[#allocation5 + $0x88] sm:$0xff]  ;;  %v3582_v8 = vpack.c.bf16 %v366_v5, %v364_v3  ;;  %v368_v10 = vld [vmem:[#allocation5 + $0x70] sm:$0xff]  ;;  %v370_v11 = vld [vmem:[#allocation5 + $0x80] sm:$0xff]  ;;  %vm608_vm3 = vcmask 1045504   ;;  %v730_v3 = vlaneseq  ;;  %vm779_vm6 = vcmask 982016  }
  0x68   : > { %v3584_v9 = vpack.c.bf16 %v371_v7, %v369_v6  ;;  %3581 = vmatprep.subr.bf16.mxu0 %v3580_v4  ;;  %v3586_v14 = vpack.c.bf16 %v370_v11, %v368_v10  ;;  %v373_v15 = vld [vmem:[#allocation5 + $0x98] sm:$0x3]  ;;  %v354_v18 = vld [vmem:[#allocation5 + $0x8] sm:$0xff]  ;;  %v353_v20 = vld [vmem:[#allocation5] sm:$0xff]  ;;  %s4532_s14 = smov 120   ;;  %vm1566_vm7 = vcmask 916480  }
  0x69   : > { %s4292_s20 = smul.u32 40, %s343_s17  ;;  %3583 = vmatpush1.bf16.msra.mxu0 %v3582_v8  ;;  %v356_v19 = vld [vmem:[#allocation5 + $0x18] sm:$0xff]  ;;  %v355_v21 = vld [vmem:[#allocation5 + $0x10] sm:$0xff]  ;;  %v358_v23 = vld [vmem:[#allocation5 + $0x28] sm:$0xff]  ;;  %vm4810_vm4 = vcmp.lt.s32.totalorder %v730_v3, 248  ;;  %vm4821_vm5 = vcmp.lt.s32.totalorder %v730_v3, 240 }
  0x6a   : > { %3585 = vmatprep.subr.bf16.mxu0 %v3584_v9  ;;  %v360_v24 = vld [vmem:[#allocation5 + $0x38] sm:$0xff]  ;;  %v372_v25 = vld [vmem:[#allocation5 + $0x90] sm:$0x3]  ;;  %v3588_v26 = vpack.c.bf16 %v356_v19, %v354_v18  ;;  %v3590_v28 = vpack.c.bf16 %v355_v21, %v353_v20  ;;  %v357_v31 = vld [vmem:[#allocation5 + $0x20] sm:$0xff]  ;;  %vm5556_vm8 = vcmp.lt.s32.totalorder %v730_v3, 224  ;;  %s4535_s29 = smov 96  }
  0x6b   : > { %s4745_s26 = scalar_lea.vmem %s6035_s0, %s4292_s20  ;;  %v3592_v30 = vpack.c.bf16 %v360_v24, %v358_v23  ;;  %v359_v32 = vld [vmem:[#allocation5 + $0x30] sm:$0xff]  ;;  %v362_v38 = vld [vmem:[#allocation5 + $0x48] sm:$0x3]  ;;  %v601_v40 = vld [vmem:[#allocation5 + $0xb8] sm:$0xff]  ;;  %vm2165_vm9 = vcmask 785408   ;;  %s340_s11 = sand.u32 1, %s4516_s28  }
  0x6c   : > { %v4748_v12 = vld [vmem:[%s4745_s26] sm:$0xff]  ;;  %v4751_v13 = vld [vmem:[%s4745_s26 + $0x8] sm:$0xff]  ;;  %v4756_v22 = vld [vmem:[%s4745_s26 + $0x10] sm:$0xff]  ;;  %v3594_v35 = vpack.c.bf16 %v359_v32, %v357_v31  ;;  %760 = vst.msk [vmem:[#allocation2] ss:$8 sm:$0x3] %vm4810_vm4, %v4531_v0 }
  0x6d   : > { %v380_v16 = vrot.slane %v4748_v12, 1  ;;  %v381_v17 = vrot.slane %v4751_v13, 1  ;;  %3587 = vmatpush1.bf16.msra.mxu0 %v3586_v14  ;;  %v383_v29 = vrot.slane %v4756_v22, 1  ;;  %v4762_v33 = vld [vmem:[%s4745_s26 + $0x18] sm:$0xff]  ;;  %v351_v37 = vld [vmem:[%s4745_s26 + $0x20] sm:$0x3] }
  0x6e   : > { %3188 = vmatprep.subr.msk.mxu0 %vm398_vm0, %v373_v15  ;;  %v385_v36 = vrot.slane %v4762_v33, 1  ;;  %v599_v39 = vld [vmem:[#allocation5 + $0xa8] sm:$0xff]  ;;  %v387_v42 = vrot.slane %v351_v37, 1  ;;  %v361_v43 = vld [vmem:[#allocation5 + $0x40] sm:$0x3]  ;;  %v600_v47 = vld [vmem:[#allocation5 + $0xb0] sm:$0xff] }
  0x6f   : > { %v382_v27 = vsel %vm379_vm1, %v380_v16, %v381_v17  ;;  %v384_v34 = vsel %vm379_vm1, %v381_v17, %v383_v29  ;;  %v3596_v44 = vpack.c.bf16 %v601_v40, %v599_v39  ;;  %v598_v46 = vld [vmem:[#allocation5 + $0xa0] sm:$0xff]  ;;  %v603_v48 = vld [vmem:[#allocation5 + $0xc8] sm:$0xff]  ;;  %v605_v49 = vld [vmem:[#allocation5 + $0xd8] sm:$0xff]  ;;  %v609_v57 = vrot.slane %v4748_v12, 2  ;;  %s4534_s26 = smov 112   ;;  %s341_s16 = scalar_lea.vmem [#allocation11], %s340_s11 }
  0x70   : > { %v386_v41 = vsel %vm379_vm1, %v383_v29, %v385_v36  ;;  %v388_v45 = vsel %vm379_vm1, %v385_v36, %v387_v42  ;;  %v3598_v50 = vpack.c.bf16 %v600_v47, %v598_v46  ;;  %v3600_v51 = vpack.c.bf16 %v605_v49, %v603_v48  ;;  %v602_v52 = vld [vmem:[#allocation5 + $0xc0] sm:$0xff]  ;;  %v604_v53 = vld [vmem:[#allocation5 + $0xd0] sm:$0xff]  ;;  %v607_v55 = vld [vmem:[#allocation5 + $0xe8] sm:$0x3]  ;;  %s3091_s12 = sshll.u32 %s341_s16, 4  ;;  %s3079_s25 = scalar_lea.sflag [#allocation7], %s340_s11  ;;  %s5995_s12 = int_to_ptr.vmem [resolvable:$true] %s3091_s12 }
  0x71   : > { %3189 = vmatpush1.msk.msra.mxu0 %vm398_vm0, %v372_v25  ;;  %v3602_v54 = vpack.c.bf16 %v604_v53, %v602_v52  ;;  %v606_v56 = vld [vmem:[#allocation5 + $0xe0] sm:$0x3]  ;;  %v610_v58 = vrot.slane %v4751_v13, 2  ;;  %v612_v60 = vrot.slane %v4756_v22, 2  ;;  %v614_v62 = vrot.slane %v4762_v33, 2  ;;  %v1116_v6 = vld [vmem:[#allocation8 + $0x1f8] sm:$0xff] }
  0x72   : > { %3190 = vmatmul.mubr.msk.f32.vlgmr.msra.gmra.mrb[0].mxu0 %vm389_vm2, %v382_v27  ;;  %3589 = vmatprep.subr.bf16.mxu0 %v3588_v26  ;;  %v616_v1 = vrot.slane %v351_v37, 2  ;;  %763 = vst.msk [vmem:[#allocation2 + $0x21] ss:$8 sm:$0x3] %vm4810_vm4, %v4531_v0  ;;  %v1118_v7 = vld [vmem:[#allocation8 + $0x208] sm:$0xff]  ;;  %v1115_v8 = vld [vmem:[#allocation8 + $0x1f0] sm:$0xff] }
  0x73   : > { %3591 = vmatpush1.bf16.msra.mxu0 %v3590_v28  ;;  %475 = vmatprep.mubr.f32.mxu0 %v4531_v0  ;;  %v611_v59 = vsel %vm608_vm3, %v609_v57, %v610_v58  ;;  %v613_v61 = vsel %vm608_vm3, %v610_v58, %v612_v60  ;;  %v615_v63 = vsel %vm608_vm3, %v612_v60, %v614_v62  ;;  %v1117_v10 = vld [vmem:[#allocation8 + $0x200] sm:$0xff]  ;;  %v1120_v11 = vld [vmem:[#allocation8 + $0x218] sm:$0xff]  ;;  %v1119_v15 = vld [vmem:[#allocation8 + $0x210] sm:$0xff]  ;;  %v4832_v42 = vshrl.u32 %v730_v3, 7  ;;  %s4454_s19 = scalar_lea.vmem %s5995_s12, 16  ;;  %p6071_p7 = scmp.ne.s32.totalorder %s6054_s15, 0 }
  0x74   : > { %3593 = vmatprep.subr.bf16.mxu0 %v3592_v30  ;;  %v617_v2 = vsel %vm608_vm3, %v614_v62, %v616_v1  ;;  %1547 = vst.msk [vmem:[#allocation3] ss:$8 sm:$0x3] %vm4821_vm5, %v4531_v0  ;;  %1550 = vst.msk [vmem:[#allocation3 + $0x11] ss:$8 sm:$0x3] %vm4821_vm5, %v4531_v0  ;;  %v3604_v9 = vpack.c.bf16 %v1118_v7, %v1116_v6  ;;  %p4455_p12 = scmp.ne.s32.totalorder %s5995_s12, %s4454_s19 }
  0x75   : > { %v1121_v16 = vld [vmem:[#allocation8 + $0x220] sm:$0xff]  ;;  %v1124_v17 = vld [vmem:[#allocation8 + $0x238] sm:$0xff]  ;;  %v1126_v18 = vld [vmem:[#allocation8 + $0x248] sm:$0xff]  ;;  %v4841_v47 = vsub.s32 1, %v4832_v42  ;;  %vm3076_vm10 = vcmask 253952  }
  0x76   : > { %3191 = vmatmul.mubr.msk.f32.gmra.mrb[2].mxu0 %vm389_vm2, %v384_v34  ;;  %3605 = vmatprep.subr.bf16.mxu1 %v3604_v9  ;;  %v3610_v19 = vpack.c.bf16 %v1121_v16, %v1119_v15  ;;  %v3612_v20 = vpack.c.bf16 %v1126_v18, %v1124_v17  ;;  %v1123_v21 = vld [vmem:[#allocation8 + $0x230] sm:$0xff]  ;;  %v1128_v23 = vld [vmem:[#allocation8 + $0x258] sm:$0xff]  ;;  %v1130_v24 = vld [vmem:[#allocation8 + $0x268] sm:$0xff]  ;;  %2146 = vst.msk [vmem:[#allocation4] ss:$8 sm:$0x3] %vm5556_vm8, %v4531_v0  ;;  %p4456_p8 = pnand %p4455_p12, %p6071_p7 }
  0x77   : > { %481 = vmatprep.mubr.f32.mxu0 %v4531_v0  ;;  %3595 = vmatpush1.bf16.msra.mxu0 %v3594_v35  ;;  %v3616_v26 = vpack.c.bf16 %v1130_v24, %v1128_v23  ;;  %v1127_v27 = vld [vmem:[#allocation8 + $0x250] sm:$0xff]  ;;  %v1129_v28 = vld [vmem:[#allocation8 + $0x260] sm:$0xff]  ;;  %v1132_v29 = vld [vmem:[#allocation8 + $0x278] sm:$0xff]  ;;  %2149 = vst.msk [vmem:[#allocation4 + $0x5] ss:$8 sm:$0x3] %vm5556_vm8, %v4531_v0 }
  0x78   : > { %3194 = vmatprep.subr.msk.mxu0 %vm398_vm0, %v362_v38  ;;  %v1134_v30 = vld [vmem:[#allocation8 + $0x288] sm:$0xff]  ;;  %v3618_v31 = vpack.c.bf16 %v1129_v28, %v1127_v27  ;;  %v1133_v34 = vld [vmem:[#allocation8 + $0x280] sm:$0xff]  ;;  %v1136_v35 = vld [vmem:[#allocation8 + $0x298] sm:$0xff]  ;;  %p4457_p11 = pneg %p4456_p8 }
  0x79   : > { %v3620_v32 = vpack.c.bf16 %v1134_v30, %v1132_v29  ;;  %v1138_v36 = vld [vmem:[#allocation8 + $0x2a8] sm:$0xff]  ;;  %v1135_v39 = vld [vmem:[#allocation8 + $0x290] sm:$0xff]  ;;  %v1137_v40 = vld [vmem:[#allocation8 + $0x2a0] sm:$0xff] }
  0x7a   : > { %3192 = vmatmul.mubr.msk.f32.gmra.mrb[4].mxu0 %vm389_vm2, %v386_v41  ;;  %v3624_v38 = vpack.c.bf16 %v1138_v36, %v1136_v35  ;;  %v3626_v41 = vpack.c.bf16 %v1137_v40, %v1135_v39  ;;  %v352_v46 = vld [vmem:[%s6040_s5] ss:$4 sm:$0x3]  ;;  %v1144_v53 = vld [vmem:[#allocation8 + $0x2d8] sm:$0xff]  ;;  %v1145_v58 = vld [vmem:[#allocation8 + $0x2e0] sm:$0xff] }
  0x7b   : > { %487 = vmatprep.mubr.f32.mxu0 %v4531_v0  ;;  %3195 = vmatpush1.msk.msra.mxu0 %vm398_vm0, %v361_v43  ;;  %v4835_v43 = vsub.s32 0, %v4832_v42  ;;  %v1139_v49 = vld [vmem:[#allocation8 + $0x2b0] sm:$0xff]  ;;  %v1150_v1 = vld [vmem:[#allocation8 + $0x308] sm:$0xff]  ;;  %v1152_v17 = vld [vmem:[#allocation8 + $0x318] sm:$0xff] }
  0x7c   : > { %3597 = vmatprep.subr.bf16.mxu0 %v3596_v44  ;;  %v1140_v44 = vld [vmem:[#allocation8 + $0x2b8] sm:$0xff]  ;;  %v1143_v57 = vld [vmem:[#allocation8 + $0x2d0] sm:$0xff]  ;;  %v1154_v18 = vld [vmem:[#allocation8 + $0x328] sm:$0xff] }
  0x7d   : > { %v733_v52 = vrot.slane %v352_v46, %v4835_v43  ;;  %v1147_v7 = vld [vmem:[#allocation8 + $0x2f0] sm:$0xff]  ;;  %v1153_v24 = vld [vmem:[#allocation8 + $0x320] sm:$0xff] }
  0x7e   : > { %3193 = vmatmul.mubr.msk.f32.gmra.mrb[6].mxu0 %vm389_vm2, %v388_v45  ;;  %v1142_v45 = vld [vmem:[#allocation8 + $0x2c8] sm:$0xff]  ;;  %v1151_v23 = vld [vmem:[#allocation8 + $0x310] sm:$0xff]  ;;  %v1157_v40 = vld [vmem:[#allocation8 + $0x340] sm:$0xff] }
  0x7f   : > { %572 = vmatprep.mubr.f32.mxu0 %v4531_v0  ;;  %v3628_v48 = vpack.c.bf16 %v1142_v45, %v1140_v44  ;;  %v3642_v27 = vpack.c.bf16 %v1153_v24, %v1151_v23  ;;  %v1155_v39 = vld [vmem:[#allocation8 + $0x330] sm:$0xff]  ;;  %v1173_v23 = vld [vmem:[#allocation8 + $0x3c0] sm:$0xff] }
  0x80   : > { %v3646_v45 = vpack.c.bf16 %v1157_v40, %v1155_v39  ;;  %v2322_v3 = vld [vmem:[#allocation10 + $0x2f0] sm:$0xff] }
  0x82   : > { %3196 = vmatmul.mubr.msk.f32.vlgmr.msra.gmra.mrb[0].mxu0 %vm389_vm2, %v4748_v12  ;;  %v1122_v12 = vld [vmem:[#allocation8 + $0x228] sm:$0xff] }
  0x83   : > { %3599 = vmatpush1.bf16.msra.mxu0 %v3598_v50  ;;  %578 = vmatprep.mubr.f32.mxu0 %v4531_v0  ;;  %v3608_v14 = vpack.c.bf16 %v1122_v12, %v1120_v11  ;;  %v1141_v50 = vld [vmem:[#allocation8 + $0x2c0] sm:$0xff] }
  0x84   : > { %3601 = vmatprep.subr.bf16.mxu0 %v3600_v51  ;;  %v3630_v51 = vpack.c.bf16 %v1141_v50, %v1139_v49 }
  0x86   : > { %3197 = vmatmul.mubr.msk.f32.gmra.mrb[2].mxu0 %vm389_vm2, %v4751_v13  ;;  %v3606_v13 = vpack.c.bf16 %v1117_v10, %v1115_v8  ;;  %v1149_v8 = vld [vmem:[#allocation8 + $0x300] sm:$0xff] }
  0x87   : > { %584 = vmatprep.mubr.f32.mxu0 %v4531_v0  ;;  %3603 = vmatpush1.bf16.msra.mxu0 %v3602_v54  ;;  %v1146_v54 = vld [vmem:[#allocation8 + $0x2e8] sm:$0xff]  ;;  %v3638_v10 = vpack.c.bf16 %v1149_v8, %v1147_v7 }
  0x88   : > { %3200 = vmatprep.subr.msk.mxu0 %vm398_vm0, %v607_v55  ;;  %3607 = vmatpush1.bf16.msra.mxu1 %v3606_v13  ;;  %v4845_v55 = vrot.slane %v352_v46, %v4841_v47 }
  0x89   : > { %3609 = vmatprep.subr.bf16.mxu1 %v3608_v14 }
  0x8a   : > { %3198 = vmatmul.mubr.msk.f32.gmra.mrb[4].mxu0 %vm389_vm2, %v4756_v22  ;;  %v1125_v22 = vld [vmem:[#allocation8 + $0x240] sm:$0xff] }
  0x8b   : > { %590 = vmatprep.mubr.f32.mxu0 %v4531_v0  ;;  %3201 = vmatpush1.msk.msra.mxu0 %vm398_vm0, %v606_v56  ;;  %v3614_v25 = vpack.c.bf16 %v1125_v22, %v1123_v21  ;;  %v3632_v56 = vpack.c.bf16 %v1146_v54, %v1144_v53  ;;  %v3640_v22 = vpack.c.bf16 %v1154_v18, %v1152_v17  ;;  %v1160_v53 = vld [vmem:[#allocation8 + $0x358] sm:$0xff]  ;;  %v1162_v54 = vld [vmem:[#allocation8 + $0x368] sm:$0xff]  ;;  %v1169_v17 = vld [vmem:[#allocation8 + $0x3a0] sm:$0xff] }
  0x8c   : > { %3611 = vmatpush1.bf16.msra.mxu1 %v3610_v19  ;;  %v1172_v18 = vld [vmem:[#allocation8 + $0x3b8] sm:$0xff] }
  0x8d   : > { %3613 = vmatprep.subr.bf16.mxu1 %v3612_v20 }
  0x8e   : > { %3199 = vmatmul.mubr.msk.f32.gmra.mrb[6].mxu0 %vm389_vm2, %v4762_v33  ;;  %v1131_v33 = vld [vmem:[#allocation8 + $0x270] sm:$0xff] }
  0x8f   : > { %696 = vmatprep.mubr.f32.mxu0 %v4531_v0  ;;  %v3622_v37 = vpack.c.bf16 %v1133_v34, %v1131_v33  ;;  %v1156_v33 = vld [vmem:[#allocation8 + $0x338] sm:$0xff]  ;;  %v1158_v34 = vld [vmem:[#allocation8 + $0x348] sm:$0xff] }
  0x90   : > { %3615 = vmatpush1.bf16.msra.mxu1 %v3614_v25 }
  0x91   : > { %3617 = vmatprep.subr.bf16.mxu1 %v3616_v26 }
  0x92   : > { %3202 = vmatmul.mubr.msk.f32.vlgmr.msra.gmra.mrb[0].mxu0 %vm389_vm2, %v611_v59  ;;  %v3634_v59 = vpack.c.bf16 %v1145_v58, %v1143_v57 }
  0x93   : > { %702 = vmatprep.mubr.f32.mxu0 %v4531_v0 }
  0x94   : > { %3619 = vmatpush1.bf16.msra.mxu1 %v3618_v31 }
  0x95   : > { %3621 = vmatprep.subr.bf16.mxu1 %v3620_v32 }
  0x96   : > { %3203 = vmatmul.mubr.msk.f32.gmra.mrb[2].mxu0 %vm389_vm2, %v613_v61 }
  0x97   : > { %708 = vmatprep.mubr.f32.mxu0 %v4531_v0 }
  0x98   : > { %3623 = vmatpush1.bf16.msra.mxu1 %v3622_v37 }
  0x99   : > { %3625 = vmatprep.subr.bf16.mxu1 %v3624_v38  ;;  %v3644_v38 = vpack.c.bf16 %v1158_v34, %v1156_v33 }
  0x9a   : > { %3204 = vmatmul.mubr.msk.f32.gmra.mrb[4].mxu0 %vm389_vm2, %v615_v63  ;;  %v1148_v63 = vld [vmem:[#allocation8 + $0x2f8] sm:$0xff] }
  0x9b   : > { %714 = vmatprep.mubr.f32.mxu0 %v4531_v0  ;;  %v3636_v6 = vpack.c.bf16 %v1150_v1, %v1148_v63  ;;  %v1166_v1 = vld [vmem:[#allocation8 + $0x388] sm:$0xff]  ;;  %v2324_v0 = vld [vmem:[#allocation10 + $0x300] sm:$0xff] }
  0x9c   : > { %3627 = vmatpush1.bf16.msra.mxu1 %v3626_v41 }
  0x9d   : > { %3629 = vmatprep.subr.bf16.mxu1 %v3628_v48 }
  0x9e   : > { %3205 = vmatmul.mubr.msk.f32.gmra.mrb[6].mxu0 %vm389_vm2, %v617_v2 }
  0xa0   : > { %3631 = vmatpush1.bf16.msra.mxu1 %v3630_v51 }
  0xa1   : > { %3633 = vmatprep.subr.bf16.mxu1 %v3632_v56 }
  0xa4   : > { %3635 = vmatpush1.bf16.msra.mxu1 %v3634_v59  ;;  %v1159_v59 = vld [vmem:[#allocation8 + $0x350] sm:$0xff] }
  0xa5   : > { %3637 = vmatprep.subr.bf16.mxu1 %v3636_v6 }
  0xa8   : > { %3639 = vmatpush1.bf16.msra.mxu1 %v3638_v10  ;;  %v1165_v10 = vld [vmem:[#allocation8 + $0x380] sm:$0xff] }
  0xa9   : > { %3641 = vmatprep.subr.bf16.mxu1 %v3640_v22  ;;  %v1171_v22 = vld [vmem:[#allocation8 + $0x3b0] sm:$0xff] }
  0xac   : > { %3643 = vmatpush1.bf16.msra.mxu1 %v3642_v27  ;;  %v1175_v27 = vld [vmem:[#allocation8 + $0x3d0] sm:$0xff] }
  0xad   : > { %3645 = vmatprep.subr.bf16.mxu1 %v3644_v38 }
  0xb0   : > { %3647 = vmatpush1.bf16.msra.mxu1 %v3646_v45 }
 0x165   : > { %v698_v60 = vpop.f32.mrb[0].mxu0 }
 0x166   : > { %v740_v61 = vadd.f32 %v733_v52, %v698_v60  ;;  %v700_v62 = vpop.f32.mrb[1].mxu0  ;;  %v1161_v60 = vld [vmem:[#allocation8 + $0x360] sm:$0xff] }
 0x167   : > { %v741_v2 = vadd.f32 %v4845_v55, %v700_v62  ;;  %v3650_v62 = vpack.c.bf16 %v1161_v60, %v1159_v59 }
 0x168   : > { %v748_v9 = vmax.f32 %v740_v61, 0.0 }
 0x169   : > { %v749_v11 = vmax.f32 %v741_v2, 0.0  ;;  %v704_v12 = vpop.f32.mrb[2].mxu0 }
 0x16a   : > { %v767_v13 = vrot.slane %v748_v9, 1  ;;  %v742_v14 = vadd.f32 %v733_v52, %v704_v12  ;;  %v706_v15 = vpop.f32.mrb[3].mxu0  ;;  %v1168_v12 = vld [vmem:[#allocation8 + $0x398] sm:$0xff] }
 0x16b   : > { %v743_v16 = vadd.f32 %v4845_v55, %v706_v15  ;;  %v768_v19 = vrot.slane %v749_v11, 1 }
 0x16c   : > { %v750_v20 = vmax.f32 %v742_v14, 0.0  ;;  %v4849_v21 = vmax.f32 %v748_v9, %v767_v13  ;;  %v1163_v9 = vld [vmem:[#allocation8 + $0x370] sm:$0xff]  ;;  %v1170_v13 = vld [vmem:[#allocation8 + $0x3a8] sm:$0xff] }
 0x16d   : > { %v751_v25 = vmax.f32 %v743_v16, 0.0  ;;  %v710_v26 = vpop.f32.mrb[4].mxu0  ;;  %v4854_v35 = vmax.f32 %v749_v11, %v768_v19  ;;  %v3654_v11 = vpack.c.bf16 %v1165_v10, %v1163_v9  ;;  %v3656_v15 = vpack.c.bf16 %v1170_v13, %v1168_v12  ;;  %v1167_v16 = vld [vmem:[#allocation8 + $0x390] sm:$0xff] }
 0x16e   : > { %v837_v28 = vrot.slane %v750_v20, 1  ;;  %v744_v29 = vadd.f32 %v733_v52, %v710_v26  ;;  %775 = vrot.lane.b32.xlu0 %v4849_v21, %s4532_s14  ;;  %v712_v30 = vpop.f32.mrb[5].mxu0  ;;  %v3658_v19 = vpack.c.bf16 %v1169_v17, %v1167_v16  ;;  %v1176_v26 = vld [vmem:[#allocation8 + $0x3d8] sm:$0xff] }
 0x16f   : > { %v838_v31 = vrot.slane %v751_v25, 1  ;;  %v745_v32 = vadd.f32 %v4845_v55, %v712_v30 }
 0x170   : > { %v752_v36 = vmax.f32 %v744_v29, 0.0  ;;  %v4856_v37 = vmax.f32 %v750_v20, %v837_v28  ;;  %v1174_v20 = vld [vmem:[#allocation8 + $0x3c8] sm:$0xff]  ;;  %v1051_v29 = vld [vmem:[#allocation8 + $0x18] sm:$0xff] }
 0x171   : > { %v753_v41 = vmax.f32 %v745_v32, 0.0  ;;  %v716_v44 = vpop.f32.mrb[6].mxu0  ;;  %v4862_v50 = vmax.f32 %v751_v25, %v838_v31  ;;  %v3660_v24 = vpack.c.bf16 %v1174_v20, %v1172_v18  ;;  %v3662_v25 = vpack.c.bf16 %v1173_v23, %v1171_v22  ;;  %v1049_v28 = vld [vmem:[#allocation8 + $0x8] sm:$0xff] }
 0x172   : > { %v906_v46 = vrot.slane %v752_v36, 1  ;;  %v746_v48 = vadd.f32 %v733_v52, %v716_v44  ;;  %777 = vrot.lane.b32.xlu0 %v4854_v35, %s4532_s14  ;;  %845 = vrot.lane.b32.xlu1 %v4856_v37, %s4532_s14  ;;  %v718_v49 = vpop.f32.mrb[7].mxu0  ;;  %v3648_v52 = vpack.c.bf16 %v1162_v54, %v1160_v53  ;;  %v3664_v30 = vpack.c.bf16 %v1051_v29, %v1049_v28 }
 0x173   : > { %v747_v51 = vadd.f32 %v4845_v55, %v718_v49  ;;  %v907_v57 = vrot.slane %v753_v41, 1  ;;  %v1164_v55 = vld [vmem:[#allocation8 + $0x378] sm:$0xff]  ;;  %v4533_v31 = vmov 1966171168  }
 0x174   : > { %v4865_v56 = vmax.f32 %v752_v36, %v906_v46  ;;  %v754_v58 = vmax.f32 %v746_v48, 0.0  ;;  %3649 = vmatprep.subr.bf16.mxu1 %v3648_v52  ;;  %v3652_v8 = vpack.c.bf16 %v1166_v1, %v1164_v55  ;;  %v789_v32 = vunpack.c.l.s4 %v4533_v31  ;;  %v1048_v31 = vld [vmem:[#allocation8] sm:$0xff] }
 0x175   : > { %v755_v61 = vmax.f32 %v747_v51, 0.0  ;;  %v4871_v2 = vmax.f32 %v753_v41, %v907_v57  ;;  %3651 = vmatpush1.bf16.msra.mxu1 %v3650_v62 }
 0x176   : > { %v975_v63 = vrot.slane %v754_v58, 1  ;;  %847 = vrot.lane.b32.xlu1 %v4862_v50, %s4532_s14  ;;  %914 = vrot.lane.b32.xlu0 %v4865_v56, %s4532_s14  ;;  %v790_v34 = vunpack.c.0.s8 %v789_v32  ;;  %v1050_v32 = vld [vmem:[#allocation8 + $0x10] sm:$0xff] }
 0x177   : > { %v976_v7 = vrot.slane %v755_v61, 1  ;;  %3653 = vmatprep.subr.bf16.mxu1 %v3652_v8 }
 0x178   : > { %v4873_v6 = vmax.f32 %v754_v58, %v975_v63  ;;  %v4886_v41 = vsub.s32 %v790_v34, %v4832_v42  ;;  %v1055_v34 = vld [vmem:[#allocation8 + $0x38] sm:$0xff] }
 0x179   : > { %v4879_v14 = vmax.f32 %v755_v61, %v976_v7  ;;  %3655 = vmatpush1.bf16.msra.mxu1 %v3654_v11 }
 0x17a   : > { %916 = vrot.lane.b32.xlu1 %v4871_v2, %s4532_s14  ;;  %983 = vrot.lane.b32.xlu0 %v4873_v6, %s4532_s14 }
 0x17b   : > { %3657 = vmatprep.subr.bf16.mxu1 %v3656_v15 }
 0x17d   : > { %3659 = vmatpush1.bf16.msra.mxu1 %v3658_v19 }
 0x17e   : > { %985 = vrot.lane.b32.xlu1 %v4879_v14, %s4532_s14  ;;  %3661 = vmatprep.subr.bf16.mxu1 %v3660_v24  ;;  %s3437_s14 = sshll.u32 %s4603_s9, 4  ;;  %s4536_s9 = smov [#allocation11]  }
 0x17f   : > { %s5993_s23 = scalar_lea.hbm %s6043_s8, %s3437_s14 }
 0x181   : > { %3663 = vmatpush1.bf16.msra.mxu1 %v3662_v25 }
 0x182   : > { %1259 = vmatprep.subr.mxu1 %v1176_v26 }
 0x185   : > { %1260 = vmatpush1.msra.mxu1 %v1175_v27 }
 0x186   : > { %3665 = vmatprep.subr.bf16.mxu1 %v3664_v30 }
 0x1e0   : > { %v776_v33 = vpop.permute.xlu0 %775 }
 0x1e4   : > { %v778_v36 = vpop.permute.xlu0 %777  ;;  %v846_v38 = vpop.permute.xlu1 %845 }
 0x1e5   : > { %v780_v39 = vsel %vm779_vm6, %v776_v33, %v778_v36  ;;  %v784_v40 = vmax.f32 %v4854_v35, %v778_v36  ;;  %v1053_v33 = vld [vmem:[#allocation8 + $0x28] sm:$0xff] }
 0x1e6   : > { %v783_v44 = vmax.f32 %v4849_v21, %v780_v39 }
 0x1e8   : > { %v787_v45 = vcombine.low %v783_v44, %v784_v40  ;;  %v811_v46 = vcombine.high %v783_v44, %v784_v40  ;;  %v848_v48 = vpop.permute.xlu1 %847  ;;  %v915_v58 = vpop.permute.xlu0 %914 }
 0x1e9   : > { %v849_v49 = vsel %vm779_vm6, %v846_v38, %v848_v48  ;;  %v853_v51 = vmax.f32 %v4862_v50, %v848_v48 }
 0x1ea   : > { %v794_v53 = vrot.slane %v787_v45, %v4886_v41  ;;  %v818_v54 = vrot.slane %v811_v46, %v4886_v41  ;;  %v852_v57 = vmax.f32 %v4856_v37, %v849_v49  ;;  %v3666_v49 = vpack.c.bf16 %v1050_v32, %v1048_v31  ;;  %v1078_v31 = vld [vmem:[#allocation8 + $0xf0] sm:$0xff]  ;;  %v1081_v32 = vld [vmem:[#allocation8 + $0x108] sm:$0xff] }
 0x1ec   : > { %v801_v35 = vrot.slane %v794_v53, %v4886_v41  ;;  %v825_v42 = vrot.slane %v818_v54, %v4886_v41  ;;  %v856_v52 = vcombine.low %v852_v57, %v853_v51  ;;  %v880_v21 = vcombine.high %v852_v57, %v853_v51  ;;  %v917_v59 = vpop.permute.xlu1 %916  ;;  %v984_v7 = vpop.permute.xlu0 %983  ;;  %v1052_v57 = vld [vmem:[#allocation8 + $0x20] sm:$0xff] }
 0x1ed   : > { %v918_v60 = vsel %vm779_vm6, %v915_v58, %v917_v59  ;;  %v922_v61 = vmax.f32 %v4871_v2, %v917_v59  ;;  %v3668_v54 = vpack.c.bf16 %v1055_v34, %v1053_v33  ;;  %v1054_v58 = vld [vmem:[#allocation8 + $0x30] sm:$0xff]  ;;  %v1083_v33 = vld [vmem:[#allocation8 + $0x118] sm:$0xff] }
 0x1ee   : > { %804 = vst.msk [vmem:[#allocation2 + $0x1] ss:$8 sm:$0x3] %vm4810_vm4, %v801_v35  ;;  %v806_v50 = vcombine.high %v801_v35, %v801_v35  ;;  %828 = vst.msk [vmem:[#allocation2 + $0x3] ss:$8 sm:$0x3] %vm4810_vm4, %v825_v42  ;;  %v830_v37 = vcombine.high %v825_v42, %v825_v42  ;;  %v863_v62 = vrot.slane %v856_v52, %v4886_v41 }
 0x1ef   : > { %v887_v63 = vrot.slane %v880_v21, %v4886_v41  ;;  %v921_v55 = vmax.f32 %v4865_v56, %v918_v60  ;;  %v1057_v42 = vld [vmem:[#allocation8 + $0x48] sm:$0xff]  ;;  %v1059_v52 = vld [vmem:[#allocation8 + $0x58] sm:$0xff]  ;;  %v3670_v59 = vpack.c.bf16 %v1054_v58, %v1052_v57 }
 0x1f0   : > { %809 = vst.msk [vmem:[#allocation2 + $0x2] ss:$8 sm:$0x3] %vm4810_vm4, %v806_v50  ;;  %833 = vst.msk [vmem:[#allocation2 + $0x4] ss:$8 sm:$0x3] %vm4810_vm4, %v830_v37  ;;  %v870_v1 = vrot.slane %v863_v62, %v4886_v41  ;;  %v986_v8 = vpop.permute.xlu1 %985  ;;  %v3672_v60 = vpack.c.bf16 %v1059_v52, %v1057_v42 }
 0x1f1   : > { %v894_v2 = vrot.slane %v887_v63, %v4886_v41  ;;  %v925_v9 = vcombine.low %v921_v55, %v922_v61  ;;  %v949_v10 = vcombine.high %v921_v55, %v922_v61  ;;  %v987_v11 = vsel %vm779_vm6, %v984_v7, %v986_v8  ;;  %v1056_v61 = vld [vmem:[#allocation8 + $0x40] sm:$0xff]  ;;  %v1058_v50 = vld [vmem:[#allocation8 + $0x50] sm:$0xff]  ;;  %v1061_v62 = vld [vmem:[#allocation8 + $0x68] sm:$0xff] }
 0x1f2   : > { %v991_v12 = vmax.f32 %v4879_v14, %v986_v8  ;;  %873 = vst.msk [vmem:[#allocation2 + $0x5] ss:$8 sm:$0x3] %vm4810_vm4, %v870_v1  ;;  %v875_v56 = vcombine.high %v870_v1, %v870_v1  ;;  %v990_v15 = vmax.f32 %v4873_v6, %v987_v11  ;;  %v1063_v63 = vld [vmem:[#allocation8 + $0x78] sm:$0xff]  ;;  %v3674_v1 = vpack.c.bf16 %v1058_v50, %v1056_v61  ;;  %v1060_v7 = vld [vmem:[#allocation8 + $0x60] sm:$0xff]  ;;  %v1062_v8 = vld [vmem:[#allocation8 + $0x70] sm:$0xff] }
 0x1f3   : > { %897 = vst.msk [vmem:[#allocation2 + $0x7] ss:$8 sm:$0x3] %vm4810_vm4, %v894_v2  ;;  %v899_v13 = vcombine.high %v894_v2, %v894_v2  ;;  %v932_v16 = vrot.slane %v925_v9, %v4886_v41  ;;  %v956_v17 = vrot.slane %v949_v10, %v4886_v41  ;;  %v3676_v2 = vpack.c.bf16 %v1063_v63, %v1061_v62  ;;  %v1065_v9 = vld [vmem:[#allocation8 + $0x88] sm:$0xff]  ;;  %v1067_v10 = vld [vmem:[#allocation8 + $0x98] sm:$0xff]  ;;  %v1090_v42 = vld [vmem:[#allocation8 + $0x150] sm:$0xff] }
 0x1f4   : > { %878 = vst.msk [vmem:[#allocation2 + $0x6] ss:$8 sm:$0x3] %vm4810_vm4, %v875_v56  ;;  %v994_v14 = vcombine.low %v990_v15, %v991_v12  ;;  %v1018_v18 = vcombine.high %v990_v15, %v991_v12  ;;  %v3678_v11 = vpack.c.bf16 %v1062_v8, %v1060_v7  ;;  %v3680_v12 = vpack.c.bf16 %v1067_v10, %v1065_v9  ;;  %v1064_v56 = vld [vmem:[#allocation8 + $0x80] sm:$0xff]  ;;  %v1069_v15 = vld [vmem:[#allocation8 + $0xa8] sm:$0xff]  ;;  %v1094_v50 = vld [vmem:[#allocation8 + $0x170] sm:$0xff] }
 0x1f5   : > { %902 = vst.msk [vmem:[#allocation2 + $0x10] ss:$8 sm:$0x3] %vm4810_vm4, %v899_v13  ;;  %v939_v19 = vrot.slane %v932_v16, %v4886_v41  ;;  %v963_v20 = vrot.slane %v956_v17, %v4886_v41  ;;  %v1066_v13 = vld [vmem:[#allocation8 + $0x90] sm:$0xff]  ;;  %v1071_v16 = vld [vmem:[#allocation8 + $0xb8] sm:$0xff]  ;;  %v1093_v52 = vld [vmem:[#allocation8 + $0x168] sm:$0xff] }
 0x1f6   : > { %v1001_v22 = vrot.slane %v994_v14, %v4886_v41  ;;  %v1025_v6 = vrot.slane %v1018_v18, %v4886_v41  ;;  %v3682_v17 = vpack.c.bf16 %v1066_v13, %v1064_v56  ;;  %v3684_v14 = vpack.c.bf16 %v1071_v16, %v1069_v15  ;;  %v1068_v18 = vld [vmem:[#allocation8 + $0xa0] sm:$0xff]  ;;  %v1099_v62 = vld [vmem:[#allocation8 + $0x198] sm:$0xff]  ;;  %v1101_v7 = vld [vmem:[#allocation8 + $0x1a8] sm:$0xff] }
 0x1f7   : > { %942 = vst.msk [vmem:[#allocation2 + $0x11] ss:$8 sm:$0x3] %vm4810_vm4, %v939_v19  ;;  %v944_v23 = vcombine.high %v939_v19, %v939_v19  ;;  %966 = vst.msk [vmem:[#allocation2 + $0x13] ss:$8 sm:$0x3] %vm4810_vm4, %v963_v20  ;;  %v968_v24 = vcombine.high %v963_v20, %v963_v20 }
 0x1f8   : > { %v1008_v25 = vrot.slane %v1001_v22, %v4886_v41  ;;  %v1032_v26 = vrot.slane %v1025_v6, %v4886_v41  ;;  %v1070_v19 = vld [vmem:[#allocation8 + $0xb0] sm:$0xff]  ;;  %v1073_v20 = vld [vmem:[#allocation8 + $0xc8] sm:$0xff]  ;;  %v1075_v22 = vld [vmem:[#allocation8 + $0xd8] sm:$0xff] }
 0x1f9   : > { %947 = vst.msk [vmem:[#allocation2 + $0x12] ss:$8 sm:$0x3] %vm4810_vm4, %v944_v23  ;;  %971 = vst.msk [vmem:[#allocation2 + $0x14] ss:$8 sm:$0x3] %vm4810_vm4, %v968_v24  ;;  %v3686_v6 = vpack.c.bf16 %v1070_v19, %v1068_v18  ;;  %v3688_v23 = vpack.c.bf16 %v1075_v22, %v1073_v20 }
 0x1fa   : > { %1011 = vst.msk [vmem:[#allocation2 + $0x15] ss:$8 sm:$0x3] %vm4810_vm4, %v1008_v25  ;;  %v1013_v27 = vcombine.high %v1008_v25, %v1008_v25  ;;  %1035 = vst.msk [vmem:[#allocation2 + $0x17] ss:$8 sm:$0x3] %vm4810_vm4, %v1032_v26  ;;  %v1037_v28 = vcombine.high %v1032_v26, %v1032_v26 }
 0x1fb   : > { %v1111_v29 = vld [vmem:[#allocation2 + $0x8] sm:$0xfe]  ;;  %v1110_v30 = vld [vmem:[#allocation2] sm:$0xfe]  ;;  %v1072_v24 = vld [vmem:[#allocation8 + $0xc0] sm:$0xff] }
 0x1fc   : > { %1016 = vst.msk [vmem:[#allocation2 + $0x16] ss:$8 sm:$0x3] %vm4810_vm4, %v1013_v27  ;;  %1040 = vst.msk [vmem:[#allocation2 + $0x20] ss:$8 sm:$0x3] %vm4810_vm4, %v1037_v28 }
 0x1fd   : > { %v1186_v38 = vrot.slane %v1111_v29, 1  ;;  %v1183_v45 = vrot.slane %v1110_v30, 1  ;;  %v1045_v55 = vld [vmem:[#allocation2 + $0x8] sm:$0xff]  ;;  %v1074_v25 = vld [vmem:[#allocation8 + $0xd0] sm:$0xff]  ;;  %v1077_v26 = vld [vmem:[#allocation8 + $0xe8] sm:$0xff] }
 0x1fe   : > { %v1079_v27 = vld [vmem:[#allocation8 + $0xf8] sm:$0xff]  ;;  %v3690_v28 = vpack.c.bf16 %v1074_v25, %v1072_v24  ;;  %v1076_v30 = vld [vmem:[#allocation8 + $0xe0] sm:$0xff]  ;;  %v1105_v56 = vld [vmem:[#allocation8 + $0x1c8] sm:$0xff] }
 0x1ff   : > { %v3692_v29 = vpack.c.bf16 %v1079_v27, %v1077_v26  ;;  %v3694_v34 = vpack.c.bf16 %v1078_v31, %v1076_v30  ;;  %v1092_v61 = vld [vmem:[#allocation8 + $0x160] sm:$0xff]  ;;  %v1103_v8 = vld [vmem:[#allocation8 + $0x1b8] sm:$0xff]  ;;  %v1109_v19 = vld [vmem:[#allocation8 + $0x1e8] sm:$0xff] }
 0x200   : > { %v3710_v63 = vpack.c.bf16 %v1094_v50, %v1092_v61  ;;  %v3716_v10 = vpack.c.bf16 %v1103_v8, %v1101_v7  ;;  %v1107_v13 = vld [vmem:[#allocation8 + $0x1d8] sm:$0xff]  ;;  %v1364_v20 = vld [vmem:[#allocation8 + $0x3e8] sm:$0xff]  ;;  %v1108_v26 = vld [vmem:[#allocation8 + $0x1e0] sm:$0xff] }
 0x201   : > { %v3720_v16 = vpack.c.bf16 %v1107_v13, %v1105_v56  ;;  %v1366_v22 = vld [vmem:[#allocation8 + $0x3f8] sm:$0xff]  ;;  %v1368_v24 = vld [vmem:[#allocation8 + $0x408] sm:$0xff]  ;;  %v1367_v30 = vld [vmem:[#allocation8 + $0x400] sm:$0xff] }
 0x202   : > { %v1370_v25 = vld [vmem:[#allocation8 + $0x418] sm:$0xff]  ;;  %v3724_v27 = vpack.c.bf16 %v1366_v22, %v1364_v20  ;;  %v1369_v31 = vld [vmem:[#allocation8 + $0x410] sm:$0xff]  ;;  %v1384_v50 = vld [vmem:[#allocation8 + $0x488] sm:$0xff] }
 0x203   : > { %v4946_v36 = vld [vmem:[#allocation2 + $0x18] sm:$0xff]  ;;  %v4948_v39 = vld [vmem:[#allocation2 + $0x10] sm:$0xff]  ;;  %v1113_v40 = vld [vmem:[#allocation2 + $0x28] sm:$0x1] }
 0x204   : > { %v1187_v44 = vrot.slane %v4946_v36, 1  ;;  %v1184_v46 = vrot.slane %v4948_v39, 1  ;;  %v1191_v48 = vrot.slane %v1113_v40, 1  ;;  %v1112_v4 = vld [vmem:[#allocation2 + $0x20] sm:$0x1]  ;;  %v1080_v40 = vld [vmem:[#allocation8 + $0x100] sm:$0xff] }
 0x205   : > { %v1189_v35 = vrot.slane %v1112_v4, 1  ;;  %v1381_v61 = vld [vmem:[#allocation8 + $0x470] sm:$0xff]  ;;  %v1390_v7 = vld [vmem:[#allocation8 + $0x4b8] sm:$0xff]  ;;  %v1395_v22 = vld [vmem:[#allocation8 + $0x4e0] sm:$0xff] }
 0x206   : > { %v1188_v51 = vsel %vm379_vm1, %v1186_v38, %v1187_v44  ;;  %v1185_v53 = vsel %vm379_vm1, %v1183_v45, %v1184_v46  ;;  %v1192_v21 = vsel %vm379_vm1, %v1187_v44, %v1191_v48  ;;  %v3696_v38 = vpack.c.bf16 %v1083_v33, %v1081_v32  ;;  %v1082_v44 = vld [vmem:[#allocation8 + $0x110] sm:$0xff]  ;;  %v1085_v45 = vld [vmem:[#allocation8 + $0x128] sm:$0xff]  ;;  %v1394_v56 = vld [vmem:[#allocation8 + $0x4d8] sm:$0xff] }
 0x207   : > { %3207 = vmatprep.mubr.msk.f32.mxu1 %vm779_vm6, %v1188_v51  ;;  %v1190_v37 = vsel %vm379_vm1, %v1184_v46, %v1189_v35  ;;  %v1087_v46 = vld [vmem:[#allocation8 + $0x138] sm:$0xff]  ;;  %v3698_v48 = vpack.c.bf16 %v1082_v44, %v1080_v40  ;;  %v1086_v51 = vld [vmem:[#allocation8 + $0x130] sm:$0xff]  ;;  %v1088_v35 = vld [vmem:[#allocation8 + $0x140] sm:$0xff]  ;;  %v1433_v40 = vrot.slane %v4946_v36, 2  ;;  %v3730_v44 = vpack.c.bf16 %v1369_v31, %v1367_v30 }
 0x208   : > { %1264 = vmatmul.mubr.f32.vlgmr.msra.gmra.mrb[0].mxu1 %v1185_v53  ;;  %v3700_v4 = vpack.c.bf16 %v1087_v46, %v1085_v45  ;;  %v1089_v53 = vld [vmem:[#allocation8 + $0x148] sm:$0xff]  ;;  %v1044_v33 = vld [vmem:[#allocation2] sm:$0xff]  ;;  %v1406_v30 = vld [vmem:[#allocation8 + $0x538] sm:$0xff] }
 0x209   : > { %3667 = vmatpush1.bf16.msra.mxu1 %v3666_v49  ;;  %3208 = vmatprep.mubr.msk.f32.mxu1 %vm779_vm6, %v1192_v21  ;;  %v1084_v49 = vld [vmem:[#allocation8 + $0x120] sm:$0xff]  ;;  %v1095_v21 = vld [vmem:[#allocation8 + $0x178] sm:$0xff]  ;;  %v1372_v32 = vld [vmem:[#allocation8 + $0x428] sm:$0xff] }
 0x20a   : > { %3669 = vmatprep.subr.bf16.mxu1 %v3668_v54  ;;  %v1091_v54 = vld [vmem:[#allocation8 + $0x158] sm:$0xff]  ;;  %v3702_v57 = vpack.c.bf16 %v1086_v51, %v1084_v49  ;;  %v1376_v49 = vld [vmem:[#allocation8 + $0x448] sm:$0xff] }
 0x20b   : > { %v3704_v58 = vpack.c.bf16 %v1091_v54, %v1089_v53  ;;  %v1378_v51 = vld [vmem:[#allocation8 + $0x458] sm:$0xff] }
 0x20c   : > { %1270 = vmatmul.mubr.f32.gmra.mrb[2].mxu1 %v1190_v37  ;;  %v1097_v37 = vld [vmem:[#allocation8 + $0x188] sm:$0xff] }
 0x20d   : > { %3671 = vmatpush1.bf16.msra.mxu1 %v3670_v59  ;;  %3209 = vmatprep.mubr.msk.f32.mxu1 %vm779_vm6, %v1045_v55  ;;  %v3706_v59 = vpack.c.bf16 %v1090_v42, %v1088_v35  ;;  %v3712_v55 = vpack.c.bf16 %v1099_v62, %v1097_v37  ;;  %v1377_v35 = vld [vmem:[#allocation8 + $0x450] sm:$0xff]  ;;  %v1380_v42 = vld [vmem:[#allocation8 + $0x468] sm:$0xff]  ;;  %v1386_v37 = vld [vmem:[#allocation8 + $0x498] sm:$0xff] }
 0x20e   : > { %3673 = vmatprep.subr.bf16.mxu1 %v3672_v60  ;;  %v3708_v60 = vpack.c.bf16 %v1095_v21, %v1093_v52  ;;  %v1382_v52 = vld [vmem:[#allocation8 + $0x478] sm:$0xff] }
 0x211   : > { %3675 = vmatpush1.bf16.msra.mxu1 %v3674_v1  ;;  %v1096_v1 = vld [vmem:[#allocation8 + $0x180] sm:$0xff] }
 0x212   : > { %3677 = vmatprep.subr.bf16.mxu1 %v3676_v2  ;;  %v1098_v2 = vld [vmem:[#allocation8 + $0x190] sm:$0xff] }
 0x213   : > { %v3714_v9 = vpack.c.bf16 %v1098_v2, %v1096_v1  ;;  %v1385_v1 = vld [vmem:[#allocation8 + $0x490] sm:$0xff]  ;;  %v1388_v2 = vld [vmem:[#allocation8 + $0x4a8] sm:$0xff] }
 0x215   : > { %3679 = vmatpush1.bf16.msra.mxu1 %v3678_v11  ;;  %v1100_v11 = vld [vmem:[#allocation8 + $0x1a0] sm:$0xff] }
 0x216   : > { %3681 = vmatprep.subr.bf16.mxu1 %v3680_v12  ;;  %v1102_v12 = vld [vmem:[#allocation8 + $0x1b0] sm:$0xff] }
 0x217   : > { %v3718_v15 = vpack.c.bf16 %v1102_v12, %v1100_v11  ;;  %v1389_v11 = vld [vmem:[#allocation8 + $0x4b0] sm:$0xff]  ;;  %v1392_v12 = vld [vmem:[#allocation8 + $0x4c8] sm:$0xff] }
 0x219   : > { %3683 = vmatpush1.bf16.msra.mxu1 %v3682_v17  ;;  %v1104_v17 = vld [vmem:[#allocation8 + $0x1c0] sm:$0xff] }
 0x21a   : > { %3685 = vmatprep.subr.bf16.mxu1 %v3684_v14  ;;  %v1106_v14 = vld [vmem:[#allocation8 + $0x1d0] sm:$0xff] }
 0x21b   : > { %v3722_v18 = vpack.c.bf16 %v1106_v14, %v1104_v17  ;;  %v1393_v17 = vld [vmem:[#allocation8 + $0x4d0] sm:$0xff]  ;;  %v1396_v14 = vld [vmem:[#allocation8 + $0x4e8] sm:$0xff] }
 0x21d   : > { %3687 = vmatpush1.bf16.msra.mxu1 %v3686_v6  ;;  %v1363_v6 = vld [vmem:[#allocation8 + $0x3e0] sm:$0xff] }
 0x21e   : > { %3689 = vmatprep.subr.bf16.mxu1 %v3688_v23  ;;  %v1365_v23 = vld [vmem:[#allocation8 + $0x3f0] sm:$0xff] }
 0x221   : > { %3691 = vmatpush1.bf16.msra.mxu1 %v3690_v28  ;;  %v3726_v28 = vpack.c.bf16 %v1365_v23, %v1363_v6  ;;  %v1397_v6 = vld [vmem:[#allocation8 + $0x4f0] sm:$0xff]  ;;  %v1400_v23 = vld [vmem:[#allocation8 + $0x508] sm:$0xff] }
 0x222   : > { %3693 = vmatprep.subr.bf16.mxu1 %v3692_v29  ;;  %v3728_v29 = vpack.c.bf16 %v1370_v25, %v1368_v24  ;;  %v1402_v24 = vld [vmem:[#allocation8 + $0x518] sm:$0xff]  ;;  %v3758_v25 = vpack.c.bf16 %v1397_v6, %v1395_v22 }
 0x225   : > { %3695 = vmatpush1.bf16.msra.mxu1 %v3694_v34  ;;  %v1359_v34 = vld [vmem:[#allocation2 + $0x8] sm:$0xfc] }
 0x226   : > { %3697 = vmatprep.subr.bf16.mxu1 %v3696_v38  ;;  %v1374_v38 = vld [vmem:[#allocation8 + $0x438] sm:$0xff]  ;;  %v1432_v45 = vrot.slane %v1359_v34, 2  ;;  %v1405_v34 = vld [vmem:[#allocation8 + $0x530] sm:$0xff] }
 0x227   : > { %v3732_v46 = vpack.c.bf16 %v1374_v38, %v1372_v32  ;;  %v1408_v38 = vld [vmem:[#allocation8 + $0x548] sm:$0xff] }
 0x228   : > { %v1434_v53 = vsel %vm608_vm3, %v1432_v45, %v1433_v40 }
 0x229   : > { %3699 = vmatpush1.bf16.msra.mxu1 %v3698_v48  ;;  %v1371_v48 = vld [vmem:[#allocation8 + $0x420] sm:$0xff] }
 0x22a   : > { %3701 = vmatprep.subr.bf16.mxu1 %v3700_v4  ;;  %v1373_v4 = vld [vmem:[#allocation8 + $0x430] sm:$0xff] }
 0x22b   : > { %v3734_v54 = vpack.c.bf16 %v1373_v4, %v1371_v48  ;;  %v1407_v48 = vld [vmem:[#allocation8 + $0x540] sm:$0xff]  ;;  %v1409_v4 = vld [vmem:[#allocation8 + $0x550] sm:$0xff] }
 0x22d   : > { %3703 = vmatpush1.bf16.msra.mxu1 %v3702_v57  ;;  %v3736_v57 = vpack.c.bf16 %v1378_v51, %v1376_v49  ;;  %v1412_v49 = vld [vmem:[#allocation8 + $0x568] sm:$0xff]  ;;  %v1414_v51 = vld [vmem:[#allocation8 + $0x578] sm:$0xff] }
 0x22e   : > { %3705 = vmatprep.subr.bf16.mxu1 %v3704_v58  ;;  %v1375_v58 = vld [vmem:[#allocation8 + $0x440] sm:$0xff] }
 0x22f   : > { %v3738_v21 = vpack.c.bf16 %v1377_v35, %v1375_v58  ;;  %v1413_v58 = vld [vmem:[#allocation8 + $0x570] sm:$0xff]  ;;  %v1416_v35 = vld [vmem:[#allocation8 + $0x588] sm:$0xff] }
 0x231   : > { %3707 = vmatpush1.bf16.msra.mxu1 %v3706_v59  ;;  %v3740_v59 = vpack.c.bf16 %v1382_v52, %v1380_v42  ;;  %v1418_v42 = vld [vmem:[#allocation8 + $0x598] sm:$0xff] }
 0x232   : > { %3709 = vmatprep.subr.bf16.mxu1 %v3708_v60  ;;  %v1379_v60 = vld [vmem:[#allocation8 + $0x460] sm:$0xff] }
 0x233   : > { %v3742_v62 = vpack.c.bf16 %v1381_v61, %v1379_v60  ;;  %v1417_v60 = vld [vmem:[#allocation8 + $0x590] sm:$0xff]  ;;  %v1420_v61 = vld [vmem:[#allocation8 + $0x5a8] sm:$0xff] }
 0x235   : > { %3711 = vmatpush1.bf16.msra.mxu1 %v3710_v63  ;;  %v3744_v63 = vpack.c.bf16 %v1386_v37, %v1384_v50  ;;  %v1422_v50 = vld [vmem:[#allocation8 + $0x5b8] sm:$0xff] }
 0x236   : > { %3713 = vmatprep.subr.bf16.mxu1 %v3712_v55  ;;  %v1383_v55 = vld [vmem:[#allocation8 + $0x480] sm:$0xff] }
 0x237   : > { %v3746_v8 = vpack.c.bf16 %v1385_v1, %v1383_v55  ;;  %v1421_v55 = vld [vmem:[#allocation8 + $0x5b0] sm:$0xff] }
 0x239   : > { %3715 = vmatpush1.bf16.msra.mxu1 %v3714_v9  ;;  %v3748_v9 = vpack.c.bf16 %v1390_v7, %v1388_v2  ;;  %v1424_v2 = vld [vmem:[#allocation8 + $0x5c8] sm:$0xff]  ;;  %v1361_v7 = vld [vmem:[#allocation2 + $0x28] sm:$0x3] }
 0x23a   : > { %3717 = vmatprep.subr.bf16.mxu1 %v3716_v10  ;;  %v1387_v10 = vld [vmem:[#allocation8 + $0x4a0] sm:$0xff] }
 0x23b   : > { %v3750_v13 = vpack.c.bf16 %v1389_v11, %v1387_v10  ;;  %v1423_v10 = vld [vmem:[#allocation8 + $0x5c0] sm:$0xff]  ;;  %v1437_v11 = vrot.slane %v1361_v7, 2  ;;  %v3247_v7 = vld [vmem:[%s6038_s3 + $0x2e8] sm:$0xff] }
 0x23d   : > { %3719 = vmatpush1.bf16.msra.mxu1 %v3718_v15  ;;  %v3752_v15 = vpack.c.bf16 %v1394_v56, %v1392_v12  ;;  %v1360_v12 = vld [vmem:[#allocation2 + $0x20] sm:$0x3] }
 0x23e   : > { %3721 = vmatprep.subr.bf16.mxu1 %v3720_v16  ;;  %v1391_v16 = vld [vmem:[#allocation8 + $0x4c0] sm:$0xff] }
 0x241   : > { %3723 = vmatpush1.bf16.msra.mxu1 %v3722_v18  ;;  %v1398_v18 = vld [vmem:[#allocation8 + $0x4f8] sm:$0xff] }
 0x242   : > { %1341 = vmatprep.subr.mxu1 %v1109_v19  ;;  %v3754_v19 = vpack.c.bf16 %v1393_v17, %v1391_v16  ;;  %v3756_v20 = vpack.c.bf16 %v1398_v18, %v1396_v14  ;;  %v1438_v16 = vsel %vm608_vm3, %v1433_v40, %v1437_v11  ;;  %v3217_v14 = vld [vmem:[%s6038_s3 + $0x1f8] sm:$0xff]  ;;  %v3214_v18 = vld [vmem:[%s6038_s3 + $0x1e0] sm:$0xff]  ;;  %v3216_v40 = vld [vmem:[%s6038_s3 + $0x1f0] sm:$0xff] }
 0x243   : > { %v3786_v22 = vpack.c.bf16 %v3216_v40, %v3214_v18  ;;  %v3206_v11 = vld [vmem:[%s6040_s5 + $0x1] ss:$4 sm:$0x3] }
 0x244   : > { %v3250_v18 = vld [vmem:[%s6038_s3 + $0x300] sm:$0xff] }
 0x245   : > { %1342 = vmatpush1.msra.mxu1 %v1108_v26  ;;  %v3760_v26 = vpack.c.bf16 %v1402_v24, %v1400_v23  ;;  %v3218_v23 = vld [vmem:[%s6038_s3 + $0x200] sm:$0xff]  ;;  %v3220_v24 = vld [vmem:[%s6038_s3 + $0x210] sm:$0xff] }
 0x246   : > { %1346 = vmatmul.mubr.f32.vlgmr.msra.gmra.mrb[0].mxu1 %v1044_v33  ;;  %3725 = vmatprep.subr.bf16.mxu1 %v3724_v27  ;;  %v1399_v27 = vld [vmem:[#allocation8 + $0x500] sm:$0xff] }
 0x247   : > { %3210 = vmatprep.mubr.msk.f32.mxu1 %vm779_vm6, %v4946_v36  ;;  %3727 = vmatpush1.bf16.msra.mxu1 %v3726_v28  ;;  %v1401_v28 = vld [vmem:[#allocation8 + $0x510] sm:$0xff]  ;;  %v1403_v33 = vld [vmem:[#allocation8 + $0x520] sm:$0xff] }
 0x248   : > { %3729 = vmatprep.subr.bf16.mxu1 %v3728_v29  ;;  %v1404_v29 = vld [vmem:[#allocation8 + $0x528] sm:$0xff]  ;;  %v3762_v31 = vpack.c.bf16 %v1401_v28, %v1399_v27  ;;  %v3766_v45 = vpack.c.bf16 %v1405_v34, %v1403_v33  ;;  %v3790_v27 = vpack.c.bf16 %v3220_v24, %v3218_v23  ;;  %v3255_v23 = vld [vmem:[%s6038_s3 + $0x328] sm:$0xff] }
 0x249   : > { %v3764_v32 = vpack.c.bf16 %v1406_v30, %v1404_v29  ;;  %v3222_v29 = vld [vmem:[%s6038_s3 + $0x220] sm:$0xff]  ;;  %v3224_v30 = vld [vmem:[%s6038_s3 + $0x230] sm:$0xff]  ;;  %v3257_v24 = vld [vmem:[%s6038_s3 + $0x338] sm:$0xff] }
 0x24a   : > { %1352 = vmatmul.mubr.f32.gmra.mrb[2].mxu1 %v4948_v39  ;;  %v3794_v33 = vpack.c.bf16 %v3224_v30, %v3222_v29 }
 0x24b   : > { %3731 = vmatpush1.bf16.msra.mxu1 %v3730_v44  ;;  %3211 = vmatprep.mubr.msk.f32.mxu1 %vm779_vm6, %v1434_v53  ;;  %v1410_v44 = vld [vmem:[#allocation8 + $0x558] sm:$0xff]  ;;  %v3770_v53 = vpack.c.bf16 %v1409_v4, %v1407_v48 }
 0x24c   : > { %3733 = vmatprep.subr.bf16.mxu1 %v3732_v46  ;;  %v3768_v46 = vpack.c.bf16 %v1410_v44, %v1408_v38  ;;  %v3226_v38 = vld [vmem:[%s6038_s3 + $0x240] sm:$0xff]  ;;  %v3228_v44 = vld [vmem:[%s6038_s3 + $0x250] sm:$0xff] }
 0x24d   : > { %v3798_v48 = vpack.c.bf16 %v3228_v44, %v3226_v38 }
 0x24f   : > { %3735 = vmatpush1.bf16.msra.mxu1 %v3734_v54  ;;  %v3772_v54 = vpack.c.bf16 %v1414_v51, %v1412_v49  ;;  %v3230_v49 = vld [vmem:[%s6038_s3 + $0x260] sm:$0xff]  ;;  %v3232_v51 = vld [vmem:[%s6038_s3 + $0x270] sm:$0xff] }
 0x250   : > { %3737 = vmatprep.subr.bf16.mxu1 %v3736_v57  ;;  %v1411_v57 = vld [vmem:[#allocation8 + $0x560] sm:$0xff] }
 0x251   : > { %v3774_v52 = vpack.c.bf16 %v1413_v58, %v1411_v57  ;;  %v3802_v57 = vpack.c.bf16 %v3232_v51, %v3230_v49  ;;  %v3258_v51 = vld [vmem:[%s6038_s3 + $0x340] sm:$0xff] }
 0x253   : > { %3739 = vmatpush1.bf16.msra.mxu1 %v3738_v21  ;;  %v3776_v21 = vpack.c.bf16 %v1418_v42, %v1416_v35  ;;  %v3234_v35 = vld [vmem:[%s6038_s3 + $0x280] sm:$0xff]  ;;  %v3236_v42 = vld [vmem:[%s6038_s3 + $0x290] sm:$0xff] }
 0x254   : > { %3741 = vmatprep.subr.bf16.mxu1 %v3740_v59  ;;  %v1415_v59 = vld [vmem:[#allocation8 + $0x580] sm:$0xff] }
 0x255   : > { %v3778_v37 = vpack.c.bf16 %v1417_v60, %v1415_v59  ;;  %v3806_v59 = vpack.c.bf16 %v3236_v42, %v3234_v35 }
 0x257   : > { %3743 = vmatpush1.bf16.msra.mxu1 %v3742_v62  ;;  %v3780_v62 = vpack.c.bf16 %v1422_v50, %v1420_v61  ;;  %v3238_v61 = vld [vmem:[%s6038_s3 + $0x2a0] sm:$0xff]  ;;  %v3240_v50 = vld [vmem:[%s6038_s3 + $0x2b0] sm:$0xff] }
 0x258   : > { %3745 = vmatprep.subr.bf16.mxu1 %v3744_v63  ;;  %v1419_v63 = vld [vmem:[#allocation8 + $0x5a0] sm:$0xff] }
 0x259   : > { %v3782_v1 = vpack.c.bf16 %v1421_v55, %v1419_v63  ;;  %v3810_v63 = vpack.c.bf16 %v3240_v50, %v3238_v61  ;;  %v3262_v61 = vld [vmem:[%s6038_s3 + $0x360] sm:$0xff]  ;;  %v3264_v50 = vld [vmem:[%s6038_s3 + $0x370] sm:$0xff] }
 0x25b   : > { %3747 = vmatpush1.bf16.msra.mxu1 %v3746_v8  ;;  %v1358_v8 = vld [vmem:[#allocation2] sm:$0xfc] }
 0x25c   : > { %3749 = vmatprep.subr.bf16.mxu1 %v3748_v9  ;;  %v1430_v9 = vrot.slane %v4948_v39, 2  ;;  %v1429_v56 = vrot.slane %v1358_v8, 2  ;;  %v3215_v39 = vld [vmem:[%s6038_s3 + $0x1e8] sm:$0xff]  ;;  %v3249_v8 = vld [vmem:[%s6038_s3 + $0x2f8] sm:$0xff] }
 0x25d   : > { %v3784_v36 = vpack.c.bf16 %v3217_v14, %v3215_v39  ;;  %v3253_v39 = vld [vmem:[%s6038_s3 + $0x318] sm:$0xff] }
 0x25f   : > { %3751 = vmatpush1.bf16.msra.mxu1 %v3750_v13  ;;  %v1431_v13 = vsel %vm608_vm3, %v1429_v56, %v1430_v9  ;;  %3785 = vmatprep.subr.bf16.mxu0 %v3784_v36  ;;  %v3248_v56 = vld [vmem:[%s6038_s3 + $0x2f0] sm:$0xff] }
 0x260   : > { %3753 = vmatprep.subr.bf16.mxu1 %v3752_v15  ;;  %v1435_v15 = vrot.slane %v1360_v12, 2  ;;  %3787 = vmatpush1.bf16.msra.mxu0 %v3786_v22  ;;  %v3246_v12 = vld [vmem:[%s6038_s3 + $0x2e0] sm:$0xff]  ;;  %v3252_v36 = vld [vmem:[%s6038_s3 + $0x310] sm:$0xff] }
 0x262   : > { %v1436_v17 = vsel %vm608_vm3, %v1430_v9, %v1435_v15  ;;  %v1530_v15 = vrot.slane %v3206_v11, %v4835_v43 }
 0x263   : > { %3755 = vmatpush1.bf16.msra.mxu1 %v3754_v19  ;;  %v3219_v19 = vld [vmem:[%s6038_s3 + $0x208] sm:$0xff] }
 0x264   : > { %3757 = vmatprep.subr.bf16.mxu1 %v3756_v20  ;;  %v3221_v20 = vld [vmem:[%s6038_s3 + $0x218] sm:$0xff] }
 0x265   : > { %v3788_v6 = vpack.c.bf16 %v3221_v20, %v3219_v19  ;;  %v3822_v19 = vpack.c.bf16 %v3252_v36, %v3250_v18 }
 0x267   : > { %3759 = vmatpush1.bf16.msra.mxu1 %v3758_v25  ;;  %v3223_v25 = vld [vmem:[%s6038_s3 + $0x228] sm:$0xff]  ;;  %3789 = vmatprep.subr.bf16.mxu0 %v3788_v6 }
 0x268   : > { %3761 = vmatprep.subr.bf16.mxu1 %v3760_v26  ;;  %v3225_v26 = vld [vmem:[%s6038_s3 + $0x238] sm:$0xff]  ;;  %3791 = vmatpush1.bf16.msra.mxu0 %v3790_v27  ;;  %v3254_v27 = vld [vmem:[%s6038_s3 + $0x320] sm:$0xff] }
 0x269   : > { %v3792_v28 = vpack.c.bf16 %v3225_v26, %v3223_v25  ;;  %v3824_v26 = vpack.c.bf16 %v3257_v24, %v3255_v23 }
 0x26b   : > { %3763 = vmatpush1.bf16.msra.mxu1 %v3762_v31  ;;  %v3227_v31 = vld [vmem:[%s6038_s3 + $0x248] sm:$0xff]  ;;  %3793 = vmatprep.subr.bf16.mxu0 %v3792_v28  ;;  %v3256_v28 = vld [vmem:[%s6038_s3 + $0x330] sm:$0xff] }
 0x26c   : > { %3765 = vmatprep.subr.bf16.mxu1 %v3764_v32  ;;  %v3229_v32 = vld [vmem:[%s6038_s3 + $0x258] sm:$0xff]  ;;  %3795 = vmatpush1.bf16.msra.mxu0 %v3794_v33 }
 0x26d   : > { %v3796_v34 = vpack.c.bf16 %v3229_v32, %v3227_v31  ;;  %v3826_v31 = vpack.c.bf16 %v3256_v28, %v3254_v27 }
 0x26f   : > { %3767 = vmatpush1.bf16.msra.mxu1 %v3766_v45  ;;  %v3231_v45 = vld [vmem:[%s6038_s3 + $0x268] sm:$0xff]  ;;  %3797 = vmatprep.subr.bf16.mxu0 %v3796_v34 }
 0x270   : > { %3769 = vmatprep.subr.bf16.mxu1 %v3768_v46  ;;  %v3233_v46 = vld [vmem:[%s6038_s3 + $0x278] sm:$0xff]  ;;  %3799 = vmatpush1.bf16.msra.mxu0 %v3798_v48 }
 0x271   : > { %v3800_v4 = vpack.c.bf16 %v3233_v46, %v3231_v45  ;;  %v3259_v45 = vld [vmem:[%s6038_s3 + $0x348] sm:$0xff]  ;;  %v3261_v46 = vld [vmem:[%s6038_s3 + $0x358] sm:$0xff] }
 0x272   : > { %v3828_v49 = vpack.c.bf16 %v3261_v46, %v3259_v45 }
 0x273   : > { %3771 = vmatpush1.bf16.msra.mxu1 %v3770_v53  ;;  %v3235_v53 = vld [vmem:[%s6038_s3 + $0x288] sm:$0xff]  ;;  %3801 = vmatprep.subr.bf16.mxu0 %v3800_v4 }
 0x274   : > { %3773 = vmatprep.subr.bf16.mxu1 %v3772_v54  ;;  %v3237_v54 = vld [vmem:[%s6038_s3 + $0x298] sm:$0xff]  ;;  %3803 = vmatpush1.bf16.msra.mxu0 %v3802_v57 }
 0x275   : > { %v3804_v58 = vpack.c.bf16 %v3237_v54, %v3235_v53  ;;  %v3260_v53 = vld [vmem:[%s6038_s3 + $0x350] sm:$0xff] }
 0x277   : > { %3775 = vmatpush1.bf16.msra.mxu1 %v3774_v52  ;;  %v3239_v52 = vld [vmem:[%s6038_s3 + $0x2a8] sm:$0xff]  ;;  %3805 = vmatprep.subr.bf16.mxu0 %v3804_v58  ;;  %v3830_v58 = vpack.c.bf16 %v3260_v53, %v3258_v51  ;;  %v1702_v53 = vld [vmem:[%s6038_s3 + $0x38] sm:$0xff] }
 0x278   : > { %3777 = vmatprep.subr.bf16.mxu1 %v3776_v21  ;;  %v3241_v21 = vld [vmem:[%s6038_s3 + $0x2b8] sm:$0xff]  ;;  %3807 = vmatpush1.bf16.msra.mxu0 %v3806_v59  ;;  %v1700_v51 = vld [vmem:[%s6038_s3 + $0x28] sm:$0xff] }
 0x279   : > { %v3808_v60 = vpack.c.bf16 %v3241_v21, %v3239_v52  ;;  %v3263_v52 = vld [vmem:[%s6038_s3 + $0x368] sm:$0xff]  ;;  %v3265_v21 = vld [vmem:[%s6038_s3 + $0x378] sm:$0xff] }
 0x27b   : > { %3779 = vmatpush1.bf16.msra.mxu1 %v3778_v37  ;;  %v3243_v37 = vld [vmem:[%s6038_s3 + $0x2c8] sm:$0xff]  ;;  %3809 = vmatprep.subr.bf16.mxu0 %v3808_v60  ;;  %v3832_v60 = vpack.c.bf16 %v3265_v21, %v3263_v52 }
 0x27c   : > { %3781 = vmatprep.subr.bf16.mxu1 %v3780_v62  ;;  %v3245_v62 = vld [vmem:[%s6038_s3 + $0x2d8] sm:$0xff]  ;;  %3811 = vmatpush1.bf16.msra.mxu0 %v3810_v63  ;;  %v3267_v63 = vld [vmem:[%s6038_s3 + $0x388] sm:$0xff] }
 0x27d   : > { %v3812_v55 = vpack.c.bf16 %v3245_v62, %v3243_v37  ;;  %v3834_v62 = vpack.c.bf16 %v3264_v50, %v3262_v61  ;;  %v3848_v61 = vpack.c.bf16 %v1702_v53, %v1700_v51  ;;  %v1699_v50 = vld [vmem:[%s6038_s3 + $0x20] sm:$0xff]  ;;  %v1732_v51 = vld [vmem:[%s6038_s3 + $0x128] sm:$0xff]  ;;  %v1734_v53 = vld [vmem:[%s6038_s3 + $0x138] sm:$0xff] }
 0x27f   : > { %3783 = vmatpush1.bf16.msra.mxu1 %v3782_v1  ;;  %v3242_v1 = vld [vmem:[%s6038_s3 + $0x2c0] sm:$0xff]  ;;  %3813 = vmatprep.subr.bf16.mxu0 %v3812_v55  ;;  %v3269_v55 = vld [vmem:[%s6038_s3 + $0x398] sm:$0xff] }
 0x280   : > { %1505 = vmatprep.subr.mxu1 %v1424_v2  ;;  %v3244_v2 = vld [vmem:[%s6038_s3 + $0x2d0] sm:$0xff] }
 0x281   : > { %v3814_v9 = vpack.c.bf16 %v3244_v2, %v3242_v1  ;;  %v3266_v1 = vld [vmem:[%s6038_s3 + $0x380] sm:$0xff]  ;;  %v3836_v2 = vpack.c.bf16 %v3269_v55, %v3267_v63  ;;  %v1704_v63 = vld [vmem:[%s6038_s3 + $0x48] sm:$0xff]  ;;  %v1706_v55 = vld [vmem:[%s6038_s3 + $0x58] sm:$0xff] }
 0x283   : > { %1506 = vmatpush1.msra.mxu1 %v1423_v10  ;;  %v3816_v10 = vpack.c.bf16 %v3249_v8, %v3247_v7  ;;  %3815 = vmatpush1.bf16.msra.mxu0 %v3814_v9  ;;  %v3268_v7 = vld [vmem:[%s6038_s3 + $0x390] sm:$0xff]  ;;  %v3271_v8 = vld [vmem:[%s6038_s3 + $0x3a8] sm:$0xff]  ;;  %v3273_v9 = vld [vmem:[%s6038_s3 + $0x3b8] sm:$0xff] }
 0x284   : > { %1510 = vmatmul.mubr.f32.vlgmr.msra.gmra.mrb[0].mxu1 %v1431_v13  ;;  %v3818_v13 = vpack.c.bf16 %v3248_v56, %v3246_v12  ;;  %v3270_v12 = vld [vmem:[%s6038_s3 + $0x3a0] sm:$0xff]  ;;  %v3272_v56 = vld [vmem:[%s6038_s3 + $0x3b0] sm:$0xff] }
 0x285   : > { %3212 = vmatprep.mubr.msk.f32.mxu1 %vm779_vm6, %v1438_v16  ;;  %3817 = vmatprep.subr.bf16.mxu0 %v3816_v10  ;;  %v1534_v16 = vrot.slane %v3206_v11, %v4841_v47  ;;  %v3838_v10 = vpack.c.bf16 %v3268_v7, %v3266_v1  ;;  %v3840_v11 = vpack.c.bf16 %v3273_v9, %v3271_v8  ;;  %v1703_v8 = vld [vmem:[%s6038_s3 + $0x40] sm:$0xff]  ;;  %v1705_v9 = vld [vmem:[%s6038_s3 + $0x50] sm:$0xff] }
 0x286   : > { %v3852_v7 = vpack.c.bf16 %v1706_v55, %v1704_v63  ;;  %v1739_v63 = vld [vmem:[%s6038_s3 + $0x160] sm:$0xff]  ;;  %v1741_v55 = vld [vmem:[%s6038_s3 + $0x170] sm:$0xff] }
 0x287   : > { %3819 = vmatpush1.bf16.msra.mxu0 %v3818_v13  ;;  %v3842_v13 = vpack.c.bf16 %v3272_v56, %v3270_v12  ;;  %v3854_v12 = vpack.c.bf16 %v1705_v9, %v1703_v8  ;;  %v1743_v9 = vld [vmem:[%s6038_s3 + $0x180] sm:$0xff] }
 0x288   : > { %1516 = vmatmul.mubr.f32.gmra.mrb[2].mxu1 %v1436_v17  ;;  %v3251_v17 = vld [vmem:[%s6038_s3 + $0x308] sm:$0xff] }
 0x289   : > { %v3820_v14 = vpack.c.bf16 %v3253_v39, %v3251_v17 }
 0x28b   : > { %3821 = vmatprep.subr.bf16.mxu0 %v3820_v14 }
 0x28c   : > { %3823 = vmatpush1.bf16.msra.mxu0 %v3822_v19 }
 0x28d   : > { %3825 = vmatprep.subr.bf16.mxu0 %v3824_v26 }
 0x290   : > { %3827 = vmatpush1.bf16.msra.mxu0 %v3826_v31 }
 0x291   : > { %3829 = vmatprep.subr.bf16.mxu0 %v3828_v49  ;;  %v1697_v49 = vld [vmem:[%s6038_s3 + $0x10] sm:$0xff] }
 0x294   : > { %3831 = vmatpush1.bf16.msra.mxu0 %v3830_v58 }
 0x295   : > { %3833 = vmatprep.subr.bf16.mxu0 %v3832_v60 }
 0x298   : > { %3835 = vmatpush1.bf16.msra.mxu0 %v3834_v62 }
 0x299   : > { %3837 = vmatprep.subr.bf16.mxu0 %v3836_v2 }
 0x29c   : > { %3839 = vmatpush1.bf16.msra.mxu0 %v3838_v10  ;;  %v1708_v10 = vld [vmem:[%s6038_s3 + $0x68] sm:$0xff] }
 0x29d   : > { %3841 = vmatprep.subr.bf16.mxu0 %v3840_v11  ;;  %v1710_v11 = vld [vmem:[%s6038_s3 + $0x78] sm:$0xff] }
 0x29e   : > { %v3856_v56 = vpack.c.bf16 %v1710_v11, %v1708_v10  ;;  %v1745_v10 = vld [vmem:[%s6038_s3 + $0x190] sm:$0xff]  ;;  %v1748_v11 = vld [vmem:[%s6038_s3 + $0x1a8] sm:$0xff] }
 0x2a0   : > { %3843 = vmatpush1.bf16.msra.mxu0 %v3842_v13  ;;  %v1707_v13 = vld [vmem:[%s6038_s3 + $0x60] sm:$0xff] }
 0x357   : > { %v1511_v40 = vpop.f32.mrb[0].mxu1 }
 0x358   : > { %v1537_v20 = vadd.f32 %v1530_v15, %v1511_v40  ;;  %v1513_v22 = vpop.f32.mrb[1].mxu1 }
 0x359   : > { %v1538_v6 = vadd.f32 %v1534_v16, %v1513_v22 }
 0x35a   : > { %v1541_v25 = vmax.f32 %v1537_v20, 0.0 }
 0x35b   : > { %v1542_v29 = vmax.f32 %v1538_v6, 0.0  ;;  %v1517_v30 = vpop.f32.mrb[2].mxu1 }
 0x35c   : > { %v1554_v32 = vrot.slane %v1541_v25, 1  ;;  %v1539_v33 = vadd.f32 %v1530_v15, %v1517_v30  ;;  %v1519_v34 = vpop.f32.mrb[3].mxu1  ;;  %v1696_v15 = vld [vmem:[%s6038_s3 + $0x8] sm:$0xff] }
 0x35d   : > { %v1555_v38 = vrot.slane %v1542_v29, 1  ;;  %v1540_v44 = vadd.f32 %v1534_v16, %v1519_v34  ;;  %v1698_v16 = vld [vmem:[%s6038_s3 + $0x18] sm:$0xff] }
 0x35e   : > { %v1558_v48 = vmax.f32 %v1541_v25, %v1554_v32  ;;  %v1543_v4 = vmax.f32 %v1539_v33, 0.0  ;;  %v3844_v17 = vpack.c.bf16 %v1698_v16, %v1696_v15  ;;  %v1709_v15 = vld [vmem:[%s6038_s3 + $0x70] sm:$0xff]  ;;  %v1712_v16 = vld [vmem:[%s6038_s3 + $0x88] sm:$0xff] }
 0x35f   : > { %v1559_v54 = vmax.f32 %v1542_v29, %v1555_v38  ;;  %v1544_v57 = vmax.f32 %v1540_v44, 0.0 }
 0x360   : > { %v1624_v35 = vrot.slane %v1543_v4, 1  ;;  %1562 = vrot.lane.b32.xlu0 %v1558_v48, %s4534_s26  ;;  %3845 = vmatprep.subr.bf16.mxu0 %v3844_v17  ;;  %v1714_v17 = vld [vmem:[%s6038_s3 + $0x98] sm:$0xff] }
 0x361   : > { %v1625_v42 = vrot.slane %v1544_v57, 1  ;;  %1564 = vrot.lane.b32.xlu1 %v1559_v54, %s4534_s26 }
 0x362   : > { %v1628_v59 = vmax.f32 %v1543_v4, %v1624_v35  ;;  %v1695_v4 = vld [vmem:[%s6038_s3] sm:$0xff] }
 0x363   : > { %v1629_v37 = vmax.f32 %v1544_v57, %v1625_v42 }
 0x364   : > { %1632 = vrot.lane.b32.xlu0 %v1628_v59, %s4534_s26 }
 0x365   : > { %1634 = vrot.lane.b32.xlu1 %v1629_v37, %s4534_s26  ;;  %s4458_s26 = sshll.u32 %s4536_s9, 4  ;;  %s4459_s26 = int_to_ptr.vmem [resolvable:$false] %s4458_s26 }
 0x366   : > { %s4460_s22 = scalar_lea.vmem %s4459_s26, 32  ;;  %p4461_p13 = scmp.lt.s32.totalorder %s5995_s12, %s4459_s26 }
 0x367   : > { %p4462_p1 = scmp.lt.s32.totalorder %s4460_s22, %s4454_s19 }
 0x369   : > { %p4463_p6 = por %p4462_p1, %p4461_p13 }
 0x36b   : > { %p4464_p9 = pnand %p4463_p6, %p4457_p11 }
 0x3d2   : > { %v1563_v39 = vpop.permute.xlu0 %1562 }
 0x3d3   : > { %v1565_v14 = vpop.permute.xlu1 %1564 }
 0x3d4   : > { %v1567_v18 = vsel %vm1566_vm7, %v1563_v39, %v1565_v14  ;;  %v1571_v36 = vmax.f32 %v1559_v54, %v1565_v14  ;;  %v3858_v39 = vpack.c.bf16 %v1709_v15, %v1707_v13  ;;  %v3860_v14 = vpack.c.bf16 %v1714_v17, %v1712_v16  ;;  %v1747_v15 = vld [vmem:[%s6038_s3 + $0x1a0] sm:$0xff]  ;;  %v1749_v16 = vld [vmem:[%s6038_s3 + $0x1b0] sm:$0xff]  ;;  %v1752_v17 = vld [vmem:[%s6038_s3 + $0x1c8] sm:$0xff] }
 0x3d5   : > { %v1570_v40 = vmax.f32 %v1558_v48, %v1567_v18  ;;  %v1711_v18 = vld [vmem:[%s6038_s3 + $0x80] sm:$0xff] }
 0x3d6   : > { %v1633_v19 = vpop.permute.xlu0 %1632 }
 0x3d7   : > { %v1574_v20 = vcombine.low %v1570_v40, %v1571_v36  ;;  %v1598_v22 = vcombine.high %v1570_v40, %v1571_v36  ;;  %v1635_v6 = vpop.permute.xlu1 %1634  ;;  %v1713_v36 = vld [vmem:[%s6038_s3 + $0x90] sm:$0xff]  ;;  %v1716_v40 = vld [vmem:[%s6038_s3 + $0xa8] sm:$0xff] }
 0x3d8   : > { %v1636_v23 = vsel %vm1566_vm7, %v1633_v19, %v1635_v6  ;;  %v1640_v24 = vmax.f32 %v1629_v37, %v1635_v6  ;;  %v1701_v37 = vld [vmem:[%s6038_s3 + $0x30] sm:$0xff]  ;;  %v1718_v19 = vld [vmem:[%s6038_s3 + $0xb8] sm:$0xff]  ;;  %v1715_v6 = vld [vmem:[%s6038_s3 + $0xa0] sm:$0xff] }
 0x3d9   : > { %v1581_v25 = vrot.slane %v1574_v20, %v4886_v41  ;;  %v1605_v26 = vrot.slane %v1598_v22, %v4886_v41  ;;  %v1639_v27 = vmax.f32 %v1628_v59, %v1636_v23  ;;  %v3846_v59 = vpack.c.bf16 %v1697_v49, %v1695_v4  ;;  %v1717_v23 = vld [vmem:[%s6038_s3 + $0xb0] sm:$0xff]  ;;  %v1727_v4 = vld [vmem:[%s6038_s3 + $0x100] sm:$0xff] }
 0x3da   : > { %v3850_v2 = vpack.c.bf16 %v1701_v37, %v1699_v50  ;;  %v3862_v20 = vpack.c.bf16 %v1713_v36, %v1711_v18  ;;  %v3864_v22 = vpack.c.bf16 %v1718_v19, %v1716_v40  ;;  %v1729_v49 = vld [vmem:[%s6038_s3 + $0x110] sm:$0xff]  ;;  %v1742_v50 = vld [vmem:[%s6038_s3 + $0x178] sm:$0xff]  ;;  %v1751_v36 = vld [vmem:[%s6038_s3 + $0x1c0] sm:$0xff] }
 0x3db   : > { %v1588_v28 = vrot.slane %v1581_v25, %v4886_v41  ;;  %v1612_v29 = vrot.slane %v1605_v26, %v4886_v41  ;;  %v1643_v30 = vcombine.low %v1639_v27, %v1640_v24  ;;  %v1667_v31 = vcombine.high %v1639_v27, %v1640_v24  ;;  %v1720_v24 = vld [vmem:[%s6038_s3 + $0xc8] sm:$0xff]  ;;  %v1722_v25 = vld [vmem:[%s6038_s3 + $0xd8] sm:$0xff]  ;;  %v1753_v40 = vld [vmem:[%s6038_s3 + $0x1d0] sm:$0xff] }
 0x3dc   : > { %v3866_v26 = vpack.c.bf16 %v1717_v23, %v1715_v6  ;;  %v3868_v27 = vpack.c.bf16 %v1722_v25, %v1720_v24  ;;  %v3277_v19 = vld [vmem:[%s6038_s3 + $0x3c8] sm:$0xff]  ;;  %v3276_v25 = vld [vmem:[%s6038_s3 + $0x3c0] sm:$0xff] }
 0x3dd   : > { %1591 = vst.msk [vmem:[#allocation3 + $0x1] ss:$8 sm:$0x3] %vm4821_vm5, %v1588_v28  ;;  %v1593_v32 = vcombine.high %v1588_v28, %v1588_v28  ;;  %1615 = vst.msk [vmem:[#allocation3 + $0x3] ss:$8 sm:$0x3] %vm4821_vm5, %v1612_v29  ;;  %v1617_v33 = vcombine.high %v1612_v29, %v1612_v29  ;;  %v1650_v34 = vrot.slane %v1643_v30, %v4886_v41 }
 0x3de   : > { %v1674_v38 = vrot.slane %v1667_v31, %v4886_v41  ;;  %v1719_v28 = vld [vmem:[%s6038_s3 + $0xc0] sm:$0xff]  ;;  %v1721_v29 = vld [vmem:[%s6038_s3 + $0xd0] sm:$0xff]  ;;  %v1724_v30 = vld [vmem:[%s6038_s3 + $0xe8] sm:$0xff] }
 0x3df   : > { %1596 = vst.msk [vmem:[#allocation3 + $0x2] ss:$8 sm:$0x3] %vm4821_vm5, %v1593_v32  ;;  %1620 = vst.msk [vmem:[#allocation3 + $0x4] ss:$8 sm:$0x3] %vm4821_vm5, %v1617_v33  ;;  %v1657_v44 = vrot.slane %v1650_v34, %v4886_v41  ;;  %v3870_v32 = vpack.c.bf16 %v1721_v29, %v1719_v28 }
 0x3e0   : > { %v1681_v45 = vrot.slane %v1674_v38, %v4886_v41  ;;  %v1726_v31 = vld [vmem:[%s6038_s3 + $0xf8] sm:$0xff]  ;;  %v1723_v34 = vld [vmem:[%s6038_s3 + $0xe0] sm:$0xff]  ;;  %v1725_v38 = vld [vmem:[%s6038_s3 + $0xf0] sm:$0xff] }
 0x3e1   : > { %1660 = vst.msk [vmem:[#allocation3 + $0x5] ss:$8 sm:$0x3] %vm4821_vm5, %v1657_v44  ;;  %v1662_v46 = vcombine.high %v1657_v44, %v1657_v44  ;;  %v3872_v33 = vpack.c.bf16 %v1726_v31, %v1724_v30  ;;  %v1728_v44 = vld [vmem:[%s6038_s3 + $0x108] sm:$0xff]  ;;  %v3283_v28 = vld [vmem:[%s6038_s3 + $0x3f8] sm:$0xff] }
 0x3e2   : > { %1684 = vst.msk [vmem:[#allocation3 + $0x7] ss:$8 sm:$0x3] %vm4821_vm5, %v1681_v45  ;;  %v1686_v48 = vcombine.high %v1681_v45, %v1681_v45  ;;  %v1730_v45 = vld [vmem:[%s6038_s3 + $0x118] sm:$0xff] }
 0x3e3   : > { %1665 = vst.msk [vmem:[#allocation3 + $0x6] ss:$8 sm:$0x3] %vm4821_vm5, %v1662_v46  ;;  %v3874_v46 = vpack.c.bf16 %v1725_v38, %v1723_v34  ;;  %v3282_v34 = vld [vmem:[%s6038_s3 + $0x3f0] sm:$0xff] }
 0x3e4   : > { %1689 = vst.msk [vmem:[#allocation3 + $0x10] ss:$8 sm:$0x3] %vm4821_vm5, %v1686_v48  ;;  %v3876_v48 = vpack.c.bf16 %v1730_v45, %v1728_v44  ;;  %v3285_v44 = vld [vmem:[%s6038_s3 + $0x408] sm:$0xff]  ;;  %v3287_v45 = vld [vmem:[%s6038_s3 + $0x418] sm:$0xff] }
 0x3ea   : > { %v1756_v54 = vld [vmem:[#allocation3 + $0x8] sm:$0xfe]  ;;  %v1755_v5 = vld [vmem:[#allocation3] sm:$0xfe] }
 0x3eb   : > { %v1758_v57 = vld [vmem:[#allocation3 + $0x18] sm:$0x1]  ;;  %v1827_v58 = vrot.slane %v1756_v54, 1  ;;  %v1757_v42 = vld [vmem:[#allocation3 + $0x10] sm:$0x1]  ;;  %v1824_v52 = vrot.slane %v1755_v5, 1  ;;  %v3878_v54 = vpack.c.bf16 %v1729_v49, %v1727_v4  ;;  %v3912_v4 = vpack.c.bf16 %v3287_v45, %v3285_v44 }
 0x3ec   : > { %v1828_v35 = vrot.slane %v1758_v57, 1  ;;  %v1825_v21 = vrot.slane %v1757_v42, 1  ;;  %v1694_v1 = vld [vmem:[#allocation3 + $0x8] sm:$0xff]  ;;  %v3880_v57 = vpack.c.bf16 %v1734_v53, %v1732_v51  ;;  %v1731_v5 = vld [vmem:[%s6038_s3 + $0x120] sm:$0xff]  ;;  %v1981_v23 = vld [vmem:[#allocation3 + $0x18] sm:$0x3] }
 0x3ed   : > { %v1738_v42 = vld [vmem:[%s6038_s3 + $0x158] sm:$0xff]  ;;  %v2051_v30 = vrot.slane %v1981_v23, 2  ;;  %v1693_v38 = vld [vmem:[#allocation3] sm:$0xff]  ;;  %v3284_v49 = vld [vmem:[%s6038_s3 + $0x400] sm:$0xff] }
 0x3ee   : > { %v1829_v60 = vsel %vm379_vm1, %v1827_v58, %v1828_v35  ;;  %v1826_v62 = vsel %vm379_vm1, %v1824_v52, %v1825_v21  ;;  %v1733_v58 = vld [vmem:[%s6038_s3 + $0x130] sm:$0xff]  ;;  %v1736_v35 = vld [vmem:[%s6038_s3 + $0x148] sm:$0xff]  ;;  %v1979_v6 = vld [vmem:[#allocation3 + $0x8] sm:$0xfc] }
 0x3ef   : > { %3274 = vmatprep.mubr.msk.f32.mxu0 %vm1566_vm7, %v1829_v60  ;;  %v3882_v52 = vpack.c.bf16 %v1733_v58, %v1731_v5  ;;  %v3884_v21 = vpack.c.bf16 %v1738_v42, %v1736_v35  ;;  %v1737_v60 = vld [vmem:[%s6038_s3 + $0x150] sm:$0xff]  ;;  %v2050_v29 = vrot.slane %v1979_v6, 2  ;;  %v3289_v53 = vld [vmem:[%s6038_s3 + $0x428] sm:$0xff]  ;;  %v3288_v58 = vld [vmem:[%s6038_s3 + $0x420] sm:$0xff] }
 0x3f0   : > { %1898 = vmatmul.mubr.f32.vlgmr.msra.gmra.mrb[8].mxu0 %v1826_v62  ;;  %v3286_v51 = vld [vmem:[%s6038_s3 + $0x410] sm:$0xff]  ;;  %v3293_v42 = vld [vmem:[%s6038_s3 + $0x448] sm:$0xff]  ;;  %v3320_v44 = vld [vmem:[%s6038_s3 + $0x520] sm:$0xff] }
 0x3f1   : > { %3847 = vmatpush1.bf16.msra.mxu0 %v3846_v59  ;;  %3275 = vmatprep.mubr.msk.f32.mxu0 %vm1566_vm7, %v1694_v1  ;;  %v1735_v59 = vld [vmem:[%s6038_s3 + $0x140] sm:$0xff]  ;;  %v1744_v1 = vld [vmem:[%s6038_s3 + $0x188] sm:$0xff]  ;;  %v3290_v35 = vld [vmem:[%s6038_s3 + $0x430] sm:$0xff] }
 0x3f2   : > { %3849 = vmatprep.subr.bf16.mxu0 %v3848_v61  ;;  %v1740_v61 = vld [vmem:[%s6038_s3 + $0x168] sm:$0xff]  ;;  %v3886_v37 = vpack.c.bf16 %v1737_v60, %v1735_v59  ;;  %v3292_v60 = vld [vmem:[%s6038_s3 + $0x440] sm:$0xff]  ;;  %v3322_v45 = vld [vmem:[%s6038_s3 + $0x530] sm:$0xff] }
 0x3f3   : > { %v3888_v62 = vpack.c.bf16 %v1742_v50, %v1740_v61  ;;  %v3294_v61 = vld [vmem:[%s6038_s3 + $0x450] sm:$0xff]  ;;  %v3297_v50 = vld [vmem:[%s6038_s3 + $0x468] sm:$0xff] }
 0x3f5   : > { %3851 = vmatpush1.bf16.msra.mxu0 %v3850_v2  ;;  %v1746_v2 = vld [vmem:[%s6038_s3 + $0x198] sm:$0xff] }
 0x3f6   : > { %3853 = vmatprep.subr.bf16.mxu0 %v3852_v7  ;;  %v3890_v7 = vpack.c.bf16 %v1741_v55, %v1739_v63  ;;  %v3892_v8 = vpack.c.bf16 %v1746_v2, %v1744_v1  ;;  %v3296_v55 = vld [vmem:[%s6038_s3 + $0x460] sm:$0xff]  ;;  %v3298_v1 = vld [vmem:[%s6038_s3 + $0x470] sm:$0xff]  ;;  %v3301_v2 = vld [vmem:[%s6038_s3 + $0x488] sm:$0xff] }
 0x3f9   : > { %3855 = vmatpush1.bf16.msra.mxu0 %v3854_v12  ;;  %v1750_v12 = vld [vmem:[%s6038_s3 + $0x1b8] sm:$0xff] }
 0x3fa   : > { %3857 = vmatprep.subr.bf16.mxu0 %v3856_v56  ;;  %v3894_v56 = vpack.c.bf16 %v1745_v10, %v1743_v9  ;;  %v3896_v13 = vpack.c.bf16 %v1750_v12, %v1748_v11  ;;  %v3300_v10 = vld [vmem:[%s6038_s3 + $0x480] sm:$0xff]  ;;  %v3302_v11 = vld [vmem:[%s6038_s3 + $0x490] sm:$0xff]  ;;  %v3305_v12 = vld [vmem:[%s6038_s3 + $0x4a8] sm:$0xff] }
 0x3fd   : > { %3859 = vmatpush1.bf16.msra.mxu0 %v3858_v39  ;;  %v1754_v39 = vld [vmem:[%s6038_s3 + $0x1d8] sm:$0xff] }
 0x3fe   : > { %3861 = vmatprep.subr.bf16.mxu0 %v3860_v14  ;;  %v3898_v14 = vpack.c.bf16 %v1749_v16, %v1747_v15  ;;  %v3900_v18 = vpack.c.bf16 %v1754_v39, %v1752_v17  ;;  %v3304_v16 = vld [vmem:[%s6038_s3 + $0x4a0] sm:$0xff]  ;;  %v3306_v17 = vld [vmem:[%s6038_s3 + $0x4b0] sm:$0xff]  ;;  %v3309_v39 = vld [vmem:[%s6038_s3 + $0x4c8] sm:$0xff] }
 0x401   : > { %3863 = vmatpush1.bf16.msra.mxu0 %v3862_v20  ;;  %v3279_v20 = vld [vmem:[%s6038_s3 + $0x3d8] sm:$0xff] }
 0x402   : > { %3865 = vmatprep.subr.bf16.mxu0 %v3864_v22  ;;  %v3902_v22 = vpack.c.bf16 %v1753_v40, %v1751_v36  ;;  %v3904_v24 = vpack.c.bf16 %v3279_v20, %v3277_v19  ;;  %v3308_v40 = vld [vmem:[%s6038_s3 + $0x4c0] sm:$0xff]  ;;  %v3310_v19 = vld [vmem:[%s6038_s3 + $0x4d0] sm:$0xff]  ;;  %v3313_v20 = vld [vmem:[%s6038_s3 + $0x4e8] sm:$0xff] }
 0x403   : > { %v3938_v6 = vpack.c.bf16 %v3310_v19, %v3308_v40  ;;  %v2292_v40 = vld [vmem:[#allocation10 + $0x200] sm:$0xff]  ;;  %v2294_v19 = vld [vmem:[#allocation10 + $0x210] sm:$0xff] }
 0x405   : > { %3867 = vmatpush1.bf16.msra.mxu0 %v3866_v26  ;;  %v3278_v26 = vld [vmem:[%s6038_s3 + $0x3d0] sm:$0xff] }
 0x406   : > { %3869 = vmatprep.subr.bf16.mxu0 %v3868_v27  ;;  %v3281_v27 = vld [vmem:[%s6038_s3 + $0x3e8] sm:$0xff]  ;;  %v3906_v31 = vpack.c.bf16 %v3278_v26, %v3276_v25  ;;  %v3314_v25 = vld [vmem:[%s6038_s3 + $0x4f0] sm:$0xff] }
 0x407   : > { %v3317_v26 = vld [vmem:[%s6038_s3 + $0x508] sm:$0xff] }
 0x409   : > { %3871 = vmatpush1.bf16.msra.mxu0 %v3870_v32  ;;  %v3908_v32 = vpack.c.bf16 %v3283_v28, %v3281_v27  ;;  %v3319_v27 = vld [vmem:[%s6038_s3 + $0x518] sm:$0xff] }
 0x40a   : > { %3873 = vmatprep.subr.bf16.mxu0 %v3872_v33  ;;  %v3280_v33 = vld [vmem:[%s6038_s3 + $0x3e0] sm:$0xff] }
 0x40d   : > { %3875 = vmatpush1.bf16.msra.mxu0 %v3874_v46  ;;  %v2052_v46 = vsel %vm608_vm3, %v2050_v29, %v2051_v30  ;;  %v3944_v29 = vpack.c.bf16 %v3319_v27, %v3317_v26  ;;  %v3316_v30 = vld [vmem:[%s6038_s3 + $0x500] sm:$0xff]  ;;  %v2301_v26 = vld [vmem:[#allocation10 + $0x248] sm:$0xff]  ;;  %v2303_v27 = vld [vmem:[#allocation10 + $0x258] sm:$0xff] }
 0x40e   : > { %3877 = vmatprep.subr.bf16.mxu0 %v3876_v48  ;;  %v3910_v48 = vpack.c.bf16 %v3282_v34, %v3280_v33  ;;  %v3323_v33 = vld [vmem:[%s6038_s3 + $0x538] sm:$0xff] }
 0x411   : > { %3879 = vmatpush1.bf16.msra.mxu0 %v3878_v54  ;;  %v3291_v54 = vld [vmem:[%s6038_s3 + $0x438] sm:$0xff] }
 0x412   : > { %3881 = vmatprep.subr.bf16.mxu0 %v3880_v57  ;;  %v3914_v57 = vpack.c.bf16 %v3286_v51, %v3284_v49  ;;  %v3916_v5 = vpack.c.bf16 %v3291_v54, %v3289_v53  ;;  %v3324_v51 = vld [vmem:[%s6038_s3 + $0x540] sm:$0xff]  ;;  %v3326_v53 = vld [vmem:[%s6038_s3 + $0x550] sm:$0xff]  ;;  %v3329_v54 = vld [vmem:[%s6038_s3 + $0x568] sm:$0xff] }
 0x415   : > { %3883 = vmatpush1.bf16.msra.mxu0 %v3882_v52  ;;  %v3295_v52 = vld [vmem:[%s6038_s3 + $0x458] sm:$0xff] }
 0x416   : > { %3885 = vmatprep.subr.bf16.mxu0 %v3884_v21  ;;  %v3918_v21 = vpack.c.bf16 %v3290_v35, %v3288_v58  ;;  %v3920_v59 = vpack.c.bf16 %v3295_v52, %v3293_v42  ;;  %v3328_v35 = vld [vmem:[%s6038_s3 + $0x560] sm:$0xff]  ;;  %v3330_v42 = vld [vmem:[%s6038_s3 + $0x570] sm:$0xff]  ;;  %v3333_v52 = vld [vmem:[%s6038_s3 + $0x588] sm:$0xff] }
 0x419   : > { %3887 = vmatpush1.bf16.msra.mxu0 %v3886_v37  ;;  %v3299_v37 = vld [vmem:[%s6038_s3 + $0x478] sm:$0xff] }
 0x41a   : > { %3889 = vmatprep.subr.bf16.mxu0 %v3888_v62  ;;  %v3922_v62 = vpack.c.bf16 %v3294_v61, %v3292_v60  ;;  %v3924_v63 = vpack.c.bf16 %v3299_v37, %v3297_v50  ;;  %v3332_v61 = vld [vmem:[%s6038_s3 + $0x580] sm:$0xff]  ;;  %v3334_v50 = vld [vmem:[%s6038_s3 + $0x590] sm:$0xff] }
 0x41b   : > { %v1978_v37 = vld [vmem:[#allocation3] sm:$0xfc] }
 0x41d   : > { %3891 = vmatpush1.bf16.msra.mxu0 %v3890_v7  ;;  %v3303_v7 = vld [vmem:[%s6038_s3 + $0x498] sm:$0xff] }
 0x41e   : > { %3893 = vmatprep.subr.bf16.mxu0 %v3892_v8  ;;  %v3926_v8 = vpack.c.bf16 %v3298_v1, %v3296_v55  ;;  %v3928_v9 = vpack.c.bf16 %v3303_v7, %v3301_v2  ;;  %v2047_v55 = vrot.slane %v1978_v37, 2  ;;  %v2285_v7 = vld [vmem:[#allocation10 + $0x1c8] sm:$0xff] }
 0x421   : > { %3895 = vmatpush1.bf16.msra.mxu0 %v3894_v56  ;;  %v3307_v56 = vld [vmem:[%s6038_s3 + $0x4b8] sm:$0xff] }
 0x422   : > { %3897 = vmatprep.subr.bf16.mxu0 %v3896_v13  ;;  %v3930_v13 = vpack.c.bf16 %v3302_v11, %v3300_v10  ;;  %v3932_v15 = vpack.c.bf16 %v3307_v56, %v3305_v12  ;;  %v2286_v11 = vld [vmem:[#allocation10 + $0x1d0] sm:$0xff]  ;;  %v2289_v12 = vld [vmem:[#allocation10 + $0x1e8] sm:$0xff]  ;;  %v2291_v56 = vld [vmem:[#allocation10 + $0x1f8] sm:$0xff] }
 0x425   : > { %3899 = vmatpush1.bf16.msra.mxu0 %v3898_v14  ;;  %v3311_v14 = vld [vmem:[%s6038_s3 + $0x4d8] sm:$0xff] }
 0x426   : > { %3901 = vmatprep.subr.bf16.mxu0 %v3900_v18  ;;  %v3934_v18 = vpack.c.bf16 %v3306_v17, %v3304_v16  ;;  %v3936_v36 = vpack.c.bf16 %v3311_v14, %v3309_v39  ;;  %v2288_v16 = vld [vmem:[#allocation10 + $0x1e0] sm:$0xff]  ;;  %v2290_v17 = vld [vmem:[#allocation10 + $0x1f0] sm:$0xff]  ;;  %v2293_v39 = vld [vmem:[#allocation10 + $0x208] sm:$0xff] }
 0x427   : > { %v2295_v14 = vld [vmem:[#allocation10 + $0x218] sm:$0xff] }
 0x429   : > { %3903 = vmatpush1.bf16.msra.mxu0 %v3902_v22  ;;  %v3315_v22 = vld [vmem:[%s6038_s3 + $0x4f8] sm:$0xff] }
 0x42a   : > { %3905 = vmatprep.subr.bf16.mxu0 %v3904_v24  ;;  %v3940_v23 = vpack.c.bf16 %v3315_v22, %v3313_v20  ;;  %v3312_v24 = vld [vmem:[%s6038_s3 + $0x4e0] sm:$0xff]  ;;  %v2297_v20 = vld [vmem:[#allocation10 + $0x228] sm:$0xff]  ;;  %v2299_v22 = vld [vmem:[#allocation10 + $0x238] sm:$0xff] }
 0x42b   : > { %v3942_v28 = vpack.c.bf16 %v3314_v25, %v3312_v24  ;;  %v2296_v24 = vld [vmem:[#allocation10 + $0x220] sm:$0xff]  ;;  %v2298_v25 = vld [vmem:[#allocation10 + $0x230] sm:$0xff] }
 0x42c   : > { %1972 = vmatmul.mubr.f32.vlgmr.msra.gmra.mrb[8].mxu0 %v1693_v38 }
 0x42d   : > { %3907 = vmatpush1.bf16.msra.mxu0 %v3906_v31  ;;  %3336 = vmatprep.mubr.msk.f32.mxu0 %vm1566_vm7, %v2052_v46  ;;  %v3318_v31 = vld [vmem:[%s6038_s3 + $0x510] sm:$0xff]  ;;  %v3325_v46 = vld [vmem:[%s6038_s3 + $0x548] sm:$0xff] }
 0x42e   : > { %3909 = vmatprep.subr.bf16.mxu0 %v3908_v32  ;;  %v3321_v32 = vld [vmem:[%s6038_s3 + $0x528] sm:$0xff]  ;;  %v3946_v34 = vpack.c.bf16 %v3318_v31, %v3316_v30  ;;  %v2300_v30 = vld [vmem:[#allocation10 + $0x240] sm:$0xff]  ;;  %v2302_v31 = vld [vmem:[#allocation10 + $0x250] sm:$0xff] }
 0x42f   : > { %v3948_v38 = vpack.c.bf16 %v3323_v33, %v3321_v32  ;;  %v2305_v32 = vld [vmem:[#allocation10 + $0x268] sm:$0xff]  ;;  %v2307_v33 = vld [vmem:[#allocation10 + $0x278] sm:$0xff] }
 0x431   : > { %3911 = vmatpush1.bf16.msra.mxu0 %v3910_v48  ;;  %v3327_v48 = vld [vmem:[%s6038_s3 + $0x558] sm:$0xff] }
 0x432   : > { %3913 = vmatprep.subr.bf16.mxu0 %v3912_v4  ;;  %v3950_v4 = vpack.c.bf16 %v3322_v45, %v3320_v44  ;;  %v3952_v49 = vpack.c.bf16 %v3327_v48, %v3325_v46  ;;  %v2304_v44 = vld [vmem:[#allocation10 + $0x260] sm:$0xff]  ;;  %v2306_v45 = vld [vmem:[#allocation10 + $0x270] sm:$0xff]  ;;  %v2309_v46 = vld [vmem:[#allocation10 + $0x288] sm:$0xff] }
 0x433   : > { %v2311_v48 = vld [vmem:[#allocation10 + $0x298] sm:$0xff] }
 0x435   : > { %3915 = vmatpush1.bf16.msra.mxu0 %v3914_v57  ;;  %v3331_v57 = vld [vmem:[%s6038_s3 + $0x578] sm:$0xff] }
 0x436   : > { %3917 = vmatprep.subr.bf16.mxu0 %v3916_v5  ;;  %v3954_v5 = vpack.c.bf16 %v3326_v53, %v3324_v51  ;;  %v3956_v58 = vpack.c.bf16 %v3331_v57, %v3329_v54  ;;  %v2308_v51 = vld [vmem:[#allocation10 + $0x280] sm:$0xff]  ;;  %v2310_v53 = vld [vmem:[#allocation10 + $0x290] sm:$0xff]  ;;  %v2313_v54 = vld [vmem:[#allocation10 + $0x2a8] sm:$0xff] }
 0x437   : > { %v2315_v57 = vld [vmem:[#allocation10 + $0x2b8] sm:$0xff] }
 0x439   : > { %3919 = vmatpush1.bf16.msra.mxu0 %v3918_v21  ;;  %v3335_v21 = vld [vmem:[%s6038_s3 + $0x598] sm:$0xff] }
 0x43a   : > { %3921 = vmatprep.subr.bf16.mxu0 %v3920_v59  ;;  %v3958_v59 = vpack.c.bf16 %v3330_v42, %v3328_v35  ;;  %v3960_v60 = vpack.c.bf16 %v3335_v21, %v3333_v52  ;;  %v2312_v35 = vld [vmem:[#allocation10 + $0x2a0] sm:$0xff]  ;;  %v2314_v42 = vld [vmem:[#allocation10 + $0x2b0] sm:$0xff]  ;;  %v2317_v52 = vld [vmem:[#allocation10 + $0x2c8] sm:$0xff] }
 0x43b   : > { %v2319_v21 = vld [vmem:[#allocation10 + $0x2d8] sm:$0xff] }
 0x43d   : > { %3923 = vmatpush1.bf16.msra.mxu0 %v3922_v62  ;;  %v1980_v62 = vld [vmem:[#allocation3 + $0x10] sm:$0x3] }
 0x43e   : > { %3925 = vmatprep.subr.bf16.mxu0 %v3924_v63  ;;  %v3962_v63 = vpack.c.bf16 %v3334_v50, %v3332_v61  ;;  %v2048_v1 = vrot.slane %v1980_v62, 2  ;;  %v2316_v61 = vld [vmem:[#allocation10 + $0x2c0] sm:$0xff]  ;;  %v2318_v50 = vld [vmem:[#allocation10 + $0x2d0] sm:$0xff] }
 0x43f   : > { %v3998_v37 = vpack.c.bf16 %v2318_v50, %v2316_v61  ;;  %v3213_v62 = vld [vmem:[%s6040_s5 + $0x2] ss:$4 sm:$0x3] }
 0x440   : > { %v2049_v2 = vsel %vm608_vm3, %v2047_v55, %v2048_v1  ;;  %v2133_v55 = vrot.slane %v3213_v62, %v4835_v43  ;;  %v2321_v1 = vld [vmem:[#allocation10 + $0x2e8] sm:$0xff]  ;;  %v2647_v61 = vld [vmem:[%s6041_s6] sm:$0xff] }
 0x441   : > { %3927 = vmatpush1.bf16.msra.mxu0 %v3926_v8  ;;  %v2287_v8 = vld [vmem:[#allocation10 + $0x1d8] sm:$0xff] }
 0x442   : > { %3929 = vmatprep.subr.bf16.mxu0 %v3928_v9  ;;  %v2284_v9 = vld [vmem:[#allocation10 + $0x1c0] sm:$0xff]  ;;  %v3964_v10 = vpack.c.bf16 %v2287_v8, %v2285_v7  ;;  %v2137_v7 = vrot.slane %v3213_v62, %v4841_v47 }
 0x444   : > { %3965 = vmatprep.subr.bf16.mxu1 %v3964_v10 }
 0x445   : > { %3931 = vmatpush1.bf16.msra.mxu0 %v3930_v13  ;;  %v3966_v13 = vpack.c.bf16 %v2286_v11, %v2284_v9  ;;  %v2320_v9 = vld [vmem:[#allocation10 + $0x2e0] sm:$0xff] }
 0x446   : > { %3933 = vmatprep.subr.bf16.mxu0 %v3932_v15  ;;  %v3968_v15 = vpack.c.bf16 %v2291_v56, %v2289_v12  ;;  %v4002_v10 = vpack.c.bf16 %v2322_v3, %v2320_v9  ;;  %v2649_v9 = vld [vmem:[%s6041_s6 + $0x10] sm:$0xff]  ;;  %v2667_v3 = vld [vmem:[%s6041_s6 + $0xa0] sm:$0xff] }
 0x447   : > { %3967 = vmatpush1.bf16.msra.mxu1 %v3966_v13  ;;  %v2325_v13 = vld [vmem:[#allocation10 + $0x308] sm:$0xff] }
 0x448   : > { %3969 = vmatprep.subr.bf16.mxu1 %v3968_v15  ;;  %v2327_v15 = vld [vmem:[#allocation10 + $0x318] sm:$0xff] }
 0x449   : > { %3935 = vmatpush1.bf16.msra.mxu0 %v3934_v18  ;;  %v3970_v18 = vpack.c.bf16 %v2290_v17, %v2288_v16  ;;  %v4004_v17 = vpack.c.bf16 %v2327_v15, %v2325_v13  ;;  %v2651_v15 = vld [vmem:[%s6041_s6 + $0x20] sm:$0xff] }
 0x44a   : > { %3937 = vmatprep.subr.bf16.mxu0 %v3936_v36  ;;  %v3972_v36 = vpack.c.bf16 %v2295_v14, %v2293_v39  ;;  %v2326_v39 = vld [vmem:[#allocation10 + $0x310] sm:$0xff] }
 0x44b   : > { %3971 = vmatpush1.bf16.msra.mxu1 %v3970_v18  ;;  %v4006_v18 = vpack.c.bf16 %v2326_v39, %v2324_v0  ;;  %v2670_v0 = vld [vmem:[%s6041_s6 + $0xb8] sm:$0xff] }
 0x44c   : > { %3973 = vmatprep.subr.bf16.mxu1 %v3972_v36 }
 0x44d   : > { %3939 = vmatpush1.bf16.msra.mxu0 %v3938_v6  ;;  %v3974_v6 = vpack.c.bf16 %v2294_v19, %v2292_v40  ;;  %v2329_v19 = vld [vmem:[#allocation10 + $0x328] sm:$0xff] }
 0x44e   : > { %3941 = vmatprep.subr.bf16.mxu0 %v3940_v23  ;;  %v3976_v23 = vpack.c.bf16 %v2299_v22, %v2297_v20  ;;  %v2331_v20 = vld [vmem:[#allocation10 + $0x338] sm:$0xff] }
 0x44f   : > { %3975 = vmatpush1.bf16.msra.mxu1 %v3974_v6  ;;  %v4008_v6 = vpack.c.bf16 %v2331_v20, %v2329_v19  ;;  %v2230_v19 = vld [vmem:[#allocation10 + $0x28] sm:$0xff]  ;;  %v2232_v20 = vld [vmem:[#allocation10 + $0x38] sm:$0xff] }
 0x450   : > { %3977 = vmatprep.subr.bf16.mxu1 %v3976_v23  ;;  %v2328_v23 = vld [vmem:[#allocation10 + $0x320] sm:$0xff] }
 0x451   : > { %3943 = vmatpush1.bf16.msra.mxu0 %v3942_v28  ;;  %v3978_v28 = vpack.c.bf16 %v2298_v25, %v2296_v24  ;;  %v2330_v24 = vld [vmem:[#allocation10 + $0x330] sm:$0xff] }
 0x452   : > { %3945 = vmatprep.subr.bf16.mxu0 %v3944_v29  ;;  %v3980_v29 = vpack.c.bf16 %v2303_v27, %v2301_v26  ;;  %v4010_v26 = vpack.c.bf16 %v2330_v24, %v2328_v23 }
 0x453   : > { %3979 = vmatpush1.bf16.msra.mxu1 %v3978_v28  ;;  %v2333_v28 = vld [vmem:[#allocation10 + $0x348] sm:$0xff] }
 0x454   : > { %3981 = vmatprep.subr.bf16.mxu1 %v3980_v29  ;;  %v2335_v29 = vld [vmem:[#allocation10 + $0x358] sm:$0xff] }
 0x455   : > { %3947 = vmatpush1.bf16.msra.mxu0 %v3946_v34  ;;  %v3982_v34 = vpack.c.bf16 %v2302_v31, %v2300_v30  ;;  %v2332_v30 = vld [vmem:[#allocation10 + $0x340] sm:$0xff]  ;;  %v4012_v31 = vpack.c.bf16 %v2335_v29, %v2333_v28 }
 0x456   : > { %3949 = vmatprep.subr.bf16.mxu0 %v3948_v38  ;;  %v3984_v38 = vpack.c.bf16 %v2307_v33, %v2305_v32  ;;  %v2334_v32 = vld [vmem:[#allocation10 + $0x350] sm:$0xff]  ;;  %v2337_v33 = vld [vmem:[#allocation10 + $0x368] sm:$0xff]  ;;  %v2229_v29 = vld [vmem:[#allocation10 + $0x20] sm:$0xff] }
 0x457   : > { %3983 = vmatpush1.bf16.msra.mxu1 %v3982_v34  ;;  %v2339_v34 = vld [vmem:[#allocation10 + $0x378] sm:$0xff] }
 0x458   : > { %3985 = vmatprep.subr.bf16.mxu1 %v3984_v38  ;;  %v4014_v38 = vpack.c.bf16 %v2334_v32, %v2332_v30  ;;  %v2655_v30 = vld [vmem:[%s6041_s6 + $0x40] sm:$0xff]  ;;  %v4024_v32 = vpack.c.bf16 %v2232_v20, %v2230_v19 }
 0x459   : > { %3951 = vmatpush1.bf16.msra.mxu0 %v3950_v4  ;;  %v3986_v4 = vpack.c.bf16 %v2306_v45, %v2304_v44  ;;  %v4016_v44 = vpack.c.bf16 %v2339_v34, %v2337_v33  ;;  %v2336_v45 = vld [vmem:[#allocation10 + $0x360] sm:$0xff]  ;;  %v2231_v33 = vld [vmem:[#allocation10 + $0x30] sm:$0xff] }
 0x45a   : > { %3953 = vmatprep.subr.bf16.mxu0 %v3952_v49  ;;  %v3988_v49 = vpack.c.bf16 %v2311_v48, %v2309_v46  ;;  %v2338_v46 = vld [vmem:[#allocation10 + $0x370] sm:$0xff] }
 0x45b   : > { %3987 = vmatpush1.bf16.msra.mxu1 %v3986_v4  ;;  %v4018_v48 = vpack.c.bf16 %v2338_v46, %v2336_v45  ;;  %v2226_v4 = vld [vmem:[#allocation10 + $0x8] sm:$0xff]  ;;  %v2236_v46 = vld [vmem:[#allocation10 + $0x58] sm:$0xff] }
 0x45c   : > { %3989 = vmatprep.subr.bf16.mxu1 %v3988_v49  ;;  %v2228_v49 = vld [vmem:[#allocation10 + $0x18] sm:$0xff]  ;;  %v2234_v45 = vld [vmem:[#allocation10 + $0x48] sm:$0xff] }
 0x45d   : > { %3955 = vmatpush1.bf16.msra.mxu0 %v3954_v5  ;;  %v3990_v5 = vpack.c.bf16 %v2310_v53, %v2308_v51  ;;  %v4020_v51 = vpack.c.bf16 %v2228_v49, %v2226_v4  ;;  %v4026_v49 = vpack.c.bf16 %v2231_v33, %v2229_v29  ;;  %v2262_v29 = vld [vmem:[#allocation10 + $0x128] sm:$0xff]  ;;  %v2261_v33 = vld [vmem:[#allocation10 + $0x120] sm:$0xff] }
 0x45e   : > { %3957 = vmatprep.subr.bf16.mxu0 %v3956_v58  ;;  %v3992_v58 = vpack.c.bf16 %v2315_v57, %v2313_v54 }
 0x45f   : > { %3991 = vmatpush1.bf16.msra.mxu1 %v3990_v5 }
 0x460   : > { %3993 = vmatprep.subr.bf16.mxu1 %v3992_v58 }
 0x461   : > { %3959 = vmatpush1.bf16.msra.mxu0 %v3958_v59  ;;  %v3994_v59 = vpack.c.bf16 %v2314_v42, %v2312_v35 }
 0x462   : > { %3961 = vmatprep.subr.bf16.mxu0 %v3960_v60  ;;  %v3996_v60 = vpack.c.bf16 %v2319_v21, %v2317_v52 }
 0x463   : > { %3995 = vmatpush1.bf16.msra.mxu1 %v3994_v59  ;;  %v2663_v59 = vld [vmem:[%s6041_s6 + $0x80] sm:$0xff] }
 0x464   : > { %3997 = vmatprep.subr.bf16.mxu1 %v3996_v60  ;;  %v2664_v60 = vld [vmem:[%s6041_s6 + $0x88] sm:$0xff] }
 0x465   : > { %3963 = vmatpush1.bf16.msra.mxu0 %v3962_v63  ;;  %v4132_v62 = vpack.c.bf16 %v2664_v60, %v2663_v59 }
 0x467   : > { %3999 = vmatpush1.bf16.msra.mxu1 %v3998_v37  ;;  %4133 = vmatprep.subr.bf16.mxu0 %v4132_v62 }
 0x468   : > { %2121 = vmatmul.mubr.f32.vlgmr.msra.gmra.mrb[8].mxu0 %v2049_v2  ;;  %v2323_v2 = vld [vmem:[#allocation10 + $0x2f8] sm:$0xff] }
 0x469   : > { %v4000_v8 = vpack.c.bf16 %v2323_v2, %v2321_v1  ;;  %v2665_v1 = vld [vmem:[%s6041_s6 + $0x90] sm:$0xff]  ;;  %v2666_v2 = vld [vmem:[%s6041_s6 + $0x98] sm:$0xff] }
 0x46b   : > { %4001 = vmatprep.subr.bf16.mxu1 %v4000_v8  ;;  %v4136_v8 = vpack.c.bf16 %v2666_v2, %v2665_v1  ;;  %v2239_v1 = vld [vmem:[#allocation10 + $0x70] sm:$0xff]  ;;  %v2242_v2 = vld [vmem:[#allocation10 + $0x88] sm:$0xff] }
 0x46c   : > { %4003 = vmatpush1.bf16.msra.mxu1 %v4002_v10 }
 0x46d   : > { %4005 = vmatprep.subr.bf16.mxu1 %v4004_v17  ;;  %v2669_v17 = vld [vmem:[%s6041_s6 + $0xb0] sm:$0xff] }
 0x46e   : > { %v4144_v39 = vpack.c.bf16 %v2670_v0, %v2669_v17  ;;  %v2250_v17 = vld [vmem:[#allocation10 + $0xc8] sm:$0xff]  ;;  %v2252_v0 = vld [vmem:[#allocation10 + $0xd8] sm:$0xff] }
 0x470   : > { %4007 = vmatpush1.bf16.msra.mxu1 %v4006_v18  ;;  %v2654_v18 = vld [vmem:[%s6041_s6 + $0x38] sm:$0xff] }
 0x471   : > { %4009 = vmatprep.subr.bf16.mxu1 %v4008_v6  ;;  %v2672_v6 = vld [vmem:[%s6041_s6 + $0xc8] sm:$0xff] }
 0x474   : > { %4011 = vmatpush1.bf16.msra.mxu1 %v4010_v26 }
 0x475   : > { %4013 = vmatprep.subr.bf16.mxu1 %v4012_v31  ;;  %v2656_v31 = vld [vmem:[%s6041_s6 + $0x48] sm:$0xff] }
 0x476   : > { %v4150_v4 = vpack.c.bf16 %v2656_v31, %v2655_v30  ;;  %v2264_v30 = vld [vmem:[#allocation10 + $0x138] sm:$0xff] }
 0x478   : > { %4015 = vmatpush1.bf16.msra.mxu1 %v4014_v38  ;;  %v2673_v38 = vld [vmem:[%s6041_s6 + $0xd0] sm:$0xff] }
 0x479   : > { %4017 = vmatprep.subr.bf16.mxu1 %v4016_v44  ;;  %v2674_v44 = vld [vmem:[%s6041_s6 + $0xd8] sm:$0xff] }
 0x47c   : > { %4019 = vmatpush1.bf16.msra.mxu1 %v4018_v48 }
 0x47d   : > { %4021 = vmatprep.subr.bf16.mxu1 %v4020_v51  ;;  %v2233_v51 = vld [vmem:[#allocation10 + $0x40] sm:$0xff] }
 0x53b   : > { %v2122_v11 = vpop.f32.mrb[8].mxu0 }
 0x53c   : > { %v2140_v12 = vadd.f32 %v2133_v55, %v2122_v11  ;;  %v2124_v56 = vpop.f32.mrb[9].mxu0  ;;  %v2648_v55 = vld [vmem:[%s6041_s6 + $0x8] sm:$0xff] }
 0x53d   : > { %v2141_v16 = vadd.f32 %v2137_v7, %v2124_v56  ;;  %v4134_v7 = vpack.c.bf16 %v2648_v55, %v2647_v61  ;;  %v2237_v55 = vld [vmem:[#allocation10 + $0x60] sm:$0xff] }
 0x53e   : > { %v2142_v14 = vmax.f32 %v2140_v12, 0.0  ;;  %v2668_v12 = vld [vmem:[%s6041_s6 + $0xa8] sm:$0xff] }
 0x53f   : > { %v2143_v36 = vmax.f32 %v2141_v16, 0.0  ;;  %4135 = vmatpush3.bf16.msra.mxu0 %v4134_v7  ;;  %v4140_v13 = vpack.c.bf16 %v2668_v12, %v2667_v3  ;;  %v2652_v16 = vld [vmem:[%s6041_s6 + $0x28] sm:$0xff]  ;;  %v2244_v7 = vld [vmem:[#allocation10 + $0x98] sm:$0xff]  ;;  %v2241_v3 = vld [vmem:[#allocation10 + $0x80] sm:$0xff] }
 0x540   : > { %v2153_v40 = vrot.slane %v2142_v14, 1  ;;  %4137 = vmatprep.subr.bf16.mxu0 %v4136_v8  ;;  %v4142_v63 = vpack.c.bf16 %v2652_v16, %v2651_v15  ;;  %v2248_v12 = vld [vmem:[#allocation10 + $0xb8] sm:$0xff]  ;;  %v2245_v15 = vld [vmem:[#allocation10 + $0xa0] sm:$0xff]  ;;  %v2247_v16 = vld [vmem:[#allocation10 + $0xb0] sm:$0xff] }
 0x541   : > { %v2154_v22 = vrot.slane %v2143_v36, 1 }
 0x542   : > { %v2157_v25 = vmax.f32 %v2142_v14, %v2153_v40  ;;  %v2653_v14 = vld [vmem:[%s6041_s6 + $0x30] sm:$0xff] }
 0x543   : > { %v2158_v27 = vmax.f32 %v2143_v36, %v2154_v22  ;;  %v2225_v36 = vld [vmem:[#allocation10] sm:$0xff]  ;;  %v2227_v40 = vld [vmem:[#allocation10 + $0x10] sm:$0xff] }
 0x544   : > { %2161 = vrot.lane.b32.xlu0 %v2157_v25, %s4535_s29  ;;  %v2671_v22 = vld [vmem:[%s6041_s6 + $0xc0] sm:$0xff]  ;;  %v4022_v28 = vpack.c.bf16 %v2227_v40, %v2225_v36  ;;  %v2254_v36 = vld [vmem:[#allocation10 + $0xe8] sm:$0xff]  ;;  %v2256_v40 = vld [vmem:[#allocation10 + $0xf8] sm:$0xff] }
 0x545   : > { %2163 = vrot.lane.b32.xlu1 %v2158_v27, %s4535_s29  ;;  %v4148_v34 = vpack.c.bf16 %v2672_v6, %v2671_v22  ;;  %v4048_v20 = vpack.c.bf16 %v2256_v40, %v2254_v36  ;;  %v2253_v22 = vld [vmem:[#allocation10 + $0xe0] sm:$0xff]  ;;  %v2255_v6 = vld [vmem:[#allocation10 + $0xf0] sm:$0xff]  ;;  %v2508_v40 = vld [vmem:[#allocation10 + $0x3e8] sm:$0xff] }
 0x546   : > { %v2505_v36 = vld [vmem:[#allocation10 + $0x3d0] sm:$0xff] }
 0x5b6   : > { %v2162_v53 = vpop.permute.xlu0 %2161 }
 0x5b7   : > { %v2164_v54 = vpop.permute.xlu1 %2163 }
 0x5b8   : > { %v2166_v57 = vsel %vm2165_vm9, %v2162_v53, %v2164_v54  ;;  %v2170_v5 = vmax.f32 %v2158_v27, %v2164_v54  ;;  %v4152_v53 = vpack.c.bf16 %v2674_v44, %v2673_v38  ;;  %v2657_v54 = vld [vmem:[%s6041_s6 + $0x50] sm:$0xff]  ;;  %v2266_v38 = vld [vmem:[#allocation10 + $0x148] sm:$0xff]  ;;  %v2268_v44 = vld [vmem:[#allocation10 + $0x158] sm:$0xff] }
 0x5b9   : > { %v2169_v58 = vmax.f32 %v2157_v25, %v2166_v57  ;;  %v4146_v25 = vpack.c.bf16 %v2654_v18, %v2653_v14  ;;  %v2658_v57 = vld [vmem:[%s6041_s6 + $0x58] sm:$0xff]  ;;  %v2249_v14 = vld [vmem:[#allocation10 + $0xc0] sm:$0xff]  ;;  %v2251_v18 = vld [vmem:[#allocation10 + $0xd0] sm:$0xff] }
 0x5ba   : > { %v4154_v59 = vpack.c.bf16 %v2658_v57, %v2657_v54  ;;  %v4046_v19 = vpack.c.bf16 %v2251_v18, %v2249_v14  ;;  %v2269_v57 = vld [vmem:[#allocation10 + $0x160] sm:$0xff] }
 0x5bb   : > { %v2173_v35 = vcombine.low %v2169_v58, %v2170_v5  ;;  %v2197_v42 = vcombine.high %v2169_v58, %v2170_v5  ;;  %v4028_v5 = vpack.c.bf16 %v2236_v46, %v2234_v45  ;;  %v2235_v58 = vld [vmem:[#allocation10 + $0x50] sm:$0xff]  ;;  %v4060_v46 = vpack.c.bf16 %v2268_v44, %v2266_v38  ;;  %v2503_v18 = vld [vmem:[#allocation10 + $0x3c0] sm:$0xff]  ;;  %v2520_v44 = vld [vmem:[#allocation10 + $0x448] sm:$0xff] }
 0x5bc   : > { %v4030_v60 = vpack.c.bf16 %v2235_v58, %v2233_v51  ;;  %v2272_v51 = vld [vmem:[#allocation10 + $0x178] sm:$0xff]  ;;  %v2274_v58 = vld [vmem:[#allocation10 + $0x188] sm:$0xff]  ;;  %v2517_v38 = vld [vmem:[#allocation10 + $0x430] sm:$0xff] }
 0x5bd   : > { %v2180_v52 = vrot.slane %v2173_v35, %v4886_v41  ;;  %v2204_v21 = vrot.slane %v2197_v42, %v4886_v41  ;;  %v2675_v35 = vld [vmem:[%s6041_s6 + $0xe0] sm:$0xff]  ;;  %v2676_v42 = vld [vmem:[%s6041_s6 + $0xe8] sm:$0xff] }
 0x5be   : > { %v4156_v61 = vpack.c.bf16 %v2676_v42, %v2675_v35  ;;  %v2276_v35 = vld [vmem:[#allocation10 + $0x198] sm:$0xff] }
 0x5bf   : > { %v2187_v50 = vrot.slane %v2180_v52, %v4886_v41  ;;  %v2211_v37 = vrot.slane %v2204_v21, %v4886_v41  ;;  %v2650_v41 = vld [vmem:[%s6041_s6 + $0x18] sm:$0xff]  ;;  %v2238_v52 = vld [vmem:[#allocation10 + $0x68] sm:$0xff] }
 0x5c0   : > { %v4138_v56 = vpack.c.bf16 %v2650_v41, %v2649_v9  ;;  %v2240_v21 = vld [vmem:[#allocation10 + $0x78] sm:$0xff]  ;;  %v4034_v9 = vpack.c.bf16 %v2239_v1, %v2237_v55  ;;  %v4036_v41 = vpack.c.bf16 %v2244_v7, %v2242_v2  ;;  %v2279_v55 = vld [vmem:[#allocation10 + $0x1b0] sm:$0xff]  ;;  %v2496_v1 = vld [vmem:[#allocation10 + $0x388] sm:$0xff] }
 0x5c1   : > { %2190 = vst.msk [vmem:[#allocation4 + $0x1] ss:$8 sm:$0x3] %vm5556_vm8, %v2187_v50  ;;  %v2192_v10 = vcombine.high %v2187_v50, %v2187_v50  ;;  %2214 = vst.msk [vmem:[#allocation4 + $0x3] ss:$8 sm:$0x3] %vm5556_vm8, %v2211_v37  ;;  %v2216_v11 = vcombine.high %v2211_v37, %v2211_v37  ;;  %v4032_v62 = vpack.c.bf16 %v2240_v21, %v2238_v52 }
 0x5c2   : > { %4139 = vmatpush3.bf16.msra.mxu0 %v4138_v56  ;;  %v2659_v50 = vld [vmem:[%s6041_s6 + $0x60] sm:$0xff]  ;;  %v2660_v37 = vld [vmem:[%s6041_s6 + $0x68] sm:$0xff]  ;;  %v4068_v52 = vpack.c.bf16 %v2276_v35, %v2274_v58  ;;  %v2498_v2 = vld [vmem:[#allocation10 + $0x398] sm:$0xff] }
 0x5c3   : > { %2195 = vst.msk [vmem:[#allocation4 + $0x2] ss:$8 sm:$0x3] %vm5556_vm8, %v2192_v10  ;;  %2219 = vst.msk [vmem:[#allocation4 + $0x4] ss:$8 sm:$0x3] %vm5556_vm8, %v2216_v11  ;;  %4141 = vmatprep.subr.bf16.mxu0 %v4140_v13  ;;  %v4158_v8 = vpack.c.bf16 %v2660_v37, %v2659_v50 }
 0x5c4   : > { %v2243_v10 = vld [vmem:[#allocation10 + $0x90] sm:$0xff]  ;;  %v2246_v11 = vld [vmem:[#allocation10 + $0xa8] sm:$0xff]  ;;  %v2273_v21 = vld [vmem:[#allocation10 + $0x180] sm:$0xff] }
 0x5c5   : > { %v4038_v56 = vpack.c.bf16 %v2243_v10, %v2241_v3  ;;  %v4040_v13 = vpack.c.bf16 %v2248_v12, %v2246_v11  ;;  %v2500_v3 = vld [vmem:[#allocation10 + $0x3a8] sm:$0xff]  ;;  %v2502_v10 = vld [vmem:[#allocation10 + $0x3b8] sm:$0xff]  ;;  %v2525_v58 = vld [vmem:[#allocation10 + $0x470] sm:$0xff] }
 0x5c6   : > { %4143 = vmatpush3.bf16.msra.mxu0 %v4142_v63  ;;  %v4042_v63 = vpack.c.bf16 %v2247_v16, %v2245_v15  ;;  %v2501_v15 = vld [vmem:[#allocation10 + $0x3b0] sm:$0xff]  ;;  %v2528_v35 = vld [vmem:[#allocation10 + $0x488] sm:$0xff] }
 0x5c7   : > { %4145 = vmatprep.subr.bf16.mxu0 %v4144_v39  ;;  %v4044_v39 = vpack.c.bf16 %v2252_v0, %v2250_v17  ;;  %v2504_v0 = vld [vmem:[#allocation10 + $0x3c8] sm:$0xff] }
 0x5ca   : > { %v2282_v23 = vld [vmem:[#allocation4 + $0x8] sm:$0x1e]  ;;  %v2281_v24 = vld [vmem:[#allocation4] sm:$0x1e]  ;;  %4147 = vmatpush3.bf16.msra.mxu0 %v4146_v25  ;;  %v4050_v25 = vpack.c.bf16 %v2255_v6, %v2253_v22  ;;  %v2507_v6 = vld [vmem:[#allocation10 + $0x3e0] sm:$0xff] }
 0x5cb   : > { %v2343_v26 = vrot.slane %v2282_v23, 1  ;;  %v2342_v27 = vrot.slane %v2281_v24, 1  ;;  %v2224_v48 = vld [vmem:[#allocation4 + $0x8] sm:$0xf]  ;;  %4149 = vmatprep.subr.bf16.mxu0 %v4148_v34  ;;  %v2258_v23 = vld [vmem:[#allocation10 + $0x108] sm:$0xff]  ;;  %v2263_v34 = vld [vmem:[#allocation10 + $0x130] sm:$0xff] }
 0x5cc   : > { %v2260_v24 = vld [vmem:[#allocation10 + $0x118] sm:$0xff]  ;;  %v4058_v45 = vpack.c.bf16 %v2263_v34, %v2261_v33  ;;  %v2223_v16 = vld [vmem:[#allocation4] sm:$0xf]  ;;  %v2515_v34 = vld [vmem:[#allocation10 + $0x420] sm:$0xff] }
 0x5cd   : > { %3338 = vmatprep.mubr.msk.f32.mxu1 %vm2165_vm9, %v2343_v26  ;;  %v4052_v26 = vpack.c.bf16 %v2260_v24, %v2258_v23  ;;  %v2493_v11 = vld [vmem:[#allocation4 + $0x8] sm:$0x3c]  ;;  %v2509_v23 = vld [vmem:[#allocation10 + $0x3f0] sm:$0xff]  ;;  %v2512_v24 = vld [vmem:[#allocation10 + $0x408] sm:$0xff] }
 0x5ce   : > { %2412 = vmatmul.mubr.f32.vlgmr.msra.gmra.mrb[4].mxu1 %v2342_v27  ;;  %4151 = vmatpush3.bf16.msra.mxu0 %v4150_v4  ;;  %v2257_v27 = vld [vmem:[#allocation10 + $0x100] sm:$0xff]  ;;  %v2267_v4 = vld [vmem:[#allocation10 + $0x150] sm:$0xff]  ;;  %v2554_v17 = vrot.slane %v2493_v11, 2  ;;  %v2542_v11 = vld [vmem:[#allocation10 + $0x4f8] sm:$0xff] }
 0x5cf   : > { %4023 = vmatpush1.bf16.msra.mxu1 %v4022_v28  ;;  %3339 = vmatprep.mubr.msk.f32.mxu1 %vm2165_vm9, %v2224_v48  ;;  %v2259_v28 = vld [vmem:[#allocation10 + $0x110] sm:$0xff]  ;;  %v2265_v48 = vld [vmem:[#allocation10 + $0x140] sm:$0xff] }
 0x5d0   : > { %4025 = vmatprep.subr.bf16.mxu1 %v4024_v32  ;;  %4153 = vmatprep.subr.bf16.mxu0 %v4152_v53  ;;  %v4054_v31 = vpack.c.bf16 %v2259_v28, %v2257_v27  ;;  %v4056_v32 = vpack.c.bf16 %v2264_v30, %v2262_v29  ;;  %v4062_v53 = vpack.c.bf16 %v2267_v4, %v2265_v48  ;;  %v2511_v28 = vld [vmem:[#allocation10 + $0x400] sm:$0xff]  ;;  %v2513_v29 = vld [vmem:[#allocation10 + $0x410] sm:$0xff]  ;;  %v2516_v30 = vld [vmem:[#allocation10 + $0x428] sm:$0xff] }
 0x5d1   : > { %v2519_v4 = vld [vmem:[#allocation10 + $0x440] sm:$0xff] }
 0x5d2   : > { %4155 = vmatpush3.bf16.msra.mxu0 %v4154_v59  ;;  %v2275_v59 = vld [vmem:[#allocation10 + $0x190] sm:$0xff] }
 0x5d3   : > { %4027 = vmatpush1.bf16.msra.mxu1 %v4026_v49  ;;  %4157 = vmatprep.subr.bf16.mxu0 %v4156_v61  ;;  %v2270_v49 = vld [vmem:[#allocation10 + $0x168] sm:$0xff]  ;;  %v2280_v61 = vld [vmem:[#allocation10 + $0x1b8] sm:$0xff]  ;;  %v4070_v50 = vpack.c.bf16 %v2275_v59, %v2273_v21  ;;  %v2527_v59 = vld [vmem:[#allocation10 + $0x480] sm:$0xff] }
 0x5d4   : > { %4029 = vmatprep.subr.bf16.mxu1 %v4028_v5  ;;  %v4064_v54 = vpack.c.bf16 %v2272_v51, %v2270_v49  ;;  %v2271_v5 = vld [vmem:[#allocation10 + $0x170] sm:$0xff]  ;;  %v2524_v51 = vld [vmem:[#allocation10 + $0x468] sm:$0xff] }
 0x5d5   : > { %v4066_v42 = vpack.c.bf16 %v2271_v5, %v2269_v57  ;;  %v2521_v49 = vld [vmem:[#allocation10 + $0x450] sm:$0xff]  ;;  %v2523_v5 = vld [vmem:[#allocation10 + $0x460] sm:$0xff] }
 0x5d6   : > { %4159 = vmatpush3.bf16.msra.mxu0 %v4158_v8  ;;  %v4076_v8 = vpack.c.bf16 %v2498_v2, %v2496_v1  ;;  %v2533_v1 = vld [vmem:[#allocation10 + $0x4b0] sm:$0xff]  ;;  %v2536_v2 = vld [vmem:[#allocation10 + $0x4c8] sm:$0xff] }
 0x5d7   : > { %4031 = vmatpush1.bf16.msra.mxu1 %v4030_v60  ;;  %v2278_v60 = vld [vmem:[#allocation10 + $0x1a8] sm:$0xff] }
 0x5d8   : > { %4033 = vmatprep.subr.bf16.mxu1 %v4032_v62  ;;  %v4072_v37 = vpack.c.bf16 %v2280_v61, %v2278_v60  ;;  %v2277_v62 = vld [vmem:[#allocation10 + $0x1a0] sm:$0xff]  ;;  %v2529_v60 = vld [vmem:[#allocation10 + $0x490] sm:$0xff]  ;;  %v2532_v61 = vld [vmem:[#allocation10 + $0x4a8] sm:$0xff] }
 0x5d9   : > { %v4074_v7 = vpack.c.bf16 %v2279_v55, %v2277_v62  ;;  %v2531_v55 = vld [vmem:[#allocation10 + $0x4a0] sm:$0xff] }
 0x5db   : > { %4035 = vmatpush1.bf16.msra.mxu1 %v4034_v9  ;;  %v2495_v9 = vld [vmem:[#allocation10 + $0x380] sm:$0xff] }
 0x5dc   : > { %4037 = vmatprep.subr.bf16.mxu1 %v4036_v41  ;;  %v2497_v41 = vld [vmem:[#allocation10 + $0x390] sm:$0xff] }
 0x5dd   : > { %v4078_v12 = vpack.c.bf16 %v2497_v41, %v2495_v9  ;;  %v2535_v41 = vld [vmem:[#allocation10 + $0x4c0] sm:$0xff] }
 0x5df   : > { %4039 = vmatpush1.bf16.msra.mxu1 %v4038_v56  ;;  %v4080_v56 = vpack.c.bf16 %v2502_v10, %v2500_v3  ;;  %v2537_v3 = vld [vmem:[#allocation10 + $0x4d0] sm:$0xff]  ;;  %v2540_v10 = vld [vmem:[#allocation10 + $0x4e8] sm:$0xff] }
 0x5e0   : > { %4041 = vmatprep.subr.bf16.mxu1 %v4040_v13  ;;  %v2499_v13 = vld [vmem:[#allocation10 + $0x3a0] sm:$0xff] }
 0x5e3   : > { %4043 = vmatpush1.bf16.msra.mxu1 %v4042_v63  ;;  %v2506_v63 = vld [vmem:[#allocation10 + $0x3d8] sm:$0xff] }
 0x5e4   : > { %4045 = vmatprep.subr.bf16.mxu1 %v4044_v39  ;;  %v4082_v39 = vpack.c.bf16 %v2501_v15, %v2499_v13  ;;  %v4084_v14 = vpack.c.bf16 %v2506_v63, %v2504_v0  ;;  %v2539_v13 = vld [vmem:[#allocation10 + $0x4e0] sm:$0xff]  ;;  %v2541_v15 = vld [vmem:[#allocation10 + $0x4f0] sm:$0xff] }
 0x5e5   : > { %v4122_v0 = vpack.c.bf16 %v2541_v15, %v2539_v13 }
 0x5e7   : > { %4047 = vmatpush1.bf16.msra.mxu1 %v4046_v19  ;;  %v2510_v19 = vld [vmem:[#allocation10 + $0x3f8] sm:$0xff] }
 0x5e8   : > { %4049 = vmatprep.subr.bf16.mxu1 %v4048_v20  ;;  %v4086_v20 = vpack.c.bf16 %v2505_v36, %v2503_v18  ;;  %v4088_v22 = vpack.c.bf16 %v2510_v19, %v2508_v40  ;;  %v2548_v18 = vld [vmem:[#allocation10 + $0x528] sm:$0xff]  ;;  %v2550_v36 = vld [vmem:[#allocation10 + $0x538] sm:$0xff] }
 0x5e9   : > { %v4128_v19 = vpack.c.bf16 %v2550_v36, %v2548_v18  ;;  %v3353_v18 = vld [vmem:[%s6041_s6 + $0x160] sm:$0xff]  ;;  %v3354_v36 = vld [vmem:[%s6041_s6 + $0x168] sm:$0xff] }
 0x5eb   : > { %4051 = vmatpush1.bf16.msra.mxu1 %v4050_v25  ;;  %v2514_v25 = vld [vmem:[#allocation10 + $0x418] sm:$0xff] }
 0x5ec   : > { %4053 = vmatprep.subr.bf16.mxu1 %v4052_v26  ;;  %v4090_v26 = vpack.c.bf16 %v2509_v23, %v2507_v6  ;;  %v4092_v27 = vpack.c.bf16 %v2514_v25, %v2512_v24  ;;  %v2492_v23 = vld [vmem:[#allocation4] sm:$0x3c] }
 0x5ed   : > { %v2553_v24 = vrot.slane %v2492_v23, 2  ;;  %v2677_v25 = vld [vmem:[%s6041_s6 + $0xf0] sm:$0xff]  ;;  %v3356_v23 = vld [vmem:[%s6041_s6 + $0x178] sm:$0xff] }
 0x5ef   : > { %4055 = vmatpush1.bf16.msra.mxu1 %v4054_v31  ;;  %v2518_v31 = vld [vmem:[#allocation10 + $0x438] sm:$0xff] }
 0x5f0   : > { %4057 = vmatprep.subr.bf16.mxu1 %v4056_v32  ;;  %v4094_v32 = vpack.c.bf16 %v2513_v29, %v2511_v28  ;;  %v4096_v33 = vpack.c.bf16 %v2518_v31, %v2516_v30  ;;  %v2661_v28 = vld [vmem:[%s6041_s6 + $0x70] sm:$0xff]  ;;  %v2662_v29 = vld [vmem:[%s6041_s6 + $0x78] sm:$0xff]  ;;  %v3357_v31 = vld [vmem:[%s6041_s6 + $0x180] sm:$0xff] }
 0x5f1   : > { %v4162_v30 = vpack.c.bf16 %v2662_v29, %v2661_v28  ;;  %v3373_v28 = vld [vmem:[%s6041_s6 + $0x200] sm:$0xff]  ;;  %v3374_v29 = vld [vmem:[%s6041_s6 + $0x208] sm:$0xff] }
 0x5f3   : > { %4059 = vmatpush1.bf16.msra.mxu1 %v4058_v45  ;;  %v2522_v45 = vld [vmem:[#allocation10 + $0x458] sm:$0xff] }
 0x5f4   : > { %4061 = vmatprep.subr.bf16.mxu1 %v4060_v46  ;;  %v4098_v46 = vpack.c.bf16 %v2517_v38, %v2515_v34  ;;  %v4100_v48 = vpack.c.bf16 %v2522_v45, %v2520_v44  ;;  %v3337_v34 = vld [vmem:[%s6040_s5 + $0x3] ss:$4 sm:$0x3] }
 0x5f5   : > { %v2635_v38 = vrot.slane %v3337_v34, %v4835_v43  ;;  %v2639_v44 = vrot.slane %v3337_v34, %v4841_v47  ;;  %v3360_v43 = vld [vmem:[%s6041_s6 + $0x198] sm:$0xff] }
 0x5f7   : > { %4063 = vmatpush1.bf16.msra.mxu1 %v4062_v53  ;;  %v2526_v53 = vld [vmem:[#allocation10 + $0x478] sm:$0xff] }
 0x5f8   : > { %4065 = vmatprep.subr.bf16.mxu1 %v4064_v54  ;;  %v4102_v54 = vpack.c.bf16 %v2521_v49, %v2519_v4  ;;  %v4104_v57 = vpack.c.bf16 %v2526_v53, %v2524_v51  ;;  %v3341_v4 = vld [vmem:[%s6041_s6 + $0x100] sm:$0xff]  ;;  %v3342_v49 = vld [vmem:[%s6041_s6 + $0x108] sm:$0xff]  ;;  %v3359_v53 = vld [vmem:[%s6041_s6 + $0x190] sm:$0xff] }
 0x5fb   : > { %4067 = vmatpush1.bf16.msra.mxu1 %v4066_v42  ;;  %v2530_v42 = vld [vmem:[#allocation10 + $0x498] sm:$0xff] }
 0x5fc   : > { %4069 = vmatprep.subr.bf16.mxu1 %v4068_v52  ;;  %v4106_v52 = vpack.c.bf16 %v2525_v58, %v2523_v5  ;;  %v4108_v21 = vpack.c.bf16 %v2530_v42, %v2528_v35  ;;  %v4168_v5 = vpack.c.bf16 %v3360_v43, %v3359_v53  ;;  %v3343_v58 = vld [vmem:[%s6041_s6 + $0x110] sm:$0xff]  ;;  %v3344_v35 = vld [vmem:[%s6041_s6 + $0x118] sm:$0xff]  ;;  %v3378_v53 = vld [vmem:[%s6041_s6 + $0x228] sm:$0xff] }
 0x5fd   : > { %v3395_v43 = vld [vmem:[%s6041_s6 + $0x2b0] sm:$0xff] }
 0x5ff   : > { %4071 = vmatpush1.bf16.msra.mxu1 %v4070_v50  ;;  %v2534_v50 = vld [vmem:[#allocation10 + $0x4b8] sm:$0xff] }
 0x600   : > { %4073 = vmatprep.subr.bf16.mxu1 %v4072_v37  ;;  %v4110_v37 = vpack.c.bf16 %v2529_v60, %v2527_v59  ;;  %v4112_v62 = vpack.c.bf16 %v2534_v50, %v2532_v61  ;;  %v4170_v59 = vpack.c.bf16 %v3344_v35, %v3343_v58  ;;  %v3345_v61 = vld [vmem:[%s6041_s6 + $0x120] sm:$0xff]  ;;  %v3346_v50 = vld [vmem:[%s6041_s6 + $0x128] sm:$0xff]  ;;  %v3379_v35 = vld [vmem:[%s6041_s6 + $0x230] sm:$0xff] }
 0x603   : > { %4075 = vmatpush1.bf16.msra.mxu1 %v4074_v7  ;;  %v2538_v7 = vld [vmem:[#allocation10 + $0x4d8] sm:$0xff] }
 0x604   : > { %4077 = vmatprep.subr.bf16.mxu1 %v4076_v8  ;;  %v4114_v8 = vpack.c.bf16 %v2533_v1, %v2531_v55  ;;  %v4116_v9 = vpack.c.bf16 %v2538_v7, %v2536_v2  ;;  %v4174_v55 = vpack.c.bf16 %v3346_v50, %v3345_v61  ;;  %v3347_v2 = vld [vmem:[%s6041_s6 + $0x130] sm:$0xff]  ;;  %v3348_v7 = vld [vmem:[%s6041_s6 + $0x138] sm:$0xff]  ;;  %v3381_v61 = vld [vmem:[%s6041_s6 + $0x240] sm:$0xff] }
 0x605   : > { %v3382_v50 = vld [vmem:[%s6041_s6 + $0x248] sm:$0xff] }
 0x606   : > { %2486 = vmatmul.mubr.f32.vlgmr.msra.gmra.mrb[4].mxu1 %v2223_v16  ;;  %v2544_v16 = vld [vmem:[#allocation10 + $0x508] sm:$0xff] }
 0x607   : > { %4079 = vmatpush1.bf16.msra.mxu1 %v4078_v12  ;;  %3340 = vmatprep.mubr.msk.f32.mxu1 %vm2165_vm9, %v2554_v17  ;;  %v4118_v12 = vpack.c.bf16 %v2537_v3, %v2535_v41  ;;  %v2546_v17 = vld [vmem:[#allocation10 + $0x518] sm:$0xff]  ;;  %v4178_v41 = vpack.c.bf16 %v3348_v7, %v3347_v2  ;;  %v3383_v2 = vld [vmem:[%s6041_s6 + $0x250] sm:$0xff] }
 0x608   : > { %4081 = vmatprep.subr.bf16.mxu1 %v4080_v56  ;;  %v4120_v56 = vpack.c.bf16 %v2542_v11, %v2540_v10  ;;  %v4124_v63 = vpack.c.bf16 %v2546_v17, %v2544_v16  ;;  %v3349_v10 = vld [vmem:[%s6041_s6 + $0x140] sm:$0xff]  ;;  %v3350_v11 = vld [vmem:[%s6041_s6 + $0x148] sm:$0xff]  ;;  %v3351_v16 = vld [vmem:[%s6041_s6 + $0x150] sm:$0xff] }
 0x609   : > { %v4182_v13 = vpack.c.bf16 %v3350_v11, %v3349_v10  ;;  %v3352_v17 = vld [vmem:[%s6041_s6 + $0x158] sm:$0xff]  ;;  %v3385_v10 = vld [vmem:[%s6041_s6 + $0x260] sm:$0xff]  ;;  %v3386_v11 = vld [vmem:[%s6041_s6 + $0x268] sm:$0xff] }
 0x60a   : > { %v3384_v7 = vld [vmem:[%s6041_s6 + $0x258] sm:$0xff] }
 0x60b   : > { %4083 = vmatpush1.bf16.msra.mxu1 %v4082_v39  ;;  %v2543_v39 = vld [vmem:[#allocation10 + $0x500] sm:$0xff] }
 0x60c   : > { %4085 = vmatprep.subr.bf16.mxu1 %v4084_v14  ;;  %v2545_v14 = vld [vmem:[#allocation10 + $0x510] sm:$0xff] }
 0x60d   : > { %v4126_v40 = vpack.c.bf16 %v2545_v14, %v2543_v39  ;;  %v4186_v39 = vpack.c.bf16 %v3352_v17, %v3351_v16  ;;  %v3387_v16 = vld [vmem:[%s6041_s6 + $0x270] sm:$0xff]  ;;  %v3388_v17 = vld [vmem:[%s6041_s6 + $0x278] sm:$0xff] }
 0x60f   : > { %4087 = vmatpush1.bf16.msra.mxu1 %v4086_v20  ;;  %v2547_v20 = vld [vmem:[#allocation10 + $0x520] sm:$0xff] }
 0x610   : > { %4089 = vmatprep.subr.bf16.mxu1 %v4088_v22  ;;  %v2549_v22 = vld [vmem:[#allocation10 + $0x530] sm:$0xff] }
 0x611   : > { %v4130_v6 = vpack.c.bf16 %v2549_v22, %v2547_v20  ;;  %v4190_v20 = vpack.c.bf16 %v3354_v36, %v3353_v18  ;;  %v3405_v18 = vld [vmem:[%s6041_s6 + $0x300] sm:$0xff]  ;;  %v3406_v36 = vld [vmem:[%s6041_s6 + $0x308] sm:$0xff] }
 0x613   : > { %4091 = vmatpush1.bf16.msra.mxu1 %v4090_v26  ;;  %v2678_v26 = vld [vmem:[%s6041_s6 + $0xf8] sm:$0xff] }
 0x614   : > { %4093 = vmatprep.subr.bf16.mxu1 %v4092_v27  ;;  %v4160_v27 = vpack.c.bf16 %v2678_v26, %v2677_v25  ;;  %v3390_v25 = vld [vmem:[%s6041_s6 + $0x288] sm:$0xff] }
 0x616   : > { %4161 = vmatprep.subr.bf16.mxu0 %v4160_v27 }
 0x617   : > { %4095 = vmatpush1.bf16.msra.mxu1 %v4094_v32  ;;  %4163 = vmatpush3.bf16.msra.mxu0 %v4162_v30  ;;  %v3358_v32 = vld [vmem:[%s6041_s6 + $0x188] sm:$0xff]  ;;  %v3391_v30 = vld [vmem:[%s6041_s6 + $0x290] sm:$0xff] }
 0x618   : > { %4097 = vmatprep.subr.bf16.mxu1 %v4096_v33  ;;  %v4164_v33 = vpack.c.bf16 %v3358_v32, %v3357_v31  ;;  %v3392_v31 = vld [vmem:[%s6041_s6 + $0x298] sm:$0xff]  ;;  %v4198_v32 = vpack.c.bf16 %v3374_v29, %v3373_v28 }
 0x619   : > { %v4200_v34 = vpack.c.bf16 %v3392_v31, %v3391_v30  ;;  %v3409_v30 = vld [vmem:[%s6041_s6 + $0x320] sm:$0xff]  ;;  %v3427_v31 = vld [vmem:[%s6041_s6 + $0x3b0] sm:$0xff] }
 0x61a   : > { %4165 = vmatprep.subr.bf16.mxu0 %v4164_v33 }
 0x61b   : > { %4099 = vmatpush1.bf16.msra.mxu1 %v4098_v46 }
 0x61c   : > { %4101 = vmatprep.subr.bf16.mxu1 %v4100_v48 }
 0x61f   : > { %4103 = vmatpush1.bf16.msra.mxu1 %v4102_v54  ;;  %v4166_v54 = vpack.c.bf16 %v3342_v49, %v3341_v4 }
 0x620   : > { %4105 = vmatprep.subr.bf16.mxu1 %v4104_v57 }
 0x623   : > { %4107 = vmatpush1.bf16.msra.mxu1 %v4106_v52  ;;  %v3361_v52 = vld [vmem:[%s6041_s6 + $0x1a0] sm:$0xff] }
 0x624   : > { %4109 = vmatprep.subr.bf16.mxu1 %v4108_v21  ;;  %v3362_v21 = vld [vmem:[%s6041_s6 + $0x1a8] sm:$0xff] }
 0x625   : > { %v4172_v60 = vpack.c.bf16 %v3362_v21, %v3361_v52  ;;  %v3397_v52 = vld [vmem:[%s6041_s6 + $0x2c0] sm:$0xff]  ;;  %v3398_v21 = vld [vmem:[%s6041_s6 + $0x2c8] sm:$0xff] }
 0x627   : > { %4111 = vmatpush1.bf16.msra.mxu1 %v4110_v37  ;;  %v3363_v37 = vld [vmem:[%s6041_s6 + $0x1b0] sm:$0xff] }
 0x628   : > { %4113 = vmatprep.subr.bf16.mxu1 %v4112_v62  ;;  %v3364_v62 = vld [vmem:[%s6041_s6 + $0x1b8] sm:$0xff] }
 0x629   : > { %v4176_v1 = vpack.c.bf16 %v3364_v62, %v3363_v37  ;;  %v3399_v37 = vld [vmem:[%s6041_s6 + $0x2d0] sm:$0xff]  ;;  %v3400_v62 = vld [vmem:[%s6041_s6 + $0x2d8] sm:$0xff] }
 0x62b   : > { %4115 = vmatpush1.bf16.msra.mxu1 %v4114_v8  ;;  %v3365_v8 = vld [vmem:[%s6041_s6 + $0x1c0] sm:$0xff] }
 0x62c   : > { %4117 = vmatprep.subr.bf16.mxu1 %v4116_v9  ;;  %v3366_v9 = vld [vmem:[%s6041_s6 + $0x1c8] sm:$0xff] }
 0x62d   : > { %v4180_v3 = vpack.c.bf16 %v3366_v9, %v3365_v8  ;;  %v3401_v8 = vld [vmem:[%s6041_s6 + $0x2e0] sm:$0xff]  ;;  %v3402_v9 = vld [vmem:[%s6041_s6 + $0x2e8] sm:$0xff] }
 0x62f   : > { %4119 = vmatpush1.bf16.msra.mxu1 %v4118_v12  ;;  %v3367_v12 = vld [vmem:[%s6041_s6 + $0x1d0] sm:$0xff] }
 0x630   : > { %4121 = vmatprep.subr.bf16.mxu1 %v4120_v56  ;;  %v3368_v56 = vld [vmem:[%s6041_s6 + $0x1d8] sm:$0xff] }
 0x631   : > { %v4184_v15 = vpack.c.bf16 %v3368_v56, %v3367_v12  ;;  %v3403_v12 = vld [vmem:[%s6041_s6 + $0x2f0] sm:$0xff]  ;;  %v3404_v56 = vld [vmem:[%s6041_s6 + $0x2f8] sm:$0xff] }
 0x633   : > { %4123 = vmatpush1.bf16.msra.mxu1 %v4122_v0  ;;  %v3369_v0 = vld [vmem:[%s6041_s6 + $0x1e0] sm:$0xff] }
 0x634   : > { %4125 = vmatprep.subr.bf16.mxu1 %v4124_v63  ;;  %v3370_v63 = vld [vmem:[%s6041_s6 + $0x1e8] sm:$0xff] }
 0x635   : > { %v4188_v14 = vpack.c.bf16 %v3370_v63, %v3369_v0  ;;  %v3421_v0 = vld [vmem:[%s6041_s6 + $0x380] sm:$0xff]  ;;  %v3422_v63 = vld [vmem:[%s6041_s6 + $0x388] sm:$0xff] }
 0x637   : > { %4127 = vmatpush1.bf16.msra.mxu1 %v4126_v40  ;;  %v3371_v40 = vld [vmem:[%s6041_s6 + $0x1f0] sm:$0xff] }
 0x638   : > { %4129 = vmatprep.subr.bf16.mxu1 %v4128_v19  ;;  %v3372_v19 = vld [vmem:[%s6041_s6 + $0x1f8] sm:$0xff] }
 0x639   : > { %v4192_v22 = vpack.c.bf16 %v3372_v19, %v3371_v40  ;;  %v3423_v40 = vld [vmem:[%s6041_s6 + $0x390] sm:$0xff]  ;;  %v3424_v19 = vld [vmem:[%s6041_s6 + $0x398] sm:$0xff] }
 0x63b   : > { %4131 = vmatpush1.bf16.msra.mxu1 %v4130_v6  ;;  %v3355_v6 = vld [vmem:[%s6041_s6 + $0x170] sm:$0xff] }
 0x63c   : > { %v4194_v26 = vpack.c.bf16 %v3356_v23, %v3355_v6  ;;  %v4232_v6 = vpack.c.bf16 %v3424_v19, %v3423_v40  ;;  %v3407_v23 = vld [vmem:[%s6041_s6 + $0x310] sm:$0xff] }
 0x63e   : > { %2623 = vmatmul.mubr.f32.vlgmr.msra.gmra.mrb[4].mxu1 %v2553_v24  ;;  %v3389_v24 = vld [vmem:[%s6041_s6 + $0x280] sm:$0xff] }
 0x63f   : > { %v4196_v27 = vpack.c.bf16 %v3390_v25, %v3389_v24  ;;  %v3408_v24 = vld [vmem:[%s6041_s6 + $0x318] sm:$0xff] }
 0x640   : > { %v4234_v28 = vpack.c.bf16 %v3408_v24, %v3407_v23 }
 0x711   : > { %v2624_v45 = vpop.f32.mrb[4].mxu1 }
 0x712   : > { %v2642_v46 = vadd.f32 %v2635_v38, %v2624_v45  ;;  %v2626_v48 = vpop.f32.mrb[5].mxu1  ;;  %v3375_v38 = vld [vmem:[%s6041_s6 + $0x210] sm:$0xff] }
 0x713   : > { %v2643_v51 = vadd.f32 %v2639_v44, %v2626_v48  ;;  %v3376_v44 = vld [vmem:[%s6041_s6 + $0x218] sm:$0xff]  ;;  %v3394_v48 = vld [vmem:[%s6041_s6 + $0x2a8] sm:$0xff] }
 0x714   : > { %v5705_v57 = vmax.f32 %v2642_v46, 0.0  ;;  %v3393_v46 = vld [vmem:[%s6041_s6 + $0x2a0] sm:$0xff]  ;;  %v4202_v4 = vpack.c.bf16 %v3376_v44, %v3375_v38  ;;  %v3411_v38 = vld [vmem:[%s6041_s6 + $0x330] sm:$0xff]  ;;  %v3412_v44 = vld [vmem:[%s6041_s6 + $0x338] sm:$0xff] }
 0x715   : > { %v5703_v47 = vmax.f32 %v2643_v51, 0.0  ;;  %v4204_v49 = vpack.c.bf16 %v3394_v48, %v3393_v46  ;;  %v3377_v51 = vld [vmem:[%s6041_s6 + $0x220] sm:$0xff]  ;;  %v3430_v46 = vld [vmem:[%s6041_s6 + $0x3c8] sm:$0xff]  ;;  %v4242_v48 = vpack.c.bf16 %v3412_v44, %v3411_v38 }
 0x716   : > { %v2785_v33 = vrot.slane %v5705_v57, 1 }
 0x717   : > { %2743 = vmatprep.mubr.f32.mxu0 %v5703_v47  ;;  %v2786_v42 = vrot.slane %v5703_v47, 1  ;;  %v2894_v45 = vrot.slane %v5703_v47, 2  ;;  %v3002_v25 = vrot.slane %v5703_v47, 3  ;;  %v3410_v47 = vld [vmem:[%s6041_s6 + $0x328] sm:$0xff] }
 0x718   : > { %2744 = vmatmul.mubr.f32.vlgmr.msra.gmra.mrb[10].mxu0 %v5705_v57 }
 0x719   : > { %4167 = vmatpush3.bf16.msra.mxu0 %v4166_v54  ;;  %2853 = vmatprep.mubr.f32.mxu0 %v2786_v42  ;;  %v3396_v54 = vld [vmem:[%s6041_s6 + $0x2b8] sm:$0xff] }
 0x71a   : > { %4169 = vmatprep.subr.bf16.mxu0 %v4168_v5  ;;  %v4206_v5 = vpack.c.bf16 %v3378_v53, %v3377_v51  ;;  %v4208_v58 = vpack.c.bf16 %v3396_v54, %v3395_v43  ;;  %v3380_v42 = vld [vmem:[%s6041_s6 + $0x238] sm:$0xff]  ;;  %v3414_v51 = vld [vmem:[%s6041_s6 + $0x348] sm:$0xff]  ;;  %v3431_v53 = vld [vmem:[%s6041_s6 + $0x3d0] sm:$0xff] }
 0x71b   : > { %v3432_v43 = vld [vmem:[%s6041_s6 + $0x3d8] sm:$0xff] }
 0x71d   : > { %4171 = vmatpush3.bf16.msra.mxu0 %v4170_v59  ;;  %v4210_v59 = vpack.c.bf16 %v3380_v42, %v3379_v35  ;;  %v3416_v35 = vld [vmem:[%s6041_s6 + $0x358] sm:$0xff]  ;;  %v3433_v42 = vld [vmem:[%s6041_s6 + $0x3e0] sm:$0xff] }
 0x71e   : > { %4173 = vmatprep.subr.bf16.mxu0 %v4172_v60  ;;  %v4212_v60 = vpack.c.bf16 %v3398_v21, %v3397_v52  ;;  %v3434_v52 = vld [vmem:[%s6041_s6 + $0x3e8] sm:$0xff] }
 0x721   : > { %4175 = vmatpush3.bf16.msra.mxu0 %v4174_v55  ;;  %v4214_v55 = vpack.c.bf16 %v3382_v50, %v3381_v61  ;;  %v3418_v61 = vld [vmem:[%s6041_s6 + $0x368] sm:$0xff]  ;;  %v3435_v50 = vld [vmem:[%s6041_s6 + $0x3f0] sm:$0xff] }
 0x722   : > { %4177 = vmatprep.subr.bf16.mxu0 %v4176_v1  ;;  %v4216_v1 = vpack.c.bf16 %v3400_v62, %v3399_v37  ;;  %v3436_v37 = vld [vmem:[%s6041_s6 + $0x3f8] sm:$0xff] }
 0x725   : > { %4179 = vmatpush3.bf16.msra.mxu0 %v4178_v41  ;;  %v4218_v41 = vpack.c.bf16 %v3384_v7, %v3383_v2  ;;  %v3420_v2 = vld [vmem:[%s6041_s6 + $0x378] sm:$0xff] }
 0x726   : > { %4181 = vmatprep.subr.bf16.mxu0 %v4180_v3  ;;  %v4220_v3 = vpack.c.bf16 %v3402_v9, %v3401_v8  ;;  %v3001_v8 = vrot.slane %v5705_v57, 3 }
 0x729   : > { %4183 = vmatpush3.bf16.msra.mxu0 %v4182_v13  ;;  %v4222_v13 = vpack.c.bf16 %v3386_v11, %v3385_v10  ;;  %v2646_v10 = vld [vmem:[%s6042_s7] sm:$0x1] }
 0x72a   : > { %4185 = vmatprep.subr.bf16.mxu0 %v4184_v15  ;;  %v4224_v15 = vpack.c.bf16 %v3404_v56, %v3403_v12 }
 0x72d   : > { %4187 = vmatpush3.bf16.msra.mxu0 %v4186_v39  ;;  %v4226_v39 = vpack.c.bf16 %v3388_v17, %v3387_v16 }
 0x72e   : > { %4189 = vmatprep.subr.bf16.mxu0 %v4188_v14  ;;  %v4228_v14 = vpack.c.bf16 %v3422_v63, %v3421_v0 }
 0x731   : > { %4191 = vmatpush3.bf16.msra.mxu0 %v4190_v20  ;;  %v4230_v20 = vpack.c.bf16 %v3406_v36, %v3405_v18 }
 0x732   : > { %4193 = vmatprep.subr.bf16.mxu0 %v4192_v22  ;;  %v2893_v22 = vrot.slane %v5705_v57, 2 }
 0x735   : > { %4195 = vmatpush3.bf16.msra.mxu0 %v4194_v26  ;;  %v3425_v26 = vld [vmem:[%s6041_s6 + $0x3a0] sm:$0xff] }
 0x736   : > { %4197 = vmatprep.subr.bf16.mxu0 %v4196_v27  ;;  %v3426_v27 = vld [vmem:[%s6041_s6 + $0x3a8] sm:$0xff] }
 0x737   : > { %v4236_v29 = vpack.c.bf16 %v3426_v27, %v3425_v26 }
 0x738   : > { %2854 = vmatmul.mubr.f32.vlgmr.msra.gmra.mrb[12].mxu0 %v2785_v33  ;;  %v4238_v33 = vpack.c.bf16 %v3410_v47, %v3409_v30 }
 0x739   : > { %4199 = vmatpush3.bf16.msra.mxu0 %v4198_v32  ;;  %2961 = vmatprep.mubr.f32.mxu0 %v2894_v45  ;;  %v3428_v32 = vld [vmem:[%s6041_s6 + $0x3b8] sm:$0xff]  ;;  %v3429_v45 = vld [vmem:[%s6041_s6 + $0x3c0] sm:$0xff] }
 0x73a   : > { %4201 = vmatprep.subr.bf16.mxu0 %v4200_v34  ;;  %v4240_v34 = vpack.c.bf16 %v3428_v32, %v3427_v31 }
 0x73d   : > { %4203 = vmatpush3.bf16.msra.mxu0 %v4202_v4  ;;  %v4244_v4 = vpack.c.bf16 %v3430_v46, %v3429_v45 }
 0x73e   : > { %4205 = vmatprep.subr.bf16.mxu0 %v4204_v49  ;;  %v3413_v49 = vld [vmem:[%s6041_s6 + $0x340] sm:$0xff] }
 0x73f   : > { %v4246_v54 = vpack.c.bf16 %v3414_v51, %v3413_v49 }
 0x741   : > { %4207 = vmatpush3.bf16.msra.mxu0 %v4206_v5  ;;  %v4248_v5 = vpack.c.bf16 %v3432_v43, %v3431_v53 }
 0x742   : > { %4209 = vmatprep.subr.bf16.mxu0 %v4208_v58  ;;  %v3415_v58 = vld [vmem:[%s6041_s6 + $0x350] sm:$0xff] }
 0x743   : > { %v4250_v21 = vpack.c.bf16 %v3416_v35, %v3415_v58 }
 0x745   : > { %4211 = vmatpush3.bf16.msra.mxu0 %v4210_v59  ;;  %v4252_v59 = vpack.c.bf16 %v3434_v52, %v3433_v42 }
 0x746   : > { %4213 = vmatprep.subr.bf16.mxu0 %v4212_v60  ;;  %v3417_v60 = vld [vmem:[%s6041_s6 + $0x360] sm:$0xff] }
 0x747   : > { %v4254_v62 = vpack.c.bf16 %v3418_v61, %v3417_v60 }
 0x749   : > { %4215 = vmatpush3.bf16.msra.mxu0 %v4214_v55  ;;  %v4256_v55 = vpack.c.bf16 %v3436_v37, %v3435_v50 }
 0x74a   : > { %4217 = vmatprep.subr.bf16.mxu0 %v4216_v1  ;;  %v3419_v1 = vld [vmem:[%s6041_s6 + $0x370] sm:$0xff] }
 0x74b   : > { %v4258_v7 = vpack.c.bf16 %v3420_v2, %v3419_v1 }
 0x74d   : > { %4219 = vmatpush3.bf16.msra.mxu0 %v4218_v41 }
 0x74e   : > { %4221 = vmatprep.subr.bf16.mxu0 %v4220_v3 }
 0x751   : > { %4223 = vmatpush3.bf16.msra.mxu0 %v4222_v13 }
 0x752   : > { %4225 = vmatprep.subr.bf16.mxu0 %v4224_v15 }
 0x755   : > { %4227 = vmatpush3.bf16.msra.mxu0 %v4226_v39 }
 0x756   : > { %4229 = vmatprep.subr.bf16.mxu0 %v4228_v14 }
 0x758   : > { %2962 = vmatmul.mubr.f32.vlgmr.msra.gmra.mrb[14].mxu0 %v2893_v22 }
 0x759   : > { %4231 = vmatpush3.bf16.msra.mxu0 %v4230_v20  ;;  %3069 = vmatprep.mubr.f32.mxu0 %v3002_v25 }
 0x75a   : > { %4233 = vmatprep.subr.bf16.mxu0 %v4232_v6 }
 0x75d   : > { %4235 = vmatpush3.bf16.msra.mxu0 %v4234_v28 }
 0x75e   : > { %4237 = vmatprep.subr.bf16.mxu0 %v4236_v29 }
 0x761   : > { %4239 = vmatpush3.bf16.msra.mxu0 %v4238_v33 }
 0x762   : > { %4241 = vmatprep.subr.bf16.mxu0 %v4240_v34 }
 0x765   : > { %4243 = vmatpush3.bf16.msra.mxu0 %v4242_v48 }
 0x766   : > { %4245 = vmatprep.subr.bf16.mxu0 %v4244_v4 }
 0x769   : > { %4247 = vmatpush3.bf16.msra.mxu0 %v4246_v54 }
 0x76a   : > { %4249 = vmatprep.subr.bf16.mxu0 %v4248_v5 }
 0x76d   : > { %4251 = vmatpush3.bf16.msra.mxu0 %v4250_v21 }
 0x76e   : > { %4253 = vmatprep.subr.bf16.mxu0 %v4252_v59 }
 0x771   : > { %4255 = vmatpush3.bf16.msra.mxu0 %v4254_v62 }
 0x772   : > { %4257 = vmatprep.subr.bf16.mxu0 %v4256_v55 }
 0x775   : > { %4259 = vmatpush3.bf16.msra.mxu0 %v4258_v7 }
 0x778   : > { %3070 = vmatmul.mubr.f32.vlgmr.msra.gmra.mrb[16].mxu0 %v3001_v8 }
 0x7eb   : > { %v3472_v9 = vpop.f32.mrb[10].mxu0 }
 0x7ec   : > { %v3473_v41 = vpop.f32.mrb[11].mxu0 }
 0x7ed   : > { %v3474_v3 = vadd.f32 %v3473_v41, %v3472_v9 }
 0x7ef   : > { %v2749_v56 = vadd.f32 %v3474_v3, %v2646_v10 }
 0x80b   : > { %v3507_v11 = vpop.f32.mrb[12].mxu0 }
 0x80c   : > { %v3508_v12 = vpop.f32.mrb[13].mxu0 }
 0x80d   : > { %v3509_v13 = vadd.f32 %v3508_v12, %v3507_v11 }
 0x80f   : > { %v2859_v15 = vadd.f32 %v3509_v13, %v2749_v56 }
 0x82b   : > { %v3542_v16 = vpop.f32.mrb[14].mxu0 }
 0x82c   : > { %v3543_v17 = vpop.f32.mrb[15].mxu0 }
 0x82d   : > { %v3544_v0 = vadd.f32 %v3543_v17, %v3542_v16 }
 0x82f   : > { %v2967_v63 = vadd.f32 %v3544_v0, %v2859_v15 }
 0x84b   : > { %v3577_v57 = vpop.f32.mrb[16].mxu0 }
 0x84c   : > { %v3578_v39 = vpop.f32.mrb[17].mxu0 }
 0x84d   : > { %v3579_v14 = vadd.f32 %v3578_v39, %v3577_v57 }
 0x84f   : > { %v3075_v18 = vadd.f32 %v3579_v14, %v2967_v63 }
 0x851   : > { %3077 = vst.msk [vmem:[%s341_s16] sm:$0x1] %vm3076_vm10, %v3075_v18 }
 0x852   : > { %4467 = shalt.err (!%p4464_p9)
}
 0x853   : > { %s4468_s29 = scalar_lea.hbm %s5993_s23, 16  ;;  %s4472_s24 = scalar_lea.hbm %s6043_s8, 32 }
 0x854   : > { %p4469_p2 = scmp.ne.s32.totalorder %s5993_s23, %s4468_s29  ;;  %p4473_p5 = scmp.lt.u32.totalorder %s5993_s23, %s6043_s8 }
 0x855   : > { %p4474_p10 = scmp.lt.u32.totalorder %s4472_s24, %s4468_s29  ;;  %p4476_p12 = scmp.lt.u32.totalorder %s4468_s29, %s5993_s23 }
 0x856   : > { %p4470_p0 = pnand %p4469_p2, %p6071_p7 }
 0x857   : > { %p4475_p4 = por %p4474_p10, %p4473_p5 }
 0x858   : > { %p4471_p3 = pneg %p4470_p0 }
 0x859   : > { %p4477_p8 = por %p4476_p12, %p4475_p4 }
 0x85b   : > { %p4478_p11 = pnand %p4477_p8, %p4471_p3 }
 0x85d   : > { %4481 = shalt.err (!%p4478_p11)
}
 0x85e   : > { %4305 = dma.vmem_to_hbm [thread:$0]  (%p6071_p7), %s5995_s12, 16, %s5993_s23, %s3079_s25  }
 0x85f PF: > { %s6072_s11 = sld [smem:[#allocation18_spill]]  ;;  %p4327_p13 = scmp.ge.s32.totalorder %s4524_s30, 2 }
 0x860   : > { %s3103_s14 = sand.u32 1, %s4512_s27  }
 0x861   : > { %s3104_s16 = scalar_lea.sflag [#allocation7], %s3103_s14 }
 0x865   : > { %p6073_p1 = scmp.ne.s32.totalorder %s6072_s11, 0 }
 0x867   : > { %p4318_p6 = pnand %p4327_p13, %p6073_p1 }
 0x869   : > { %4507 = dma.done.wait (!%p4318_p6), %s3104_s16, 16  }
 0x86a   : > { %4509 = vsyncadd (!%p4318_p6), %s3104_s16, 4294967280  ;;  %s6074_s30 = sld [smem:[#allocation16_spill]]  ;;  %s6075_s13 = sld [smem:[#allocation15_spill]] }
 0x86b   : > { %s6076_s29 = sld [smem:[#allocation17_spill]]  ;;  %s6077_s27 = smov %s4516_s28 }
 0x870   : > { %p20_p9 = scmp.ge.s32.totalorder %s6074_s30, 4   ;;  %s6078_s28 = smov %s6075_s13 }
 0x872   :  { %22 = sbr.rel (!%p20_p9) target bundleno = 5 (0x5), region = 145 }
 0x879   :  { %3108 = vsyncpa [#allocation6], 1 }
 0x87a   :  { %3110 = vsyncpa [#allocation6 + $0x1], 1 }
 0x87b   :  { %3111 = vsyncpa [#allocation9], 1 }
 0x87c   :  { %3112 = vsyncpa [#allocation7], 1 }
 0x87d   :  { %3114 = vsyncpa [#allocation7 + $0x1], 1 }

</bundles_post_ra>
